<compile_context>
chip_gen: v6e
topology: v6e:2x2x1
jax: 0.10.0
libtpu: 0.0.40
codegen_flags: <defaults>
</compile_context>

<pallas_src>
from functools import partial

import jax
import jax.numpy as jnp
import numpy as np
from jax.experimental import pallas as pl
from jax.experimental.pallas import tpu as pltpu


# -----------------------------------------------------------------------------
# Kernel (one fused FiLM decoder layer, one batch tile per grid step)
# -----------------------------------------------------------------------------
def _layernorm(x, w, b, eps=1e-5):
    mu = jnp.mean(x, axis=-1, keepdims=True)
    var = jnp.mean((x - mu) ** 2, axis=-1, keepdims=True)
    return (x - mu) * jax.lax.rsqrt(var + eps) * w + b


def film_decoder_kernel(
    x_ref, film_ref,
    n1w_ref, n1b_ref,
    inw_ref, inb_ref, outw_ref, outb_ref,
    n3w_ref, n3b_ref,
    l1w_ref, l1b_ref, l2w_ref, l2b_ref,
    o_ref,
    *, nhead,
):
    cd = inw_ref.dtype                        # matmul compute dtype (bf16)
    x = x_ref[...].astype(jnp.float32)        # (Bt, S, D)
    Bt, S, D = x.shape
    dh = D // nhead

    x2 = x.reshape(Bt * S, D)

    # ---- norm1 (f32 statistics) ----
    xn = _layernorm(x2, n1w_ref[...], n1b_ref[...])

    # ---- fused qkv projection over all Bt*S rows (single MXU matmul) ----
    # NOTE: the 1/sqrt(dh) attention scale is pre-folded into the Q columns.
    qkv = jnp.dot(xn.astype(cd), inw_ref[...],
                  preferred_element_type=jnp.float32) + inb_ref[...]
    q = qkv[:, :D].reshape(Bt, S, nhead, dh)
    k = qkv[:, D:2 * D].reshape(Bt, S, nhead, dh)
    v = qkv[:, 2 * D:].reshape(Bt, S, nhead, dh)

    # ---- head-batched self-attention; small static loop over the batch tile --
    ctx_list = []
    for b in range(Bt):                       # Bt is a small compile-time constant
        s = jnp.einsum("qhd,khd->hqk", q[b].astype(cd), k[b].astype(cd),
                       preferred_element_type=jnp.float32)      # (H, S, S)
        s = s - jnp.max(s, axis=-1, keepdims=True)
        p = jnp.exp(s)
        p = p * pl.reciprocal(jnp.sum(p, axis=-1, keepdims=True), approx=True)
        ctx = jnp.einsum("hqk,khd->qhd", p.astype(cd), v[b].astype(cd),
                         preferred_element_type=jnp.float32)    # (S, H, dh)
        ctx_list.append(ctx.reshape(S, D))
    attn = ctx_list[0] if Bt == 1 else jnp.concatenate(ctx_list, axis=0)  # (Bt*S, D)

    sa = jnp.dot(attn.astype(cd), outw_ref[...],
                 preferred_element_type=jnp.float32) + outb_ref[...]
    sa = sa.reshape(Bt, S, D)
    # dropout1 is identity at inference time.

    # ---- FiLM1: (scale + 1) * sa + shift  (scale/shift precomputed in wrapper)
    film = film_ref[...]                      # (Bt, 4, D): [sc1, sh1, sc3, sh3]
    sc1 = film[:, 0:1, :]
    sh1 = film[:, 1:2, :]
    x = x + (sc1 + 1.0) * sa + sh1

    # ---- norm3 + feed-forward (linear1 -> relu -> linear2) ----
    xn3 = _layernorm(x.reshape(Bt * S, D), n3w_ref[...], n3b_ref[...])
    h1 = jnp.dot(xn3.astype(cd), l1w_ref[...],
                 preferred_element_type=jnp.float32) + l1b_ref[...]
    h1 = jnp.maximum(h1, 0.0)                 # F.relu
    ff = jnp.dot(h1.astype(cd), l2w_ref[...],
                 preferred_element_type=jnp.float32) + l2b_ref[...]
    ff = ff.reshape(Bt, S, D)
    # dropout / dropout3 are identity at inference time.

    # ---- FiLM3 ----
    sc3 = film[:, 2:3, :]
    sh3 = film[:, 3:4, :]
    x = x + (sc3 + 1.0) * ff + sh3

    o_ref[...] = x.astype(o_ref.dtype)


# -----------------------------------------------------------------------------
# Wrapper
# -----------------------------------------------------------------------------
def _mish(z):
    return z * jnp.tanh(jax.nn.softplus(z))


def _film_scale_shift(t, params):
    # Hoisted FiLM path: one batched (B, D) @ (D, 4D) XLA matmul per layer.
    B = t.shape[0]
    D = params["norm1_w"].shape[0]
    mt = _mish(t.astype(jnp.float32))
    pe1 = mt @ params["film1_w"].T.astype(jnp.float32) + params["film1_b"]
    pe3 = mt @ params["film3_w"].T.astype(jnp.float32) + params["film3_b"]
    # rows: [scale1, shift1, scale3, shift3]
    return jnp.concatenate([pe1, pe3], axis=-1).reshape(B, 4, D)


def _prepare_layer_args(params, nhead, compute_dtype):
    D = params["norm1_w"].shape[0]
    F = params["lin1_w"].shape[0]
    dh = D // nhead
    scale = 1.0 / float(np.sqrt(dh))
    # Fold the attention scale into the Q block of in_proj (weights AND bias).
    col_scale = jnp.concatenate(
        [jnp.full((D,), scale, jnp.float32), jnp.ones((2 * D,), jnp.float32)])
    return [
        params["norm1_w"].reshape(1, D).astype(jnp.float32),
        params["norm1_b"].reshape(1, D).astype(jnp.float32),
        (params["in_proj_w"].T * col_scale[None, :]).astype(compute_dtype),
        (params["in_proj_b"] * col_scale).reshape(1, 3 * D).astype(jnp.float32),
        params["out_proj_w"].T.astype(compute_dtype),
        params["out_proj_b"].reshape(1, D).astype(jnp.float32),
        params["norm3_w"].reshape(1, D).astype(jnp.float32),
        params["norm3_b"].reshape(1, D).astype(jnp.float32),
        params["lin1_w"].T.astype(compute_dtype),
        params["lin1_b"].reshape(1, F).astype(jnp.float32),
        params["lin2_w"].T.astype(compute_dtype),
        params["lin2_b"].reshape(1, D).astype(jnp.float32),
    ]


def _vmem_limit_bytes(bt, S, D, F, H, weight_itemsize):
    f32 = 4
    weights = weight_itemsize * (3 * D * D + D * D + D * F + F * D)
    small = f32 * (8 * D + 3 * D + F)                        # norm params + biases
    io = 2 * f32 * (2 * bt * S * D + bt * 4 * D)             # double-buffered x/out/film
    interm = f32 * bt * (3 * S * D + H * S * S + S * F + 6 * S * D)
    est = weights + small + io + interm
    # Generous headroom, capped so it also fits v7x's 64 MiB physical VMEM
    # (v5e/v6e have 128 MiB and could go higher for larger tiles).
    return int(min(max(4 * est, 32 * 1024 * 1024), 64 * 1024 * 1024))


def _film_decoder_layer_call(x, film, weight_args, nhead, batch_tile,
                             single_buffer_weights):
    B, S, D = x.shape
    F = weight_args[8].shape[1]               # lin1 weight is (D, F)
    grid = (B // batch_tile,)

    # Weights have a constant index_map -> single-buffer them to halve their
    # VMEM footprint (important on v7x).
    wkw = {"pipeline_mode": pl.Buffered(1)} if single_buffer_weights else {}

    def wspec(a):
        nd = a.ndim
        return pl.BlockSpec(a.shape, lambda g, _nd=nd: (0,) * _nd, **wkw)

    in_specs = [
        pl.BlockSpec((batch_tile, S, D), lambda g: (g, 0, 0)),   # x, per-batch tile
        pl.BlockSpec((batch_tile, 4, D), lambda g: (g, 0, 0)),   # FiLM scale/shift
    ] + [wspec(a) for a in weight_args]

    fn = pl.pallas_call(
        partial(film_decoder_kernel, nhead=nhead),
        out_shape=jax.ShapeDtypeStruct((B, S, D), x.dtype),
        grid=grid,
        in_specs=in_specs,
        out_specs=pl.BlockSpec((batch_tile, S, D), lambda g: (g, 0, 0)),
        compiler_params=pltpu.CompilerParams(
            dimension_semantics=("parallel",),
            vmem_limit_bytes=_vmem_limit_bytes(
                batch_tile, S, D, F, nhead, weight_args[2].dtype.itemsize),
        ),
    )
    return fn(x, film, *weight_args)


def film_decoder_layer(x, t, params, nhead, *, batch_tile=1,
                       compute_dtype=jnp.bfloat16):
    B = x.shape[0]
    bt = batch_tile if (batch_tile >= 1 and B % batch_tile == 0) else 1
    film = _film_scale_shift(t, params)
    weight_args = _prepare_layer_args(params, nhead, compute_dtype)
    try:
        out = _film_decoder_layer_call(x, film, weight_args, nhead, bt,
                                       single_buffer_weights=True)
        return jax.block_until_ready(out)
    except Exception:
        # pl.Buffered(1) (single-buffered resident weights) not supported by the
        # installed jax version -> fall back to default double buffering.
        return _film_decoder_layer_call(x, film, weight_args, nhead, bt,
                                        single_buffer_weights=False)


def decoder_layer_stack(x, t, layer_params, nhead, *, batch_tile=1,
                        compute_dtype=jnp.bfloat16):
    # DecoderLayerStack.forward: sequentially apply each FiLM decoder layer.
    # Pick batch_tile so grid length stays >= #TensorCores (2 on v7x) when
    # throughput across cores matters; here batch folding maximizes matmul M.
    for params in layer_params:
        x = film_decoder_layer(x, t, params, nhead, batch_tile=batch_tile,
                               compute_dtype=compute_dtype)
    return x


# -----------------------------------------------------------------------------
# Pure-JAX reference (mirrors the PyTorch forward, eval mode)
# -----------------------------------------------------------------------------
def _reference_layer(x, t, p, nhead):
    B, S, D = x.shape
    dh = D // nhead

    def ln(v, w, b):
        mu = v.mean(-1, keepdims=True)
        var = ((v - mu) ** 2).mean(-1, keepdims=True)
        return (v - mu) / jnp.sqrt(var + 1e-5) * w + b

    def mish(z):
        return z * jnp.tanh(jax.nn.softplus(z))

    xn = ln(x, p["norm1_w"], p["norm1_b"])
    qkv = xn @ p["in_proj_w"].T + p["in_proj_b"]
    q, k, v = jnp.split(qkv, 3, axis=-1)
    q = q.reshape(B, S, nhead, dh).transpose(0, 2, 1, 3)
    k = k.reshape(B, S, nhead, dh).transpose(0, 2, 1, 3)
    v = v.reshape(B, S, nhead, dh).transpose(0, 2, 1, 3)
    s = jnp.einsum("bhqd,bhkd->bhqk", q, k) / jnp.sqrt(dh)
    a = jax.nn.softmax(s, axis=-1)
    o = jnp.einsum("bhqk,bhkd->bhqd", a, v).transpose(0, 2, 1, 3).reshape(B, S, D)
    sa = o @ p["out_proj_w"].T + p["out_proj_b"]

    pe1 = mish(t) @ p["film1_w"].T + p["film1_b"]
    sc1, sh1 = pe1[:, None, :D], pe1[:, None, D:]
    x = x + (sc1 + 1.0) * sa + sh1

    xn3 = ln(x, p["norm3_w"], p["norm3_b"])
    h1 = jnp.maximum(xn3 @ p["lin1_w"].T + p["lin1_b"], 0.0)
    ff = h1 @ p["lin2_w"].T + p["lin2_b"]

    pe3 = mish(t) @ p["film3_w"].T + p["film3_b"]
    sc3, sh3 = pe3[:, None, :D], pe3[:, None, D:]
    return x + (sc3 + 1.0) * ff + sh3


def reference_forward(x, t, layer_params, nhead):
    for p in layer_params:
        x = _reference_layer(x, t, p, nhead)
    return x


# -----------------------------------------------------------------------------
# Main
# -----------------------------------------------------------------------------
if __name__ == "__main__":
    B, S, D, NHEAD, FF, NLAYERS = 2, 8, 32, 4, 64, 2

    key = jax.random.PRNGKey(0)

    def w(k, shape, scale=0.1):
        return (scale * jax.random.normal(k, shape)).astype(jnp.float32)

    def make_layer(lkey):
        ks = jax.random.split(lkey, 14)
        return {
            "norm1_w": 1.0 + w(ks[0], (D,)),
            "norm1_b": w(ks[1], (D,), 0.05),
            "in_proj_w": w(ks[2], (3 * D, D)),
            "in_proj_b": w(ks[3], (3 * D,), 0.05),
            "out_proj_w": w(ks[4], (D, D)),
            "out_proj_b": w(ks[5], (D,), 0.05),
            "film1_w": w(ks[6], (2 * D, D)),
            "film1_b": w(ks[7], (2 * D,), 0.05),
            "norm3_w": 1.0 + w(ks[8], (D,)),
            "norm3_b": w(ks[9], (D,), 0.05),
            "lin1_w": w(ks[10], (FF, D)),
            "lin1_b": w(ks[11], (FF,), 0.05),
            "lin2_w": w(ks[12], (D, FF)),
            "lin2_b": w(ks[13], (D,), 0.05),
            "film3_w": w(ks[6], (2 * D, D)) * 0.5,
            "film3_b": w(ks[7], (2 * D,), 0.05),
        }

    key, kx, kt, *lkeys = jax.random.split(key, 3 + NLAYERS)
    layer_params = [make_layer(k) for k in lkeys]

    x = jax.random.normal(kx, (B, S, D), dtype=jnp.float32)   # (B, S, D) tgt
    t = jax.random.normal(kt, (B, D), dtype=jnp.float32)      # (B, D) conditioning

    # batch_tile=2 folds both batch elements into one grid step so each
    # projection matmul sees M = batch_tile*S rows.
    out = decoder_layer_stack(x, t, layer_params, NHEAD, batch_tile=2)
    out = jax.block_until_ready(out)

    ref = reference_forward(x, t, layer_params, NHEAD)
    ref = jax.block_until_ready(ref)

    # bf16 MXU matmuls (f32 accumulation) + approx softmax reciprocal vs. a
    # pure-f32 reference -> slightly relaxed tolerance.
    if not np.allclose(np.asarray(out), np.asarray(ref), atol=3e-2, rtol=3e-2):
        raise AssertionError("Pallas kernel does not match reference")

    # TODO(synk): dropout layers (p=0.1) are inference-mode no-ops here; rotary=None path only.
    print("KERNEL_OK")
</pallas_src>

<mosaic_0001>
module attributes {stable_mosaic.version = 11 : i64} {
  func.func @film_decoder_kernel(%arg0: i32, %arg1: memref<2x8x32xf32, #tpu.memory_space<vmem>>, %arg2: memref<2x4x32xf32, #tpu.memory_space<vmem>>, %arg3: memref<1x32xf32, #tpu.memory_space<vmem>>, %arg4: memref<1x32xf32, #tpu.memory_space<vmem>>, %arg5: memref<32x96xbf16, #tpu.memory_space<vmem>>, %arg6: memref<1x96xf32, #tpu.memory_space<vmem>>, %arg7: memref<32x32xbf16, #tpu.memory_space<vmem>>, %arg8: memref<1x32xf32, #tpu.memory_space<vmem>>, %arg9: memref<1x32xf32, #tpu.memory_space<vmem>>, %arg10: memref<1x32xf32, #tpu.memory_space<vmem>>, %arg11: memref<32x64xbf16, #tpu.memory_space<vmem>>, %arg12: memref<1x64xf32, #tpu.memory_space<vmem>>, %arg13: memref<64x32xbf16, #tpu.memory_space<vmem>>, %arg14: memref<1x32xf32, #tpu.memory_space<vmem>>, %arg15: memref<2x8x32xf32, #tpu.memory_space<vmem>>) attributes {dimension_semantics = [#tpu.dimension_semantics<parallel>], iteration_bounds = array<i64: 1>, scalar_prefetch = 0 : i64, scratch_operands = 0 : i64, tpu.core_type = #tpu.core_type<tc>, window_params = [{transform_indices = @transform_0, window_bounds = array<i64: 2, 8, 32>}, {transform_indices = @transform_1, window_bounds = array<i64: 2, 4, 32>}, {pipeline_mode = #tpu.pipeline_mode<synchronous>, transform_indices = @transform_2, window_bounds = array<i64: 1, 32>}, {pipeline_mode = #tpu.pipeline_mode<synchronous>, transform_indices = @transform_3, window_bounds = array<i64: 1, 32>}, {pipeline_mode = #tpu.pipeline_mode<synchronous>, transform_indices = @transform_4, window_bounds = array<i64: 32, 96>}, {pipeline_mode = #tpu.pipeline_mode<synchronous>, transform_indices = @transform_5, window_bounds = array<i64: 1, 96>}, {pipeline_mode = #tpu.pipeline_mode<synchronous>, transform_indices = @transform_6, window_bounds = array<i64: 32, 32>}, {pipeline_mode = #tpu.pipeline_mode<synchronous>, transform_indices = @transform_7, window_bounds = array<i64: 1, 32>}, {pipeline_mode = #tpu.pipeline_mode<synchronous>, transform_indices = @transform_8, window_bounds = array<i64: 1, 32>}, {pipeline_mode = #tpu.pipeline_mode<synchronous>, transform_indices = @transform_9, window_bounds = array<i64: 1, 32>}, {pipeline_mode = #tpu.pipeline_mode<synchronous>, transform_indices = @transform_10, window_bounds = array<i64: 32, 64>}, {pipeline_mode = #tpu.pipeline_mode<synchronous>, transform_indices = @transform_11, window_bounds = array<i64: 1, 64>}, {pipeline_mode = #tpu.pipeline_mode<synchronous>, transform_indices = @transform_12, window_bounds = array<i64: 64, 32>}, {pipeline_mode = #tpu.pipeline_mode<synchronous>, transform_indices = @transform_13, window_bounds = array<i64: 1, 32>}, {transform_indices = @transform_14, window_bounds = array<i64: 2, 8, 32>}]} {
    %c0 = arith.constant 0 : index
    %c0_0 = arith.constant 0 : index
    %c0_1 = arith.constant 0 : index
    %0 = vector.load %arg1[%c0, %c0_0, %c0_1] : memref<2x8x32xf32, #tpu.memory_space<vmem>>, vector<2x8x32xf32>
    %1 = vector.shape_cast %0 : vector<2x8x32xf32> to vector<16x32xf32>
    %c0_2 = arith.constant 0 : index
    %c0_3 = arith.constant 0 : index
    %2 = vector.load %arg3[%c0_2, %c0_3] : memref<1x32xf32, #tpu.memory_space<vmem>>, vector<1x32xf32>
    %c0_4 = arith.constant 0 : index
    %c0_5 = arith.constant 0 : index
    %3 = vector.load %arg4[%c0_4, %c0_5] : memref<1x32xf32, #tpu.memory_space<vmem>>, vector<1x32xf32>
    %cst = arith.constant dense<0.000000e+00> : vector<16xf32>
    %4 = vector.multi_reduction <add>, %1, %cst [1] : vector<16x32xf32> to vector<16xf32>
    %5 = vector.shape_cast %4 : vector<16xf32> to vector<16x1xf32>
    %cst_6 = arith.constant 3.200000e+01 : f32
    %6 = vector.broadcast %cst_6 : f32 to vector<16x1xf32>
    %7 = arith.divf %5, %6 : vector<16x1xf32>
    %8 = vector.broadcast %7 : vector<16x1xf32> to vector<16x32xf32>
    %9 = arith.subf %1, %8 : vector<16x32xf32>
    %10 = arith.mulf %9, %9 : vector<16x32xf32>
    %cst_7 = arith.constant dense<0.000000e+00> : vector<16xf32>
    %11 = vector.multi_reduction <add>, %10, %cst_7 [1] : vector<16x32xf32> to vector<16xf32>
    %12 = vector.shape_cast %11 : vector<16xf32> to vector<16x1xf32>
    %cst_8 = arith.constant 3.200000e+01 : f32
    %13 = vector.broadcast %cst_8 : f32 to vector<16x1xf32>
    %14 = arith.divf %12, %13 : vector<16x1xf32>
    %15 = vector.broadcast %7 : vector<16x1xf32> to vector<16x32xf32>
    %16 = arith.subf %1, %15 : vector<16x32xf32>
    %cst_9 = arith.constant 9.99999974E-6 : f32
    %17 = vector.broadcast %cst_9 : f32 to vector<16x1xf32>
    %18 = arith.addf %14, %17 : vector<16x1xf32>
    %19 = math.rsqrt %18 : vector<16x1xf32>
    %20 = vector.broadcast %19 : vector<16x1xf32> to vector<16x32xf32>
    %21 = arith.mulf %16, %20 : vector<16x32xf32>
    %22 = vector.broadcast %2 : vector<1x32xf32> to vector<16x32xf32>
    %23 = arith.mulf %21, %22 : vector<16x32xf32>
    %24 = vector.broadcast %3 : vector<1x32xf32> to vector<16x32xf32>
    %25 = arith.addf %23, %24 : vector<16x32xf32>
    %26 = arith.truncf %25 : vector<16x32xf32> to vector<16x32xbf16>
    %c0_10 = arith.constant 0 : index
    %c0_11 = arith.constant 0 : index
    %27 = vector.load %arg5[%c0_10, %c0_11] : memref<32x96xbf16, #tpu.memory_space<vmem>>, vector<32x96xbf16>
    %cst_12 = arith.constant dense<0.000000e+00> : vector<16x96xf32>
    %28 = tpu.matmul %26, %27, %cst_12 {dimension_numbers = #tpu.dot_dimension_numbers<[1], [0], [0], [1], [0, 0, 1, 1], [], []>} : vector<16x32xbf16>, vector<32x96xbf16>, vector<16x96xf32> -> vector<16x96xf32>
    %c0_13 = arith.constant 0 : index
    %c0_14 = arith.constant 0 : index
    %29 = vector.load %arg6[%c0_13, %c0_14] : memref<1x96xf32, #tpu.memory_space<vmem>>, vector<1x96xf32>
    %30 = vector.broadcast %29 : vector<1x96xf32> to vector<16x96xf32>
    %31 = arith.addf %28, %30 : vector<16x96xf32>
    %32 = vector.extract_strided_slice %31 {offsets = [0, 0], sizes = [16, 32], strides = [1, 1]} : vector<16x96xf32> to vector<16x32xf32>
    %33 = vector.shape_cast %32 : vector<16x32xf32> to vector<2x8x4x8xf32>
    %34 = vector.extract_strided_slice %31 {offsets = [0, 32], sizes = [16, 32], strides = [1, 1]} : vector<16x96xf32> to vector<16x32xf32>
    %35 = vector.shape_cast %34 : vector<16x32xf32> to vector<2x8x4x8xf32>
    %36 = vector.extract_strided_slice %31 {offsets = [0, 64], sizes = [16, 32], strides = [1, 1]} : vector<16x96xf32> to vector<16x32xf32>
    %37 = vector.shape_cast %36 : vector<16x32xf32> to vector<2x8x4x8xf32>
    %38 = vector.extract_strided_slice %33 {offsets = [0, 0, 0, 0], sizes = [1, 8, 4, 8], strides = [1, 1, 1, 1]} : vector<2x8x4x8xf32> to vector<1x8x4x8xf32>
    %39 = vector.shape_cast %38 : vector<1x8x4x8xf32> to vector<8x4x8xf32>
    %40 = arith.truncf %39 : vector<8x4x8xf32> to vector<8x4x8xbf16>
    %41 = vector.extract_strided_slice %35 {offsets = [0, 0, 0, 0], sizes = [1, 8, 4, 8], strides = [1, 1, 1, 1]} : vector<2x8x4x8xf32> to vector<1x8x4x8xf32>
    %42 = vector.shape_cast %41 : vector<1x8x4x8xf32> to vector<8x4x8xf32>
    %43 = arith.truncf %42 : vector<8x4x8xf32> to vector<8x4x8xbf16>
    "tpu.trace_start"() <{level = 10 : i32, message = "qhd,khd->hqk"}> : () -> ()
    %cst_15 = arith.constant dense<0.000000e+00> : vector<4x8x8xf32>
    %44 = tpu.matmul %40, %43, %cst_15 {dimension_numbers = #tpu.dot_dimension_numbers<[2], [2], [0], [0], [0, 1, 0, 0, 1, 0], [1], [1]>} : vector<8x4x8xbf16>, vector<8x4x8xbf16>, vector<4x8x8xf32> -> vector<4x8x8xf32>
    "tpu.trace_stop"() : () -> ()
    %cst_16 = arith.constant dense<0xFF800000> : vector<4x8xf32>
    %45 = vector.multi_reduction <maximumf>, %44, %cst_16 [2] : vector<4x8x8xf32> to vector<4x8xf32>
    %46 = vector.shape_cast %45 : vector<4x8xf32> to vector<4x8x1xf32>
    %47 = vector.broadcast %46 : vector<4x8x1xf32> to vector<4x8x8xf32>
    %48 = arith.subf %44, %47 : vector<4x8x8xf32>
    %49 = math.exp %48 : vector<4x8x8xf32>
    %cst_17 = arith.constant dense<0.000000e+00> : vector<4x8xf32>
    %50 = vector.multi_reduction <add>, %49, %cst_17 [2] : vector<4x8x8xf32> to vector<4x8xf32>
    %51 = vector.shape_cast %50 : vector<4x8xf32> to vector<4x8x1xf32>
    %52 = tpu.reciprocal %51 {approx = true} : vector<4x8x1xf32> -> vector<4x8x1xf32>
    %53 = vector.broadcast %52 : vector<4x8x1xf32> to vector<4x8x8xf32>
    %54 = arith.mulf %49, %53 : vector<4x8x8xf32>
    %55 = arith.truncf %54 : vector<4x8x8xf32> to vector<4x8x8xbf16>
    %56 = vector.extract_strided_slice %37 {offsets = [0, 0, 0, 0], sizes = [1, 8, 4, 8], strides = [1, 1, 1, 1]} : vector<2x8x4x8xf32> to vector<1x8x4x8xf32>
    %57 = vector.shape_cast %56 : vector<1x8x4x8xf32> to vector<8x4x8xf32>
    %58 = arith.truncf %57 : vector<8x4x8xf32> to vector<8x4x8xbf16>
    "tpu.trace_start"() <{level = 10 : i32, message = "hqk,khd->qhd"}> : () -> ()
    %cst_18 = arith.constant dense<0.000000e+00> : vector<4x8x8xf32>
    %59 = tpu.matmul %58, %55, %cst_18 {dimension_numbers = #tpu.dot_dimension_numbers<[0], [2], [2], [1], [0, 1, 0, 2, 1, 1], [1], [0]>} : vector<8x4x8xbf16>, vector<4x8x8xbf16>, vector<4x8x8xf32> -> vector<4x8x8xf32>
    %60 = tpu.transpose %59, [2, 0, 1] : vector<4x8x8xf32> -> vector<8x4x8xf32>
    "tpu.trace_stop"() : () -> ()
    %61 = vector.shape_cast %60 : vector<8x4x8xf32> to vector<8x32xf32>
    %62 = vector.extract_strided_slice %33 {offsets = [1, 0, 0, 0], sizes = [1, 8, 4, 8], strides = [1, 1, 1, 1]} : vector<2x8x4x8xf32> to vector<1x8x4x8xf32>
    %63 = vector.shape_cast %62 : vector<1x8x4x8xf32> to vector<8x4x8xf32>
    %64 = arith.truncf %63 : vector<8x4x8xf32> to vector<8x4x8xbf16>
    %65 = vector.extract_strided_slice %35 {offsets = [1, 0, 0, 0], sizes = [1, 8, 4, 8], strides = [1, 1, 1, 1]} : vector<2x8x4x8xf32> to vector<1x8x4x8xf32>
    %66 = vector.shape_cast %65 : vector<1x8x4x8xf32> to vector<8x4x8xf32>
    %67 = arith.truncf %66 : vector<8x4x8xf32> to vector<8x4x8xbf16>
    "tpu.trace_start"() <{level = 10 : i32, message = "qhd,khd->hqk"}> : () -> ()
    %cst_19 = arith.constant dense<0.000000e+00> : vector<4x8x8xf32>
    %68 = tpu.matmul %64, %67, %cst_19 {dimension_numbers = #tpu.dot_dimension_numbers<[2], [2], [0], [0], [0, 1, 0, 0, 1, 0], [1], [1]>} : vector<8x4x8xbf16>, vector<8x4x8xbf16>, vector<4x8x8xf32> -> vector<4x8x8xf32>
    "tpu.trace_stop"() : () -> ()
    %cst_20 = arith.constant dense<0xFF800000> : vector<4x8xf32>
    %69 = vector.multi_reduction <maximumf>, %68, %cst_20 [2] : vector<4x8x8xf32> to vector<4x8xf32>
    %70 = vector.shape_cast %69 : vector<4x8xf32> to vector<4x8x1xf32>
    %71 = vector.broadcast %70 : vector<4x8x1xf32> to vector<4x8x8xf32>
    %72 = arith.subf %68, %71 : vector<4x8x8xf32>
    %73 = math.exp %72 : vector<4x8x8xf32>
    %cst_21 = arith.constant dense<0.000000e+00> : vector<4x8xf32>
    %74 = vector.multi_reduction <add>, %73, %cst_21 [2] : vector<4x8x8xf32> to vector<4x8xf32>
    %75 = vector.shape_cast %74 : vector<4x8xf32> to vector<4x8x1xf32>
    %76 = tpu.reciprocal %75 {approx = true} : vector<4x8x1xf32> -> vector<4x8x1xf32>
    %77 = vector.broadcast %76 : vector<4x8x1xf32> to vector<4x8x8xf32>
    %78 = arith.mulf %73, %77 : vector<4x8x8xf32>
    %79 = arith.truncf %78 : vector<4x8x8xf32> to vector<4x8x8xbf16>
    %80 = vector.extract_strided_slice %37 {offsets = [1, 0, 0, 0], sizes = [1, 8, 4, 8], strides = [1, 1, 1, 1]} : vector<2x8x4x8xf32> to vector<1x8x4x8xf32>
    %81 = vector.shape_cast %80 : vector<1x8x4x8xf32> to vector<8x4x8xf32>
    %82 = arith.truncf %81 : vector<8x4x8xf32> to vector<8x4x8xbf16>
    "tpu.trace_start"() <{level = 10 : i32, message = "hqk,khd->qhd"}> : () -> ()
    %cst_22 = arith.constant dense<0.000000e+00> : vector<4x8x8xf32>
    %83 = tpu.matmul %82, %79, %cst_22 {dimension_numbers = #tpu.dot_dimension_numbers<[0], [2], [2], [1], [0, 1, 0, 2, 1, 1], [1], [0]>} : vector<8x4x8xbf16>, vector<4x8x8xbf16>, vector<4x8x8xf32> -> vector<4x8x8xf32>
    %84 = tpu.transpose %83, [2, 0, 1] : vector<4x8x8xf32> -> vector<8x4x8xf32>
    "tpu.trace_stop"() : () -> ()
    %85 = vector.shape_cast %84 : vector<8x4x8xf32> to vector<8x32xf32>
    %86 = tpu.concatenate %61, %85 in 0 : vector<8x32xf32>, vector<8x32xf32> -> vector<16x32xf32>
    %87 = arith.truncf %86 : vector<16x32xf32> to vector<16x32xbf16>
    %c0_23 = arith.constant 0 : index
    %c0_24 = arith.constant 0 : index
    %88 = vector.load %arg7[%c0_23, %c0_24] : memref<32x32xbf16, #tpu.memory_space<vmem>>, vector<32x32xbf16>
    %cst_25 = arith.constant dense<0.000000e+00> : vector<16x32xf32>
    %89 = tpu.matmul %87, %88, %cst_25 {dimension_numbers = #tpu.dot_dimension_numbers<[1], [0], [0], [1], [0, 0, 1, 1], [], []>} : vector<16x32xbf16>, vector<32x32xbf16>, vector<16x32xf32> -> vector<16x32xf32>
    %c0_26 = arith.constant 0 : index
    %c0_27 = arith.constant 0 : index
    %90 = vector.load %arg8[%c0_26, %c0_27] : memref<1x32xf32, #tpu.memory_space<vmem>>, vector<1x32xf32>
    %91 = vector.broadcast %90 : vector<1x32xf32> to vector<16x32xf32>
    %92 = arith.addf %89, %91 : vector<16x32xf32>
    %93 = vector.shape_cast %92 : vector<16x32xf32> to vector<2x8x32xf32>
    %c0_28 = arith.constant 0 : index
    %c0_29 = arith.constant 0 : index
    %c0_30 = arith.constant 0 : index
    %94 = vector.load %arg2[%c0_28, %c0_29, %c0_30] : memref<2x4x32xf32, #tpu.memory_space<vmem>>, vector<2x4x32xf32>
    %95 = vector.extract_strided_slice %94 {offsets = [0, 0, 0], sizes = [2, 1, 32], strides = [1, 1, 1]} : vector<2x4x32xf32> to vector<2x1x32xf32>
    %96 = vector.extract_strided_slice %94 {offsets = [0, 1, 0], sizes = [2, 1, 32], strides = [1, 1, 1]} : vector<2x4x32xf32> to vector<2x1x32xf32>
    %cst_31 = arith.constant 1.000000e+00 : f32
    %97 = vector.broadcast %cst_31 : f32 to vector<2x1x32xf32>
    %98 = arith.addf %95, %97 : vector<2x1x32xf32>
    %99 = vector.broadcast %98 : vector<2x1x32xf32> to vector<2x8x32xf32>
    %100 = arith.mulf %99, %93 : vector<2x8x32xf32>
    %101 = arith.addf %0, %100 : vector<2x8x32xf32>
    %102 = vector.broadcast %96 : vector<2x1x32xf32> to vector<2x8x32xf32>
    %103 = arith.addf %101, %102 : vector<2x8x32xf32>
    %104 = vector.shape_cast %103 : vector<2x8x32xf32> to vector<16x32xf32>
    %c0_32 = arith.constant 0 : index
    %c0_33 = arith.constant 0 : index
    %105 = vector.load %arg9[%c0_32, %c0_33] : memref<1x32xf32, #tpu.memory_space<vmem>>, vector<1x32xf32>
    %c0_34 = arith.constant 0 : index
    %c0_35 = arith.constant 0 : index
    %106 = vector.load %arg10[%c0_34, %c0_35] : memref<1x32xf32, #tpu.memory_space<vmem>>, vector<1x32xf32>
    %cst_36 = arith.constant dense<0.000000e+00> : vector<16xf32>
    %107 = vector.multi_reduction <add>, %104, %cst_36 [1] : vector<16x32xf32> to vector<16xf32>
    %108 = vector.shape_cast %107 : vector<16xf32> to vector<16x1xf32>
    %cst_37 = arith.constant 3.200000e+01 : f32
    %109 = vector.broadcast %cst_37 : f32 to vector<16x1xf32>
    %110 = arith.divf %108, %109 : vector<16x1xf32>
    %111 = vector.broadcast %110 : vector<16x1xf32> to vector<16x32xf32>
    %112 = arith.subf %104, %111 : vector<16x32xf32>
    %113 = arith.mulf %112, %112 : vector<16x32xf32>
    %cst_38 = arith.constant dense<0.000000e+00> : vector<16xf32>
    %114 = vector.multi_reduction <add>, %113, %cst_38 [1] : vector<16x32xf32> to vector<16xf32>
    %115 = vector.shape_cast %114 : vector<16xf32> to vector<16x1xf32>
    %cst_39 = arith.constant 3.200000e+01 : f32
    %116 = vector.broadcast %cst_39 : f32 to vector<16x1xf32>
    %117 = arith.divf %115, %116 : vector<16x1xf32>
    %118 = vector.broadcast %110 : vector<16x1xf32> to vector<16x32xf32>
    %119 = arith.subf %104, %118 : vector<16x32xf32>
    %cst_40 = arith.constant 9.99999974E-6 : f32
    %120 = vector.broadcast %cst_40 : f32 to vector<16x1xf32>
    %121 = arith.addf %117, %120 : vector<16x1xf32>
    %122 = math.rsqrt %121 : vector<16x1xf32>
    %123 = vector.broadcast %122 : vector<16x1xf32> to vector<16x32xf32>
    %124 = arith.mulf %119, %123 : vector<16x32xf32>
    %125 = vector.broadcast %105 : vector<1x32xf32> to vector<16x32xf32>
    %126 = arith.mulf %124, %125 : vector<16x32xf32>
    %127 = vector.broadcast %106 : vector<1x32xf32> to vector<16x32xf32>
    %128 = arith.addf %126, %127 : vector<16x32xf32>
    %129 = arith.truncf %128 : vector<16x32xf32> to vector<16x32xbf16>
    %c0_41 = arith.constant 0 : index
    %c0_42 = arith.constant 0 : index
    %130 = vector.load %arg11[%c0_41, %c0_42] : memref<32x64xbf16, #tpu.memory_space<vmem>>, vector<32x64xbf16>
    %cst_43 = arith.constant dense<0.000000e+00> : vector<16x64xf32>
    %131 = tpu.matmul %129, %130, %cst_43 {dimension_numbers = #tpu.dot_dimension_numbers<[1], [0], [0], [1], [0, 0, 1, 1], [], []>} : vector<16x32xbf16>, vector<32x64xbf16>, vector<16x64xf32> -> vector<16x64xf32>
    %c0_44 = arith.constant 0 : index
    %c0_45 = arith.constant 0 : index
    %132 = vector.load %arg12[%c0_44, %c0_45] : memref<1x64xf32, #tpu.memory_space<vmem>>, vector<1x64xf32>
    %133 = vector.broadcast %132 : vector<1x64xf32> to vector<16x64xf32>
    %134 = arith.addf %131, %133 : vector<16x64xf32>
    %cst_46 = arith.constant 0.000000e+00 : f32
    %135 = vector.broadcast %cst_46 : f32 to vector<16x64xf32>
    %136 = arith.maximumf %134, %135 : vector<16x64xf32>
    %137 = arith.truncf %136 : vector<16x64xf32> to vector<16x64xbf16>
    %c0_47 = arith.constant 0 : index
    %c0_48 = arith.constant 0 : index
    %138 = vector.load %arg13[%c0_47, %c0_48] : memref<64x32xbf16, #tpu.memory_space<vmem>>, vector<64x32xbf16>
    %cst_49 = arith.constant dense<0.000000e+00> : vector<16x32xf32>
    %139 = tpu.matmul %137, %138, %cst_49 {dimension_numbers = #tpu.dot_dimension_numbers<[1], [0], [0], [1], [0, 0, 1, 1], [], []>} : vector<16x64xbf16>, vector<64x32xbf16>, vector<16x32xf32> -> vector<16x32xf32>
    %c0_50 = arith.constant 0 : index
    %c0_51 = arith.constant 0 : index
    %140 = vector.load %arg14[%c0_50, %c0_51] : memref<1x32xf32, #tpu.memory_space<vmem>>, vector<1x32xf32>
    %141 = vector.broadcast %140 : vector<1x32xf32> to vector<16x32xf32>
    %142 = arith.addf %139, %141 : vector<16x32xf32>
    %143 = vector.shape_cast %142 : vector<16x32xf32> to vector<2x8x32xf32>
    %144 = vector.extract_strided_slice %94 {offsets = [0, 2, 0], sizes = [2, 1, 32], strides = [1, 1, 1]} : vector<2x4x32xf32> to vector<2x1x32xf32>
    %145 = vector.extract_strided_slice %94 {offsets = [0, 3, 0], sizes = [2, 1, 32], strides = [1, 1, 1]} : vector<2x4x32xf32> to vector<2x1x32xf32>
    %cst_52 = arith.constant 1.000000e+00 : f32
    %146 = vector.broadcast %cst_52 : f32 to vector<2x1x32xf32>
    %147 = arith.addf %144, %146 : vector<2x1x32xf32>
    %148 = vector.broadcast %147 : vector<2x1x32xf32> to vector<2x8x32xf32>
    %149 = arith.mulf %148, %143 : vector<2x8x32xf32>
    %150 = arith.addf %103, %149 : vector<2x8x32xf32>
    %151 = vector.broadcast %145 : vector<2x1x32xf32> to vector<2x8x32xf32>
    %152 = arith.addf %150, %151 : vector<2x8x32xf32>
    %c0_53 = arith.constant 0 : index
    %c0_54 = arith.constant 0 : index
    %c0_55 = arith.constant 0 : index
    %153 = vector.load %arg15[%c0_53, %c0_54, %c0_55] : memref<2x8x32xf32, #tpu.memory_space<vmem>>, vector<2x8x32xf32>
    tpu.vector_store %arg15[%c0_53, %c0_54, %c0_55], %152 {strides = array<i32>} : memref<2x8x32xf32, #tpu.memory_space<vmem>>, vector<2x8x32xf32>,
    return
  }
  func.func @transform_0(%arg0: i32) -> (i32, i32, i32) {
    %c0_i32 = arith.constant 0 : i32
    %c0_i32_0 = arith.constant 0 : i32
    %c0_i32_1 = arith.constant 0 : i32
    return %arg0, %c0_i32, %c0_i32_0 : i32, i32, i32
  }
  func.func @transform_1(%arg0: i32) -> (i32, i32, i32) {
    %c0_i32 = arith.constant 0 : i32
    %c0_i32_0 = arith.constant 0 : i32
    %c0_i32_1 = arith.constant 0 : i32
    return %arg0, %c0_i32, %c0_i32_0 : i32, i32, i32
  }
  func.func @transform_2(%arg0: i32) -> (i32, i32) {
    %c0_i32 = arith.constant 0 : i32
    %c0_i32_0 = arith.constant 0 : i32
    %c0_i32_1 = arith.constant 0 : i32
    return %c0_i32, %c0_i32_0 : i32, i32
  }
  func.func @transform_3(%arg0: i32) -> (i32, i32) {
    %c0_i32 = arith.constant 0 : i32
    %c0_i32_0 = arith.constant 0 : i32
    %c0_i32_1 = arith.constant 0 : i32
    return %c0_i32, %c0_i32_0 : i32, i32
  }
  func.func @transform_4(%arg0: i32) -> (i32, i32) {
    %c0_i32 = arith.constant 0 : i32
    %c0_i32_0 = arith.constant 0 : i32
    %c0_i32_1 = arith.constant 0 : i32
    return %c0_i32, %c0_i32_0 : i32, i32
  }
  func.func @transform_5(%arg0: i32) -> (i32, i32) {
    %c0_i32 = arith.constant 0 : i32
    %c0_i32_0 = arith.constant 0 : i32
    %c0_i32_1 = arith.constant 0 : i32
    return %c0_i32, %c0_i32_0 : i32, i32
  }
  func.func @transform_6(%arg0: i32) -> (i32, i32) {
    %c0_i32 = arith.constant 0 : i32
    %c0_i32_0 = arith.constant 0 : i32
    %c0_i32_1 = arith.constant 0 : i32
    return %c0_i32, %c0_i32_0 : i32, i32
  }
  func.func @transform_7(%arg0: i32) -> (i32, i32) {
    %c0_i32 = arith.constant 0 : i32
    %c0_i32_0 = arith.constant 0 : i32
    %c0_i32_1 = arith.constant 0 : i32
    return %c0_i32, %c0_i32_0 : i32, i32
  }
  func.func @transform_8(%arg0: i32) -> (i32, i32) {
    %c0_i32 = arith.constant 0 : i32
    %c0_i32_0 = arith.constant 0 : i32
    %c0_i32_1 = arith.constant 0 : i32
    return %c0_i32, %c0_i32_0 : i32, i32
  }
  func.func @transform_9(%arg0: i32) -> (i32, i32) {
    %c0_i32 = arith.constant 0 : i32
    %c0_i32_0 = arith.constant 0 : i32
    %c0_i32_1 = arith.constant 0 : i32
    return %c0_i32, %c0_i32_0 : i32, i32
  }
  func.func @transform_10(%arg0: i32) -> (i32, i32) {
    %c0_i32 = arith.constant 0 : i32
    %c0_i32_0 = arith.constant 0 : i32
    %c0_i32_1 = arith.constant 0 : i32
    return %c0_i32, %c0_i32_0 : i32, i32
  }
  func.func @transform_11(%arg0: i32) -> (i32, i32) {
    %c0_i32 = arith.constant 0 : i32
    %c0_i32_0 = arith.constant 0 : i32
    %c0_i32_1 = arith.constant 0 : i32
    return %c0_i32, %c0_i32_0 : i32, i32
  }
  func.func @transform_12(%arg0: i32) -> (i32, i32) {
    %c0_i32 = arith.constant 0 : i32
    %c0_i32_0 = arith.constant 0 : i32
    %c0_i32_1 = arith.constant 0 : i32
    return %c0_i32, %c0_i32_0 : i32, i32
  }
  func.func @transform_13(%arg0: i32) -> (i32, i32) {
    %c0_i32 = arith.constant 0 : i32
    %c0_i32_0 = arith.constant 0 : i32
    %c0_i32_1 = arith.constant 0 : i32
    return %c0_i32, %c0_i32_0 : i32, i32
  }
  func.func @transform_14(%arg0: i32) -> (i32, i32, i32) {
    %c0_i32 = arith.constant 0 : i32
    %c0_i32_0 = arith.constant 0 : i32
    %c0_i32_1 = arith.constant 0 : i32
    return %arg0, %c0_i32, %c0_i32_0 : i32, i32, i32
  }
}

module attributes {stable_mosaic.version = 11 : i64} {
  func.func @film_decoder_kernel(%arg0: i32, %arg1: memref<2x8x32xf32, #tpu.memory_space<vmem>>, %arg2: memref<2x4x32xf32, #tpu.memory_space<vmem>>, %arg3: memref<1x32xf32, #tpu.memory_space<vmem>>, %arg4: memref<1x32xf32, #tpu.memory_space<vmem>>, %arg5: memref<32x96xbf16, #tpu.memory_space<vmem>>, %arg6: memref<1x96xf32, #tpu.memory_space<vmem>>, %arg7: memref<32x32xbf16, #tpu.memory_space<vmem>>, %arg8: memref<1x32xf32, #tpu.memory_space<vmem>>, %arg9: memref<1x32xf32, #tpu.memory_space<vmem>>, %arg10: memref<1x32xf32, #tpu.memory_space<vmem>>, %arg11: memref<32x64xbf16, #tpu.memory_space<vmem>>, %arg12: memref<1x64xf32, #tpu.memory_space<vmem>>, %arg13: memref<64x32xbf16, #tpu.memory_space<vmem>>, %arg14: memref<1x32xf32, #tpu.memory_space<vmem>>, %arg15: memref<2x8x32xf32, #tpu.memory_space<vmem>>) attributes {dimension_semantics = [#tpu.dimension_semantics<parallel>], iteration_bounds = array<i64: 1>, scalar_prefetch = 0 : i64, scratch_operands = 0 : i64, tpu.core_type = #tpu.core_type<tc>, window_params = [{transform_indices = @transform_0, window_bounds = array<i64: 2, 8, 32>}, {transform_indices = @transform_1, window_bounds = array<i64: 2, 4, 32>}, {pipeline_mode = #tpu.pipeline_mode<synchronous>, transform_indices = @transform_2, window_bounds = array<i64: 1, 32>}, {pipeline_mode = #tpu.pipeline_mode<synchronous>, transform_indices = @transform_3, window_bounds = array<i64: 1, 32>}, {pipeline_mode = #tpu.pipeline_mode<synchronous>, transform_indices = @transform_4, window_bounds = array<i64: 32, 96>}, {pipeline_mode = #tpu.pipeline_mode<synchronous>, transform_indices = @transform_5, window_bounds = array<i64: 1, 96>}, {pipeline_mode = #tpu.pipeline_mode<synchronous>, transform_indices = @transform_6, window_bounds = array<i64: 32, 32>}, {pipeline_mode = #tpu.pipeline_mode<synchronous>, transform_indices = @transform_7, window_bounds = array<i64: 1, 32>}, {pipeline_mode = #tpu.pipeline_mode<synchronous>, transform_indices = @transform_8, window_bounds = array<i64: 1, 32>}, {pipeline_mode = #tpu.pipeline_mode<synchronous>, transform_indices = @transform_9, window_bounds = array<i64: 1, 32>}, {pipeline_mode = #tpu.pipeline_mode<synchronous>, transform_indices = @transform_10, window_bounds = array<i64: 32, 64>}, {pipeline_mode = #tpu.pipeline_mode<synchronous>, transform_indices = @transform_11, window_bounds = array<i64: 1, 64>}, {pipeline_mode = #tpu.pipeline_mode<synchronous>, transform_indices = @transform_12, window_bounds = array<i64: 64, 32>}, {pipeline_mode = #tpu.pipeline_mode<synchronous>, transform_indices = @transform_13, window_bounds = array<i64: 1, 32>}, {transform_indices = @transform_14, window_bounds = array<i64: 2, 8, 32>}]} {
    %c0 = arith.constant 0 : index
    %c0_0 = arith.constant 0 : index
    %c0_1 = arith.constant 0 : index
    %0 = vector.load %arg1[%c0, %c0_0, %c0_1] : memref<2x8x32xf32, #tpu.memory_space<vmem>>, vector<2x8x32xf32>
    %1 = vector.shape_cast %0 : vector<2x8x32xf32> to vector<16x32xf32>
    %c0_2 = arith.constant 0 : index
    %c0_3 = arith.constant 0 : index
    %2 = vector.load %arg3[%c0_2, %c0_3] : memref<1x32xf32, #tpu.memory_space<vmem>>, vector<1x32xf32>
    %c0_4 = arith.constant 0 : index
    %c0_5 = arith.constant 0 : index
    %3 = vector.load %arg4[%c0_4, %c0_5] : memref<1x32xf32, #tpu.memory_space<vmem>>, vector<1x32xf32>
    %cst = arith.constant dense<0.000000e+00> : vector<16xf32>
    %4 = vector.multi_reduction <add>, %1, %cst [1] : vector<16x32xf32> to vector<16xf32>
    %5 = vector.shape_cast %4 : vector<16xf32> to vector<16x1xf32>
    %cst_6 = arith.constant 3.200000e+01 : f32
    %6 = vector.broadcast %cst_6 : f32 to vector<16x1xf32>
    %7 = arith.divf %5, %6 : vector<16x1xf32>
    %8 = vector.broadcast %7 : vector<16x1xf32> to vector<16x32xf32>
    %9 = arith.subf %1, %8 : vector<16x32xf32>
    %10 = arith.mulf %9, %9 : vector<16x32xf32>
    %cst_7 = arith.constant dense<0.000000e+00> : vector<16xf32>
    %11 = vector.multi_reduction <add>, %10, %cst_7 [1] : vector<16x32xf32> to vector<16xf32>
    %12 = vector.shape_cast %11 : vector<16xf32> to vector<16x1xf32>
    %cst_8 = arith.constant 3.200000e+01 : f32
    %13 = vector.broadcast %cst_8 : f32 to vector<16x1xf32>
    %14 = arith.divf %12, %13 : vector<16x1xf32>
    %15 = vector.broadcast %7 : vector<16x1xf32> to vector<16x32xf32>
    %16 = arith.subf %1, %15 : vector<16x32xf32>
    %cst_9 = arith.constant 9.99999974E-6 : f32
    %17 = vector.broadcast %cst_9 : f32 to vector<16x1xf32>
    %18 = arith.addf %14, %17 : vector<16x1xf32>
    %19 = math.rsqrt %18 : vector<16x1xf32>
    %20 = vector.broadcast %19 : vector<16x1xf32> to vector<16x32xf32>
    %21 = arith.mulf %16, %20 : vector<16x32xf32>
    %22 = vector.broadcast %2 : vector<1x32xf32> to vector<16x32xf32>
    %23 = arith.mulf %21, %22 : vector<16x32xf32>
    %24 = vector.broadcast %3 : vector<1x32xf32> to vector<16x32xf32>
    %25 = arith.addf %23, %24 : vector<16x32xf32>
    %26 = arith.truncf %25 : vector<16x32xf32> to vector<16x32xbf16>
    %c0_10 = arith.constant 0 : index
    %c0_11 = arith.constant 0 : index
    %27 = vector.load %arg5[%c0_10, %c0_11] : memref<32x96xbf16, #tpu.memory_space<vmem>>, vector<32x96xbf16>
    %cst_12 = arith.constant dense<0.000000e+00> : vector<16x96xf32>
    %28 = tpu.matmul %26, %27, %cst_12 {dimension_numbers = #tpu.dot_dimension_numbers<[1], [0], [0], [1], [0, 0, 1, 1], [], []>} : vector<16x32xbf16>, vector<32x96xbf16>, vector<16x96xf32> -> vector<16x96xf32>
    %c0_13 = arith.constant 0 : index
    %c0_14 = arith.constant 0 : index
    %29 = vector.load %arg6[%c0_13, %c0_14] : memref<1x96xf32, #tpu.memory_space<vmem>>, vector<1x96xf32>
    %30 = vector.broadcast %29 : vector<1x96xf32> to vector<16x96xf32>
    %31 = arith.addf %28, %30 : vector<16x96xf32>
    %32 = vector.extract_strided_slice %31 {offsets = [0, 0], sizes = [16, 32], strides = [1, 1]} : vector<16x96xf32> to vector<16x32xf32>
    %33 = vector.shape_cast %32 : vector<16x32xf32> to vector<2x8x4x8xf32>
    %34 = vector.extract_strided_slice %31 {offsets = [0, 32], sizes = [16, 32], strides = [1, 1]} : vector<16x96xf32> to vector<16x32xf32>
    %35 = vector.shape_cast %34 : vector<16x32xf32> to vector<2x8x4x8xf32>
    %36 = vector.extract_strided_slice %31 {offsets = [0, 64], sizes = [16, 32], strides = [1, 1]} : vector<16x96xf32> to vector<16x32xf32>
    %37 = vector.shape_cast %36 : vector<16x32xf32> to vector<2x8x4x8xf32>
    %38 = vector.extract_strided_slice %33 {offsets = [0, 0, 0, 0], sizes = [1, 8, 4, 8], strides = [1, 1, 1, 1]} : vector<2x8x4x8xf32> to vector<1x8x4x8xf32>
    %39 = vector.shape_cast %38 : vector<1x8x4x8xf32> to vector<8x4x8xf32>
    %40 = arith.truncf %39 : vector<8x4x8xf32> to vector<8x4x8xbf16>
    %41 = vector.extract_strided_slice %35 {offsets = [0, 0, 0, 0], sizes = [1, 8, 4, 8], strides = [1, 1, 1, 1]} : vector<2x8x4x8xf32> to vector<1x8x4x8xf32>
    %42 = vector.shape_cast %41 : vector<1x8x4x8xf32> to vector<8x4x8xf32>
    %43 = arith.truncf %42 : vector<8x4x8xf32> to vector<8x4x8xbf16>
    "tpu.trace_start"() <{level = 10 : i32, message = "qhd,khd->hqk"}> : () -> ()
    %cst_15 = arith.constant dense<0.000000e+00> : vector<4x8x8xf32>
    %44 = tpu.matmul %40, %43, %cst_15 {dimension_numbers = #tpu.dot_dimension_numbers<[2], [2], [0], [0], [0, 1, 0, 0, 1, 0], [1], [1]>} : vector<8x4x8xbf16>, vector<8x4x8xbf16>, vector<4x8x8xf32> -> vector<4x8x8xf32>
    "tpu.trace_stop"() : () -> ()
    %cst_16 = arith.constant dense<0xFF800000> : vector<4x8xf32>
    %45 = vector.multi_reduction <maximumf>, %44, %cst_16 [2] : vector<4x8x8xf32> to vector<4x8xf32>
    %46 = vector.shape_cast %45 : vector<4x8xf32> to vector<4x8x1xf32>
    %47 = vector.broadcast %46 : vector<4x8x1xf32> to vector<4x8x8xf32>
    %48 = arith.subf %44, %47 : vector<4x8x8xf32>
    %49 = math.exp %48 : vector<4x8x8xf32>
    %cst_17 = arith.constant dense<0.000000e+00> : vector<4x8xf32>
    %50 = vector.multi_reduction <add>, %49, %cst_17 [2] : vector<4x8x8xf32> to vector<4x8xf32>
    %51 = vector.shape_cast %50 : vector<4x8xf32> to vector<4x8x1xf32>
    %52 = tpu.reciprocal %51 {approx = true} : vector<4x8x1xf32> -> vector<4x8x1xf32>
    %53 = vector.broadcast %52 : vector<4x8x1xf32> to vector<4x8x8xf32>
    %54 = arith.mulf %49, %53 : vector<4x8x8xf32>
    %55 = arith.truncf %54 : vector<4x8x8xf32> to vector<4x8x8xbf16>
    %56 = vector.extract_strided_slice %37 {offsets = [0, 0, 0, 0], sizes = [1, 8, 4, 8], strides = [1, 1, 1, 1]} : vector<2x8x4x8xf32> to vector<1x8x4x8xf32>
    %57 = vector.shape_cast %56 : vector<1x8x4x8xf32> to vector<8x4x8xf32>
    %58 = arith.truncf %57 : vector<8x4x8xf32> to vector<8x4x8xbf16>
    "tpu.trace_start"() <{level = 10 : i32, message = "hqk,khd->qhd"}> : () -> ()
    %cst_18 = arith.constant dense<0.000000e+00> : vector<4x8x8xf32>
    %59 = tpu.matmul %58, %55, %cst_18 {dimension_numbers = #tpu.dot_dimension_numbers<[0], [2], [2], [1], [0, 1, 0, 2, 1, 1], [1], [0]>} : vector<8x4x8xbf16>, vector<4x8x8xbf16>, vector<4x8x8xf32> -> vector<4x8x8xf32>
    %60 = tpu.transpose %59, [2, 0, 1] : vector<4x8x8xf32> -> vector<8x4x8xf32>
    "tpu.trace_stop"() : () -> ()
    %61 = vector.shape_cast %60 : vector<8x4x8xf32> to vector<8x32xf32>
    %62 = vector.extract_strided_slice %33 {offsets = [1, 0, 0, 0], sizes = [1, 8, 4, 8], strides = [1, 1, 1, 1]} : vector<2x8x4x8xf32> to vector<1x8x4x8xf32>
    %63 = vector.shape_cast %62 : vector<1x8x4x8xf32> to vector<8x4x8xf32>
    %64 = arith.truncf %63 : vector<8x4x8xf32> to vector<8x4x8xbf16>
    %65 = vector.extract_strided_slice %35 {offsets = [1, 0, 0, 0], sizes = [1, 8, 4, 8], strides = [1, 1, 1, 1]} : vector<2x8x4x8xf32> to vector<1x8x4x8xf32>
    %66 = vector.shape_cast %65 : vector<1x8x4x8xf32> to vector<8x4x8xf32>
    %67 = arith.truncf %66 : vector<8x4x8xf32> to vector<8x4x8xbf16>
    "tpu.trace_start"() <{level = 10 : i32, message = "qhd,khd->hqk"}> : () -> ()
    %cst_19 = arith.constant dense<0.000000e+00> : vector<4x8x8xf32>
    %68 = tpu.matmul %64, %67, %cst_19 {dimension_numbers = #tpu.dot_dimension_numbers<[2], [2], [0], [0], [0, 1, 0, 0, 1, 0], [1], [1]>} : vector<8x4x8xbf16>, vector<8x4x8xbf16>, vector<4x8x8xf32> -> vector<4x8x8xf32>
    "tpu.trace_stop"() : () -> ()
    %cst_20 = arith.constant dense<0xFF800000> : vector<4x8xf32>
    %69 = vector.multi_reduction <maximumf>, %68, %cst_20 [2] : vector<4x8x8xf32> to vector<4x8xf32>
    %70 = vector.shape_cast %69 : vector<4x8xf32> to vector<4x8x1xf32>
    %71 = vector.broadcast %70 : vector<4x8x1xf32> to vector<4x8x8xf32>
    %72 = arith.subf %68, %71 : vector<4x8x8xf32>
    %73 = math.exp %72 : vector<4x8x8xf32>
    %cst_21 = arith.constant dense<0.000000e+00> : vector<4x8xf32>
    %74 = vector.multi_reduction <add>, %73, %cst_21 [2] : vector<4x8x8xf32> to vector<4x8xf32>
    %75 = vector.shape_cast %74 : vector<4x8xf32> to vector<4x8x1xf32>
    %76 = tpu.reciprocal %75 {approx = true} : vector<4x8x1xf32> -> vector<4x8x1xf32>
    %77 = vector.broadcast %76 : vector<4x8x1xf32> to vector<4x8x8xf32>
    %78 = arith.mulf %73, %77 : vector<4x8x8xf32>
    %79 = arith.truncf %78 : vector<4x8x8xf32> to vector<4x8x8xbf16>
    %80 = vector.extract_strided_slice %37 {offsets = [1, 0, 0, 0], sizes = [1, 8, 4, 8], strides = [1, 1, 1, 1]} : vector<2x8x4x8xf32> to vector<1x8x4x8xf32>
    %81 = vector.shape_cast %80 : vector<1x8x4x8xf32> to vector<8x4x8xf32>
    %82 = arith.truncf %81 : vector<8x4x8xf32> to vector<8x4x8xbf16>
    "tpu.trace_start"() <{level = 10 : i32, message = "hqk,khd->qhd"}> : () -> ()
    %cst_22 = arith.constant dense<0.000000e+00> : vector<4x8x8xf32>
    %83 = tpu.matmul %82, %79, %cst_22 {dimension_numbers = #tpu.dot_dimension_numbers<[0], [2], [2], [1], [0, 1, 0, 2, 1, 1], [1], [0]>} : vector<8x4x8xbf16>, vector<4x8x8xbf16>, vector<4x8x8xf32> -> vector<4x8x8xf32>
    %84 = tpu.transpose %83, [2, 0, 1] : vector<4x8x8xf32> -> vector<8x4x8xf32>
    "tpu.trace_stop"() : () -> ()
    %85 = vector.shape_cast %84 : vector<8x4x8xf32> to vector<8x32xf32>
    %86 = tpu.concatenate %61, %85 in 0 : vector<8x32xf32>, vector<8x32xf32> -> vector<16x32xf32>
    %87 = arith.truncf %86 : vector<16x32xf32> to vector<16x32xbf16>
    %c0_23 = arith.constant 0 : index
    %c0_24 = arith.constant 0 : index
    %88 = vector.load %arg7[%c0_23, %c0_24] : memref<32x32xbf16, #tpu.memory_space<vmem>>, vector<32x32xbf16>
    %cst_25 = arith.constant dense<0.000000e+00> : vector<16x32xf32>
    %89 = tpu.matmul %87, %88, %cst_25 {dimension_numbers = #tpu.dot_dimension_numbers<[1], [0], [0], [1], [0, 0, 1, 1], [], []>} : vector<16x32xbf16>, vector<32x32xbf16>, vector<16x32xf32> -> vector<16x32xf32>
    %c0_26 = arith.constant 0 : index
    %c0_27 = arith.constant 0 : index
    %90 = vector.load %arg8[%c0_26, %c0_27] : memref<1x32xf32, #tpu.memory_space<vmem>>, vector<1x32xf32>
    %91 = vector.broadcast %90 : vector<1x32xf32> to vector<16x32xf32>
    %92 = arith.addf %89, %91 : vector<16x32xf32>
    %93 = vector.shape_cast %92 : vector<16x32xf32> to vector<2x8x32xf32>
    %c0_28 = arith.constant 0 : index
    %c0_29 = arith.constant 0 : index
    %c0_30 = arith.constant 0 : index
    %94 = vector.load %arg2[%c0_28, %c0_29, %c0_30] : memref<2x4x32xf32, #tpu.memory_space<vmem>>, vector<2x4x32xf32>
    %95 = vector.extract_strided_slice %94 {offsets = [0, 0, 0], sizes = [2, 1, 32], strides = [1, 1, 1]} : vector<2x4x32xf32> to vector<2x1x32xf32>
    %96 = vector.extract_strided_slice %94 {offsets = [0, 1, 0], sizes = [2, 1, 32], strides = [1, 1, 1]} : vector<2x4x32xf32> to vector<2x1x32xf32>
    %cst_31 = arith.constant 1.000000e+00 : f32
    %97 = vector.broadcast %cst_31 : f32 to vector<2x1x32xf32>
    %98 = arith.addf %95, %97 : vector<2x1x32xf32>
    %99 = vector.broadcast %98 : vector<2x1x32xf32> to vector<2x8x32xf32>
    %100 = arith.mulf %99, %93 : vector<2x8x32xf32>
    %101 = arith.addf %0, %100 : vector<2x8x32xf32>
    %102 = vector.broadcast %96 : vector<2x1x32xf32> to vector<2x8x32xf32>
    %103 = arith.addf %101, %102 : vector<2x8x32xf32>
    %104 = vector.shape_cast %103 : vector<2x8x32xf32> to vector<16x32xf32>
    %c0_32 = arith.constant 0 : index
    %c0_33 = arith.constant 0 : index
    %105 = vector.load %arg9[%c0_32, %c0_33] : memref<1x32xf32, #tpu.memory_space<vmem>>, vector<1x32xf32>
    %c0_34 = arith.constant 0 : index
    %c0_35 = arith.constant 0 : index
    %106 = vector.load %arg10[%c0_34, %c0_35] : memref<1x32xf32, #tpu.memory_space<vmem>>, vector<1x32xf32>
    %cst_36 = arith.constant dense<0.000000e+00> : vector<16xf32>
    %107 = vector.multi_reduction <add>, %104, %cst_36 [1] : vector<16x32xf32> to vector<16xf32>
    %108 = vector.shape_cast %107 : vector<16xf32> to vector<16x1xf32>
    %cst_37 = arith.constant 3.200000e+01 : f32
    %109 = vector.broadcast %cst_37 : f32 to vector<16x1xf32>
    %110 = arith.divf %108, %109 : vector<16x1xf32>
    %111 = vector.broadcast %110 : vector<16x1xf32> to vector<16x32xf32>
    %112 = arith.subf %104, %111 : vector<16x32xf32>
    %113 = arith.mulf %112, %112 : vector<16x32xf32>
    %cst_38 = arith.constant dense<0.000000e+00> : vector<16xf32>
    %114 = vector.multi_reduction <add>, %113, %cst_38 [1] : vector<16x32xf32> to vector<16xf32>
    %115 = vector.shape_cast %114 : vector<16xf32> to vector<16x1xf32>
    %cst_39 = arith.constant 3.200000e+01 : f32
    %116 = vector.broadcast %cst_39 : f32 to vector<16x1xf32>
    %117 = arith.divf %115, %116 : vector<16x1xf32>
    %118 = vector.broadcast %110 : vector<16x1xf32> to vector<16x32xf32>
    %119 = arith.subf %104, %118 : vector<16x32xf32>
    %cst_40 = arith.constant 9.99999974E-6 : f32
    %120 = vector.broadcast %cst_40 : f32 to vector<16x1xf32>
    %121 = arith.addf %117, %120 : vector<16x1xf32>
    %122 = math.rsqrt %121 : vector<16x1xf32>
    %123 = vector.broadcast %122 : vector<16x1xf32> to vector<16x32xf32>
    %124 = arith.mulf %119, %123 : vector<16x32xf32>
    %125 = vector.broadcast %105 : vector<1x32xf32> to vector<16x32xf32>
    %126 = arith.mulf %124, %125 : vector<16x32xf32>
    %127 = vector.broadcast %106 : vector<1x32xf32> to vector<16x32xf32>
    %128 = arith.addf %126, %127 : vector<16x32xf32>
    %129 = arith.truncf %128 : vector<16x32xf32> to vector<16x32xbf16>
    %c0_41 = arith.constant 0 : index
    %c0_42 = arith.constant 0 : index
    %130 = vector.load %arg11[%c0_41, %c0_42] : memref<32x64xbf16, #tpu.memory_space<vmem>>, vector<32x64xbf16>
    %cst_43 = arith.constant dense<0.000000e+00> : vector<16x64xf32>
    %131 = tpu.matmul %129, %130, %cst_43 {dimension_numbers = #tpu.dot_dimension_numbers<[1], [0], [0], [1], [0, 0, 1, 1], [], []>} : vector<16x32xbf16>, vector<32x64xbf16>, vector<16x64xf32> -> vector<16x64xf32>
    %c0_44 = arith.constant 0 : index
    %c0_45 = arith.constant 0 : index
    %132 = vector.load %arg12[%c0_44, %c0_45] : memref<1x64xf32, #tpu.memory_space<vmem>>, vector<1x64xf32>
    %133 = vector.broadcast %132 : vector<1x64xf32> to vector<16x64xf32>
    %134 = arith.addf %131, %133 : vector<16x64xf32>
    %cst_46 = arith.constant 0.000000e+00 : f32
    %135 = vector.broadcast %cst_46 : f32 to vector<16x64xf32>
    %136 = arith.maximumf %134, %135 : vector<16x64xf32>
    %137 = arith.truncf %136 : vector<16x64xf32> to vector<16x64xbf16>
    %c0_47 = arith.constant 0 : index
    %c0_48 = arith.constant 0 : index
    %138 = vector.load %arg13[%c0_47, %c0_48] : memref<64x32xbf16, #tpu.memory_space<vmem>>, vector<64x32xbf16>
    %cst_49 = arith.constant dense<0.000000e+00> : vector<16x32xf32>
    %139 = tpu.matmul %137, %138, %cst_49 {dimension_numbers = #tpu.dot_dimension_numbers<[1], [0], [0], [1], [0, 0, 1, 1], [], []>} : vector<16x64xbf16>, vector<64x32xbf16>, vector<16x32xf32> -> vector<16x32xf32>
    %c0_50 = arith.constant 0 : index
    %c0_51 = arith.constant 0 : index
    %140 = vector.load %arg14[%c0_50, %c0_51] : memref<1x32xf32, #tpu.memory_space<vmem>>, vector<1x32xf32>
    %141 = vector.broadcast %140 : vector<1x32xf32> to vector<16x32xf32>
    %142 = arith.addf %139, %141 : vector<16x32xf32>
    %143 = vector.shape_cast %142 : vector<16x32xf32> to vector<2x8x32xf32>
    %144 = vector.extract_strided_slice %94 {offsets = [0, 2, 0], sizes = [2, 1, 32], strides = [1, 1, 1]} : vector<2x4x32xf32> to vector<2x1x32xf32>
    %145 = vector.extract_strided_slice %94 {offsets = [0, 3, 0], sizes = [2, 1, 32], strides = [1, 1, 1]} : vector<2x4x32xf32> to vector<2x1x32xf32>
    %cst_52 = arith.constant 1.000000e+00 : f32
    %146 = vector.broadcast %cst_52 : f32 to vector<2x1x32xf32>
    %147 = arith.addf %144, %146 : vector<2x1x32xf32>
    %148 = vector.broadcast %147 : vector<2x1x32xf32> to vector<2x8x32xf32>
    %149 = arith.mulf %148, %143 : vector<2x8x32xf32>
    %150 = arith.addf %103, %149 : vector<2x8x32xf32>
    %151 = vector.broadcast %145 : vector<2x1x32xf32> to vector<2x8x32xf32>
    %152 = arith.addf %150, %151 : vector<2x8x32xf32>
    %c0_53 = arith.constant 0 : index
    %c0_54 = arith.constant 0 : index
    %c0_55 = arith.constant 0 : index
    %153 = vector.load %arg15[%c0_53, %c0_54, %c0_55] : memref<2x8x32xf32, #tpu.memory_space<vmem>>, vector<2x8x32xf32>
    tpu.vector_store %arg15[%c0_53, %c0_54, %c0_55], %152 {strides = array<i32>} : memref<2x8x32xf32, #tpu.memory_space<vmem>>, vector<2x8x32xf32>,
    return
  }
  func.func @transform_0(%arg0: i32) -> (i32, i32, i32) {
    %c0_i32 = arith.constant 0 : i32
    %c0_i32_0 = arith.constant 0 : i32
    %c0_i32_1 = arith.constant 0 : i32
    return %arg0, %c0_i32, %c0_i32_0 : i32, i32, i32
  }
  func.func @transform_1(%arg0: i32) -> (i32, i32, i32) {
    %c0_i32 = arith.constant 0 : i32
    %c0_i32_0 = arith.constant 0 : i32
    %c0_i32_1 = arith.constant 0 : i32
    return %arg0, %c0_i32, %c0_i32_0 : i32, i32, i32
  }
  func.func @transform_2(%arg0: i32) -> (i32, i32) {
    %c0_i32 = arith.constant 0 : i32
    %c0_i32_0 = arith.constant 0 : i32
    %c0_i32_1 = arith.constant 0 : i32
    return %c0_i32, %c0_i32_0 : i32, i32
  }
  func.func @transform_3(%arg0: i32) -> (i32, i32) {
    %c0_i32 = arith.constant 0 : i32
    %c0_i32_0 = arith.constant 0 : i32
    %c0_i32_1 = arith.constant 0 : i32
    return %c0_i32, %c0_i32_0 : i32, i32
  }
  func.func @transform_4(%arg0: i32) -> (i32, i32) {
    %c0_i32 = arith.constant 0 : i32
    %c0_i32_0 = arith.constant 0 : i32
    %c0_i32_1 = arith.constant 0 : i32
    return %c0_i32, %c0_i32_0 : i32, i32
  }
  func.func @transform_5(%arg0: i32) -> (i32, i32) {
    %c0_i32 = arith.constant 0 : i32
    %c0_i32_0 = arith.constant 0 : i32
    %c0_i32_1 = arith.constant 0 : i32
    return %c0_i32, %c0_i32_0 : i32, i32
  }
  func.func @transform_6(%arg0: i32) -> (i32, i32) {
    %c0_i32 = arith.constant 0 : i32
    %c0_i32_0 = arith.constant 0 : i32
    %c0_i32_1 = arith.constant 0 : i32
    return %c0_i32, %c0_i32_0 : i32, i32
  }
  func.func @transform_7(%arg0: i32) -> (i32, i32) {
    %c0_i32 = arith.constant 0 : i32
    %c0_i32_0 = arith.constant 0 : i32
    %c0_i32_1 = arith.constant 0 : i32
    return %c0_i32, %c0_i32_0 : i32, i32
  }
  func.func @transform_8(%arg0: i32) -> (i32, i32) {
    %c0_i32 = arith.constant 0 : i32
    %c0_i32_0 = arith.constant 0 : i32
    %c0_i32_1 = arith.constant 0 : i32
    return %c0_i32, %c0_i32_0 : i32, i32
  }
  func.func @transform_9(%arg0: i32) -> (i32, i32) {
    %c0_i32 = arith.constant 0 : i32
    %c0_i32_0 = arith.constant 0 : i32
    %c0_i32_1 = arith.constant 0 : i32
    return %c0_i32, %c0_i32_0 : i32, i32
  }
  func.func @transform_10(%arg0: i32) -> (i32, i32) {
    %c0_i32 = arith.constant 0 : i32
    %c0_i32_0 = arith.constant 0 : i32
    %c0_i32_1 = arith.constant 0 : i32
    return %c0_i32, %c0_i32_0 : i32, i32
  }
  func.func @transform_11(%arg0: i32) -> (i32, i32) {
    %c0_i32 = arith.constant 0 : i32
    %c0_i32_0 = arith.constant 0 : i32
    %c0_i32_1 = arith.constant 0 : i32
    return %c0_i32, %c0_i32_0 : i32, i32
  }
  func.func @transform_12(%arg0: i32) -> (i32, i32) {
    %c0_i32 = arith.constant 0 : i32
    %c0_i32_0 = arith.constant 0 : i32
    %c0_i32_1 = arith.constant 0 : i32
    return %c0_i32, %c0_i32_0 : i32, i32
  }
  func.func @transform_13(%arg0: i32) -> (i32, i32) {
    %c0_i32 = arith.constant 0 : i32
    %c0_i32_0 = arith.constant 0 : i32
    %c0_i32_1 = arith.constant 0 : i32
    return %c0_i32, %c0_i32_0 : i32, i32
  }
  func.func @transform_14(%arg0: i32) -> (i32, i32, i32) {
    %c0_i32 = arith.constant 0 : i32
    %c0_i32_0 = arith.constant 0 : i32
    %c0_i32_1 = arith.constant 0 : i32
    return %arg0, %c0_i32, %c0_i32_0 : i32, i32, i32
  }
}

</mosaic_0001>

<bundles_post_ra>
// kernel: tpu_custom_call.1
= control target key start
LH: loop header
LB: loop body
LE: loop exit
PB: predicated region body
PF: predicated region fallthrough
CT: control target
= control target key end

     0   :  { %19 = vsyncpa [#allocation3], 0  ;;  %s5557_s0 = inlined_call_operand.vmem [shape: f32[2,8,32], index: 0, kind: input, shape index: {}]   ;;  %s5558_s1 = inlined_call_operand.hbm [shape: f32[2,4,32], index: 1, kind: input, shape index: {}]   ;;  %s5559_s2 = inlined_call_operand.hbm [shape: f32[1,32], index: 2, kind: input, shape index: {}]   ;;  %s5560_s3 = inlined_call_operand.hbm [shape: f32[1,32], index: 3, kind: input, shape index: {}]   ;;  %s5561_s4 = inlined_call_operand.vmem [shape: bf16[32,96], index: 4, kind: input, shape index: {}]   ;;  %s5562_s5 = inlined_call_operand.hbm [shape: f32[1,96], index: 5, kind: input, shape index: {}]   ;;  %s5563_s6 = inlined_call_operand.vmem [shape: bf16[32,32], index: 6, kind: input, shape index: {}]   ;;  %s5564_s7 = inlined_call_operand.hbm [shape: f32[1,32], index: 7, kind: input, shape index: {}]   ;;  %s5565_s8 = inlined_call_operand.hbm [shape: f32[1,32], index: 8, kind: input, shape index: {}]   ;;  %s5566_s9 = inlined_call_operand.hbm [shape: f32[1,32], index: 9, kind: input, shape index: {}]   ;;  %s5567_s10 = inlined_call_operand.vmem [shape: bf16[32,64], index: 10, kind: input, shape index: {}]   ;;  %s5568_s11 = inlined_call_operand.vmem [shape: f32[1,64], index: 11, kind: input, shape index: {}]   ;;  %s5569_s12 = inlined_call_operand.vmem [shape: bf16[64,32], index: 12, kind: input, shape index: {}]   ;;  %s5570_s13 = inlined_call_operand.vmem [shape: f32[1,32], index: 13, kind: input, shape index: {}]   ;;  %s5571_s14 = inlined_call_operand.hbm [shape: f32[2,8,32], index: 14, kind: output, shape index: {}]  }
   0x1   :  { %20 = vsyncpa [#allocation6], 0 }
   0x2   :  { %21 = vsyncpa [#allocation9], 0 }
   0x3   :  { %22 = vsyncpa [#allocation12], 0 }
   0x4   :  { %23 = vsyncpa [#allocation4], 0  ;;  %s4787_s29 = smov [#allocation5]   ;;  %s4788_s15 = smov [#allocation8]  }
   0x5   :  { %s44_s30 = sshll.u32 %s4787_s29, 4  ;;  %s66_s16 = sshll.u32 %s4788_s15, 4  ;;  %s45_s30 = int_to_ptr.vmem [resolvable:$true] %s44_s30  ;;  %s67_s16 = int_to_ptr.vmem [resolvable:$true] %s66_s16 }
   0x6   :  { %s4625_s17 = scalar_lea.vmem %s45_s30, 16  ;;  %s4629_s18 = scalar_lea.vmem %s45_s30, 32 }
   0x7   :  { %p4626_p0 = scmp.ne.s32.totalorder %s45_s30, %s4625_s17  ;;  %p4630_p1 = scmp.lt.s32.totalorder %s45_s30, %s45_s30 }
   0x8   :  { %p4631_p2 = scmp.lt.s32.totalorder %s4629_s18, %s4625_s17 }
   0xa   :  { %p4632_p3 = por %p4631_p2, %p4630_p1 }
   0xc   :  { %p4633_p4 = pnand %p4632_p3, %p4626_p0 }
   0xe   :  { %4636 = shalt.err (!%p4633_p4)
}
   0xf   :  { %47 = dma.hbm_to_vmem [thread:$0]  %s5559_s2, 16, %s45_s30, [#allocation6]  }
  0x10   :  { %s4645_s21 = scalar_lea.vmem %s67_s16, 16  ;;  %s4649_s22 = scalar_lea.vmem %s67_s16, 32 }
  0x11   :  { %p4646_p5 = scmp.ne.s32.totalorder %s67_s16, %s4645_s21  ;;  %p4650_p6 = scmp.lt.s32.totalorder %s67_s16, %s67_s16 }
  0x12   :  { %p4651_p7 = scmp.lt.s32.totalorder %s4649_s22, %s4645_s21 }
  0x14   :  { %p4652_p8 = por %p4651_p7, %p4650_p6 }
  0x16   :  { %p4653_p9 = pnand %p4652_p8, %p4646_p5 }
  0x18   :  { %4656 = shalt.err (!%p4653_p9)
}
  0x19   :  { %69 = dma.hbm_to_vmem [thread:$0]  %s5562_s5, 16, %s67_s16, [#allocation9]  }
  0x1a   :  { %s4789_s25 = smov [#allocation11]   ;;  %s4790_s27 = smov [#allocation2]  }
  0x1b   :  { %s88_s26 = sshll.u32 %s4789_s25, 4  ;;  %s31_s28 = sshll.u32 %s4790_s27, 4  ;;  %s89_s26 = int_to_ptr.vmem [resolvable:$true] %s88_s26  ;;  %s32_s28 = int_to_ptr.vmem [resolvable:$true] %s31_s28 }
  0x1c   :  { %s4665_s29 = scalar_lea.vmem %s89_s26, 16  ;;  %s4669_s2 = scalar_lea.vmem %s89_s26, 32 }
  0x1d   :  { %p4666_p10 = scmp.ne.s32.totalorder %s89_s26, %s4665_s29  ;;  %p4670_p11 = scmp.lt.s32.totalorder %s89_s26, %s89_s26 }
  0x1e   :  { %p4671_p12 = scmp.lt.s32.totalorder %s4669_s2, %s4665_s29 }
  0x20   :  { %p4672_p13 = por %p4671_p12, %p4670_p11 }
  0x22   :  { %p4673_p0 = pnand %p4672_p13, %p4666_p10 }
  0x24   :  { %4676 = shalt.err (!%p4673_p0)
}
  0x25   :  { %91 = dma.hbm_to_vmem [thread:$0]  %s5565_s8, 16, %s89_s26, [#allocation12]  }
  0x26   :  { %s4685_s17 = scalar_lea.vmem %s32_s28, 128  ;;  %p4690_p2 = scmp.lt.s32.totalorder %s32_s28, %s32_s28 }
  0x27   :  { %p4686_p1 = scmp.ne.s32.totalorder %s32_s28, %s4685_s17  ;;  %p4691_p3 = scmp.lt.s32.totalorder %s4685_s17, %s4685_s17 }
  0x29   :  { %p4692_p4 = por %p4691_p3, %p4690_p2 }
  0x2b   :  { %p4693_p5 = pnand %p4692_p4, %p4686_p1 }
  0x2d   :  { %4696 = shalt.err (!%p4693_p5)
}
  0x2e   :  { %s4791_s5 = smov 64   ;;  %s4792_s16 = smov 4  }
  0x2f   :  { %37 = dma.hbm_to_vmem [thread:$0]  %s5558_s1, 128, %s32_s28, [#allocation3], %s4791_s5, %s4791_s5, %s4792_s16  }
  0x30   :  { %s4793_s20 = smov [#allocation7]   ;;  %s4794_s22 = smov [#allocation10]  }
  0x31   :  { %s54_s21 = sshll.u32 %s4793_s20, 4  ;;  %s78_s23 = sshll.u32 %s4794_s22, 4  ;;  %s55_s21 = int_to_ptr.vmem [resolvable:$true] %s54_s21  ;;  %s79_s23 = int_to_ptr.vmem [resolvable:$true] %s78_s23 }
  0x32   :  { %s4705_s8 = scalar_lea.vmem %s55_s21, 16  ;;  %s4709_s24 = scalar_lea.vmem %s55_s21, 32 }
  0x33   :  { %p4706_p6 = scmp.ne.s32.totalorder %s55_s21, %s4705_s8  ;;  %p4710_p7 = scmp.lt.s32.totalorder %s55_s21, %s55_s21 }
  0x34   :  { %p4711_p8 = scmp.lt.s32.totalorder %s4709_s24, %s4705_s8 }
  0x36   :  { %p4712_p9 = por %p4711_p8, %p4710_p7 }
  0x38   :  { %p4713_p10 = pnand %p4712_p9, %p4706_p6 }
  0x3a   :  { %4716 = shalt.err (!%p4713_p10)
}
  0x3b   :  { %57 = dma.hbm_to_vmem [thread:$0]  %s5560_s3, 16, %s55_s21, [#allocation6]  }
  0x3c   :  { %s4725_s27 = scalar_lea.vmem %s79_s23, 16  ;;  %s4729_s1 = scalar_lea.vmem %s79_s23, 32 }
  0x3d   :  { %p4726_p11 = scmp.ne.s32.totalorder %s79_s23, %s4725_s27  ;;  %p4730_p12 = scmp.lt.s32.totalorder %s79_s23, %s79_s23 }
  0x3e   :  { %p4731_p13 = scmp.lt.s32.totalorder %s4729_s1, %s4725_s27 }
  0x40   :  { %p4732_p0 = por %p4731_p13, %p4730_p12 }
  0x42   :  { %p4733_p1 = pnand %p4732_p0, %p4726_p11 }
  0x44   :  { %4736 = shalt.err (!%p4733_p1)
}
  0x45   :  { %81 = dma.hbm_to_vmem [thread:$0]  %s5564_s7, 16, %s79_s23, [#allocation9]  }
  0x46   :  { %s4795_s2 = smov [#allocation13]  }
  0x47   :  { %s98_s30 = sshll.u32 %s4795_s2, 4  ;;  %s99_s30 = int_to_ptr.vmem [resolvable:$true] %s98_s30 }
  0x48   :  { %s4745_s15 = scalar_lea.vmem %s99_s30, 16  ;;  %s4749_s17 = scalar_lea.vmem %s99_s30, 32 }
  0x49   :  { %p4746_p2 = scmp.ne.s32.totalorder %s99_s30, %s4745_s15  ;;  %p4750_p3 = scmp.lt.s32.totalorder %s99_s30, %s99_s30 }
  0x4a   :  { %p4751_p4 = scmp.lt.s32.totalorder %s4749_s17, %s4745_s15 }
  0x4c   :  { %p4752_p5 = por %p4751_p4, %p4750_p3 }
  0x4e   :  { %p4753_p6 = pnand %p4752_p5, %p4746_p2 }
  0x50   :  { %4756 = shalt.err (!%p4753_p6)
}
  0x51   :  { %101 = dma.hbm_to_vmem [thread:$0]  %s5566_s9, 16, %s99_s30, [#allocation12]  }
  0x52   :  { %4777 = dma.done.wait [#allocation3], 128  }
  0x53   :  { %4778 = vsyncadd [#allocation3], 4294967168 }
  0x54   :  { %4779 = dma.done.wait [#allocation6], 32  }
  0x55   :  { %4780 = vsyncadd [#allocation6], 4294967264 }
  0x56   :  { %4781 = dma.done.wait [#allocation9], 32  }
  0x57   :  { %4782 = vsyncadd [#allocation9], 4294967264 }
  0x58   :  { %4783 = dma.done.wait [#allocation12], 32  }
  0x59   :  { %4784 = vsyncadd [#allocation12], 4294967264  ;;  %vm136_vm0 = vcmask 261120   ;;  %v132_v0 = vld [vmem:[%s5557_s0] sm:$0xff]  ;;  %v133_v1 = vld [vmem:[%s5557_s0 + $0x8] sm:$0xff]  ;;  %v4796_v15 = vmov 0.0   ;;  %v273_v47 = vlaneseq }
  0x5a   :  { %v137_v2 = vsel %vm136_vm0, %v132_v0, 0.0  ;;  %v140_v3 = vsel %vm136_vm0, %v133_v1, 0.0  ;;  %v4565_v14 = vld [vmem:[%s5561_s4 + $0x8] sm:$0xff]   ;;  %4395 = vmatprep.subr.bf16.mxu0 %v4796_v15  ;;  %vm4797_vm1 = vmmov 0   ;;  %v4566_v16 = vld [vmem:[%s5561_s4] sm:$0xff]   ;;  %4403 = vmatprep.subr.bf16.mxu1 %v4796_v15  ;;  %s4798_s4 = smov 112  }
  0x5b   :  { %138 = vadd.xlane.f32.xlu0 %v137_v2  ;;  %4399 = vmatprep.mubr.msk.bf16.mxu0 %vm4797_vm1, %v4796_v15  ;;  %v4299_v25 = vld [vmem:[#allocation5] ss:$0 sm:$0xff]  ;;  %v4300_v29 = vld [vmem:[#allocation7] ss:$0 sm:$0xff]  ;;  %v4301_v34 = vld [vmem:[#allocation8] ss:$0 sm:$0xff] }
  0x5c   :  { %4396 = vmatpush3.bf16.msra.mxu0 %v4565_v14  ;;  %4405 = vmatprep.mubr.msk.bf16.mxu1 %vm4797_vm1, %v4796_v15  ;;  %s4799_s8 = smov 120   ;;  %s4800_s24 = smov 104   ;;  %v4802_v45 = vmov 1983009808   ;;  %v4959_v51 = vshrl.u32 %v273_v47, 7  ;;  %vm1224_vm2 = vcmask 1043456  }
  0x5d   :  { %4397 = vmatprep.subr.bf16.mxu0 %v4796_v15  ;;  %s4801_s25 = smov 96   ;;  %v271_v46 = vunpack.c.l.s4 %v4802_v45  ;;  %v4803_v52 = vmov 1934713408   ;;  %vm1220_vm3 = vcmask 64512   ;;  %s4805_s28 = smov 16   ;;  %vm2341_vm4 = vcmask 130048  }
  0x5e   :  { %v303_v53 = vunpack.c.l.s4 %v4803_v52  ;;  %s4806_s29 = smov 8   ;;  %vm2343_vm5 = vcmask 195584   ;;  %vm4210_vm6 = vcmask 523264  }
  0x5f   :  { %141 = vadd.xlane.f32.xlu0 %v140_v3  ;;  %v272_v50 = vunpack.c.0.s8 %v271_v46 }
  0x60   :  { %4398 = vmatpush3.bf16.msra.mxu0 %v4566_v16  ;;  %v304_v58 = vunpack.c.0.s8 %v303_v53 }
  0x61   :  { %4427 = vmatprep.subr.bf16.mxu0 %v4796_v15  ;;  %v4962_v57 = vsub.s32 %v272_v50, %v4959_v51 }
  0xe4   :  { %v139_v4 = vpop.xlane.xlu0 %138 }
  0xe5   :  { %v144_v5 = vmul.f32 0.03125, %v139_v4 }
  0xe7   :  { %v146_v6 = vsub.f32 %v132_v0, %v144_v5 }
  0xe8   :  { %v142_v7 = vpop.xlane.xlu0 %141 }
  0xe9   :  { %v145_v8 = vmul.f32 0.03125, %v142_v7  ;;  %v148_v9 = vmul.f32 %v146_v6, %v146_v6 }
  0xeb   :  { %v147_v10 = vsub.f32 %v133_v1, %v145_v8  ;;  %v150_v11 = vsel %vm136_vm0, %v148_v9, 0.0  ;;  %v4969_v1 = vsub.s32 %v304_v58, %v4959_v51 }
  0xec   :  { %151 = vadd.xlane.f32.xlu1 %v150_v11 }
  0xed   :  { %v149_v12 = vmul.f32 %v147_v10, %v147_v10 }
  0xef   :  { %v153_v13 = vsel %vm136_vm0, %v149_v12, 0.0 }
  0xf0   :  { %154 = vadd.xlane.f32.xlu1 %v153_v13 }
 0x175   :  { %v152_v17 = vpop.xlane.xlu1 %151 }
 0x176   :  { %v156_v18 = vmul.f32 0.03125, %v152_v17 }
 0x178   :  { %v158_v19 = vadd.f32 1e-05, %v156_v18 }
 0x179   :  { %v155_v20 = vpop.xlane.xlu1 %154 }
 0x17a   :  { %4575 = vrsqrt.f32 %v158_v19  ;;  %v157_v21 = vmul.f32 0.03125, %v155_v20 }
 0x17c   :  { %v159_v22 = vadd.f32 1e-05, %v157_v21 }
 0x17e   :  { %4577 = vrsqrt.f32 %v159_v22 }
 0x187   :  { %v4576_v23 = vpop.eup %4575 }
 0x188   :  { %v162_v24 = vmul.f32 %v4576_v23, %v146_v6 }
 0x18a   :  { %v170_v28 = vmul.f32 %v4299_v25, %v162_v24 }
 0x18b   :  { %v4578_v26 = vpop.eup %4577 }
 0x18c   :  { %v163_v27 = vmul.f32 %v4578_v26, %v147_v10  ;;  %v178_v31 = vadd.f32 %v4300_v29, %v170_v28 }
 0x18e   :  { %v171_v30 = vmul.f32 %v4299_v25, %v163_v27 }
 0x190   :  { %v179_v32 = vadd.f32 %v4300_v29, %v171_v30 }
 0x192   :  { %v180_v33 = vpack.c.bf16 %v179_v32, %v178_v31 }
 0x194   :  { %4400 = vmatmul.mubr.msk.bf16.vlgmr.msra.gmra.mxu0 %vm136_vm0, %v180_v33 }
 0x195   :  { %4429 = vmatprep.mubr.msk.bf16.mxu0 %vm4797_vm1, %v4796_v15 }
 0x254   :  { %v241_v35 = vpop.f32.mrf.mxu0 }
 0x255   :  { %v4935_v36 = vadd.f32 %v4301_v34, %v241_v35 }
 0x256   :  { %v4401_v37 = vpop.f32.mrf.mxu0 }
 0x257   :  { %256 = vrot.lane.b32.xlu1 %v4935_v36, %s4798_s4  ;;  %250 = vrot.lane.b32.xlu0 %v4935_v36, %s4799_s8 }
 0x258   :  { %v244_v38 = vpop.f32.mrf.mxu0 }
 0x259   :  { %v4941_v39 = vadd.f32 %v4301_v34, %v244_v38 }
 0x25a   :  { %v4402_v40 = vpop.f32.mrf.mxu0 }
 0x25b   :  { %262 = vrot.lane.b32.xlu1 %v4935_v36, %s4800_s24 }
 0x25f   :  { %404 = vrot.lane.b32.xlu1 %v4935_v36, %s4801_s25 }
 0x2c9   :  { %v4947_v41 = vpop.permute.xlu1 %256  ;;  %v4949_v42 = vpop.permute.xlu0 %250 }
 0x2ca   :  { %412 = vrot.lane.b32.xlu1 %v4947_v41, %s4801_s25  ;;  %408 = vrot.lane.b32.xlu0 %v4949_v42, %s4801_s25 }
 0x2cd   :  { %v4955_v43 = vpop.permute.xlu1 %262 }
 0x2ce   :  { %416 = vrot.lane.b32.xlu0 %v4955_v43, %s4801_s25 }
 0x2d1   :  { %v405_v44 = vpop.permute.xlu1 %404 }
 0x33c   :  { %v413_v48 = vpop.permute.xlu1 %412  ;;  %v409_v49 = vpop.permute.xlu0 %408 }
 0x33d   :  { %v428_v54 = vcombine.low %v405_v44, %v413_v48  ;;  %v429_v55 = vcombine.high %v405_v44, %v413_v48 }
 0x33f   :  { %v436_v61 = vrot.slane %v428_v54, %v4962_v57  ;;  %v443_v62 = vrot.slane %v429_v55, %v4962_v57 }
 0x340   :  { %v417_v56 = vpop.permute.xlu0 %416 }
 0x341   :  { %v444_v59 = vcombine.low %v409_v49, %v417_v56  ;;  %v445_v60 = vcombine.high %v409_v49, %v417_v56 }
 0x343   :  { %v452_v63 = vrot.slane %v444_v59, %v4962_v57  ;;  %v459_v0 = vrot.slane %v445_v60, %v4962_v57  ;;  %v4804_v59 = vmov 0  }
 0x345   :  { %v461_v2 = vcombine.high %v436_v61, %v452_v63  ;;  %v460_v3 = vcombine.low %v436_v61, %v452_v63  ;;  %v476_v4 = vcombine.low %v443_v62, %v459_v0  ;;  %v477_v7 = vcombine.high %v443_v62, %v459_v0 }
 0x347   :  { %v475_v5 = vrot.slane %v461_v2, %v4969_v1  ;;  %v468_v6 = vrot.slane %v460_v3, %v4969_v1  ;;  %v484_v10 = vrot.slane %v476_v4, %v4969_v1  ;;  %v491_v14 = vrot.slane %v477_v7, %v4969_v1 }
 0x349   :  { %v734_v8 = vpack.c.bf16 %v475_v5, %v475_v5  ;;  %v732_v9 = vpack.c.bf16 %v468_v6, %v468_v6  ;;  %v492_v11 = vcombine.high %v468_v6, %v4796_v15  ;;  %v736_v12 = vpack.c.bf16 %v484_v10, %v484_v10 }
 0x34a   :  { %v493_v16 = vcombine.high %v475_v5, %v4796_v15  ;;  %v738_v17 = vpack.c.bf16 %v491_v14, %v491_v14  ;;  %v494_v19 = vcombine.high %v484_v10, %v4796_v15  ;;  %v495_v21 = vcombine.high %v491_v14, %v4796_v15 }
 0x34b   :  { %834 = vxpose.xlu0.c.b16.start.end [1/1] (short) (narrow) %v734_v8, 16  ;;  %802 = vxpose.xlu1.c.b16.start.end [1/1] (short) (narrow) %v732_v9, 16  ;;  %v733_v13 = vpack.c.bf16 %v492_v11, %v492_v11  ;;  %v268_v14 = vcombine.low %v4935_v36, %v4947_v41 }
 0x34c   :  { %v735_v18 = vpack.c.bf16 %v493_v16, %v493_v16  ;;  %v737_v20 = vpack.c.bf16 %v494_v19, %v494_v19  ;;  %v739_v22 = vpack.c.bf16 %v495_v21, %v495_v21  ;;  %v269_v16 = vcombine.high %v4935_v36, %v4947_v41 }
 0x34d   :  { %v276_v19 = vrot.slane %v268_v14, %v4962_v57 }
 0x34f   :  { %866 = vxpose.xlu1.c.b16.start.end [1/1] (short) (narrow) %v736_v12, 16  ;;  %818 = vxpose.xlu0.c.b16.start.end [1/1] (short) (narrow) %v733_v13, 16  ;;  %v284_v12 = vcombine.low %v4949_v42, %v4955_v43  ;;  %v285_v13 = vcombine.high %v4949_v42, %v4955_v43 }
 0x353   :  { %898 = vxpose.xlu1.c.b16.start.end [1/1] (short) (narrow) %v738_v17, 16  ;;  %850 = vxpose.xlu0.c.b16.start.end [1/1] (short) (narrow) %v735_v18, 16  ;;  %v292_v17 = vrot.slane %v284_v12, %v4962_v57  ;;  %v299_v18 = vrot.slane %v285_v13, %v4962_v57 }
 0x355   :  { %v300_v21 = vcombine.low %v276_v19, %v292_v17 }
 0x357   :  { %882 = vxpose.xlu0.c.b16.start.end [1/1] (short) (narrow) %v737_v20, 16  ;;  %v283_v20 = vrot.slane %v269_v16, %v4962_v57 }
 0x35b   :  { %914 = vxpose.xlu0.c.b16.start.end [1/1] (short) (narrow) %v739_v22, 16  ;;  %v316_v22 = vcombine.low %v283_v20, %v299_v18 }
 0x3ad   :  { %v842_v23 = vpop.trf.xlu0  ;;  %v810_v24 = vpop.trf.xlu1 }
 0x3b1   :  { %v874_v25 = vpop.trf.xlu1  ;;  %v826_v26 = vpop.trf.xlu0 }
 0x3b2   :  { %v930_v29 = vcombine.low %v810_v24, %v874_v25  ;;  %v317_v24 = vcombine.high %v283_v20, %v299_v18 }
 0x3b4   :  { %v937_v32 = vrot.slane %v930_v29, %v4962_v57 }
 0x3b5   :  { %v906_v27 = vpop.trf.xlu1  ;;  %v858_v28 = vpop.trf.xlu0 }
 0x3b6   :  { %v938_v30 = vcombine.low %v842_v23, %v906_v27  ;;  %v301_v23 = vcombine.high %v276_v19, %v292_v17 }
 0x3b8   :  { %v945_v33 = vrot.slane %v938_v30, %v4962_v57 }
 0x3b9   :  { %v890_v31 = vpop.trf.xlu0 }
 0x3ba   :  { %v964_v34 = vcombine.low %v826_v26, %v890_v31  ;;  %v946_v37 = vcombine.low %v937_v32, %v945_v33  ;;  %v947_v45 = vcombine.high %v937_v32, %v945_v33 }
 0x3bc   :  { %v971_v40 = vrot.slane %v964_v34, %v4962_v57  ;;  %v954_v48 = vrot.slane %v946_v37, %v4969_v1  ;;  %v961_v55 = vrot.slane %v947_v45, %v4969_v1 }
 0x3bd   :  { %v922_v35 = vpop.trf.xlu0 }
 0x3be   :  { %v972_v38 = vcombine.low %v858_v28, %v922_v35  ;;  %v1002_v53 = vshrl.u32 %v954_v48, 16  ;;  %v1018_v62 = vshrl.u32 %v961_v55, 16  ;;  %v962_v63 = vcombine.high %v954_v48, %v4804_v59 }
 0x3bf   :  { %v963_v6 = vcombine.high %v961_v55, %v4804_v59 }
 0x3c0   :  { %v979_v44 = vrot.slane %v972_v38, %v4962_v57  ;;  %v1010_v5 = vshrl.u32 %v962_v63, 16 }
 0x3c1   :  { %v1026_v10 = vshrl.u32 %v963_v6, 16 }
 0x3c2   :  { %v980_v46 = vcombine.low %v971_v40, %v979_v44  ;;  %v981_v47 = vcombine.high %v971_v40, %v979_v44 }
 0x3c4   :  { %v988_v49 = vrot.slane %v980_v46, %v4969_v1  ;;  %v995_v50 = vrot.slane %v981_v47, %v4969_v1 }
 0x3c6   :  { %v1000_v52 = vpack.i.b16 %v988_v49, %v954_v48  ;;  %v1003_v54 = vshrl.u32 %v988_v49, 16  ;;  %v1019_v58 = vshrl.u32 %v995_v50, 16  ;;  %v996_v60 = vcombine.high %v988_v49, %v4804_v59 }
 0x3c7   :  { %v1016_v61 = vpack.i.b16 %v995_v50, %v961_v55  ;;  %v997_v3 = vcombine.high %v995_v50, %v4804_v59 }
 0x3c8   :  { %1030 = vxpose.xlu1.c.b16.start.end [1/1] (short) (narrow) %v1000_v52, 16  ;;  %v1004_v56 = vpack.i.b16 %v1003_v54, %v1002_v53  ;;  %v1020_v0 = vpack.i.b16 %v1019_v58, %v1018_v62  ;;  %v1011_v2 = vshrl.u32 %v996_v60, 16  ;;  %v1008_v4 = vpack.i.b16 %v996_v60, %v962_v63 }
 0x3c9   :  { %v1027_v8 = vshrl.u32 %v997_v3, 16  ;;  %v1024_v9 = vpack.i.b16 %v997_v3, %v963_v6 }
 0x3ca   :  { %1046 = vxpose.xlu0.c.b16.start.end [1/1] (short) (narrow) %v1004_v56, 16  ;;  %v1012_v7 = vpack.i.b16 %v1011_v2, %v1010_v5 }
 0x3cb   :  { %v1028_v11 = vpack.i.b16 %v1027_v8, %v1026_v10 }
 0x3cc   :  { %1094 = vxpose.xlu1.c.b16.start.end [1/1] (short) (narrow) %v1016_v61, 16 }
 0x3ce   :  { %1110 = vxpose.xlu0.c.b16.start.end [1/1] (short) (narrow) %v1020_v0, 16 }
 0x3d0   :  { %1062 = vxpose.xlu1.c.b16.start.end [1/1] (short) (narrow) %v1008_v4, 16 }
 0x3d2   :  { %1078 = vxpose.xlu0.c.b16.start.end [1/1] (short) (narrow) %v1012_v7, 16 }
 0x3d4   :  { %1126 = vxpose.xlu1.c.b16.start.end [1/1] (short) (narrow) %v1024_v9, 16 }
 0x3d6   :  { %1142 = vxpose.xlu0.c.b16.start.end [1/1] (short) (narrow) %v1028_v11, 16 }
 0x3d8   :  { %252 = vrot.lane.b32.xlu1 %v4941_v39, %s4799_s8 }
 0x3dc   :  { %264 = vrot.lane.b32.xlu1 %v4941_v39, %s4800_s24 }
 0x3df   :  { %258 = vrot.lane.b32.xlu0 %v4941_v39, %s4798_s4 }
 0x3e0   :  { %568 = vrot.lane.b32.xlu1 %v4949_v42, %s4791_s5  ;;  %v308_v42 = vrot.slane %v300_v21, %v4969_v1 }
 0x3e2   :  { %v332_v28 = vcombine.high %v308_v42, %v4796_v15 }
 0x3e3   :  { %564 = vrot.lane.b32.xlu0 %v4935_v36, %s4791_s5  ;;  %v315_v36 = vrot.slane %v301_v23, %v4969_v1 }
 0x3e4   :  { %572 = vrot.lane.b32.xlu1 %v4947_v41, %s4791_s5  ;;  %v331_v41 = vrot.slane %v317_v24, %v4969_v1 }
 0x3e5   :  { %v333_v31 = vcombine.high %v315_v36, %v4796_v15 }
 0x3e6   :  { %v335_v32 = vcombine.high %v331_v41, %v4796_v15  ;;  %v4306_v45 = vpack.c.bf16 %v331_v41, %v315_v36 }
 0x3e7   :  { %406 = vrot.lane.b32.xlu0 %v4941_v39, %s4801_s25 }
 0x3e8   :  { %576 = vrot.lane.b32.xlu1 %v4955_v43, %s4791_s5  ;;  %v324_v43 = vrot.slane %v316_v22, %v4969_v1  ;;  %v4308_v38 = vpack.c.bf16 %v335_v32, %v333_v31  ;;  %v755_v61 = vrot.slane %v4306_v45, %v4962_v57 }
 0x3ea   :  { %v334_v29 = vcombine.high %v324_v43, %v4796_v15  ;;  %v4305_v40 = vpack.c.bf16 %v324_v43, %v308_v42  ;;  %v780_v54 = vrot.slane %v4308_v38, %v4962_v57 }
 0x3ec   :  { %v4307_v35 = vpack.c.bf16 %v334_v29, %v332_v28  ;;  %v747_v55 = vrot.slane %v4305_v40, %v4962_v57 }
 0x3ee   :  { %v772_v49 = vrot.slane %v4307_v35, %v4962_v57  ;;  %v756_v3 = vcombine.low %v747_v55, %v755_v61 }
 0x3f0   :  { %v781_v0 = vcombine.low %v772_v49, %v780_v54  ;;  %v763_v9 = vrot.slane %v756_v3, %v4969_v1 }
 0x3f2   :  { %v788_v5 = vrot.slane %v781_v0, %v4969_v1  ;;  %v793_v18 = vshrl.u32 %v763_v9, 16 }
 0x3f4   :  { %v792_v11 = vpack.i.b16 %v788_v5, %v763_v9  ;;  %v794_v14 = vshrl.u32 %v788_v5, 16 }
 0x3f6   :  { %v795_v20 = vpack.i.b16 %v794_v14, %v793_v18 }
 0x42a   :  { %v1038_v25 = vpop.trf.xlu1 }
 0x42c   :  { %v1054_v26 = vpop.trf.xlu0 }
 0x42e   :  { %v1102_v27 = vpop.trf.xlu1 }
 0x42f   :  { %v1158_v37 = vcombine.low %v1038_v25, %v1102_v27  ;;  %v789_v25 = vcombine.high %v788_v5, %v4804_v59 }
 0x430   :  { %v1118_v30 = vpop.trf.xlu0 }
 0x431   :  { %v1183_v46 = vcombine.low %v1054_v26, %v1118_v30  ;;  %v1165_v50 = vrot.slane %v1158_v37, %v4962_v57  ;;  %v764_v26 = vcombine.high %v763_v9, %v4804_v59  ;;  %v800_v29 = vshrl.u32 %v789_v25, 16 }
 0x432   :  { %v1070_v33 = vpop.trf.xlu1 }
 0x433   :  { %v1190_v56 = vrot.slane %v1183_v46, %v4962_v57  ;;  %v798_v41 = vpack.i.b16 %v789_v25, %v764_v26  ;;  %v799_v32 = vshrl.u32 %v764_v26, 16 }
 0x434   :  { %v1086_v34 = vpop.trf.xlu0 }
 0x436   :  { %v1134_v44 = vpop.trf.xlu1 }
 0x437   :  { %v1166_v47 = vcombine.low %v1070_v33, %v1134_v44 }
 0x438   :  { %v1150_v48 = vpop.trf.xlu0 }
 0x439   :  { %v1173_v52 = vrot.slane %v1166_v47, %v4962_v57  ;;  %v1191_v53 = vcombine.low %v1086_v34, %v1150_v48  ;;  %v801_v34 = vpack.i.b16 %v800_v29, %v799_v32 }
 0x43b   :  { %v1174_v58 = vcombine.low %v1165_v50, %v1173_v52  ;;  %v1198_v60 = vrot.slane %v1191_v53, %v4962_v57 }
 0x43d   :  { %v1181_v62 = vrot.slane %v1174_v58, %v4969_v1  ;;  %v1199_v63 = vcombine.low %v1190_v56, %v1198_v60 }
 0x43f   :  { %v1206_v2 = vrot.slane %v1199_v63, %v4969_v1  ;;  %v1211_v6 = vshrl.u32 %v1181_v62, 16  ;;  %v1182_v16 = vcombine.high %v1181_v62, %v4804_v59 }
 0x441   :  { %v1210_v4 = vpack.i.b16 %v1206_v2, %v1181_v62  ;;  %v1212_v7 = vshrl.u32 %v1206_v2, 16  ;;  %v1207_v13 = vcombine.high %v1206_v2, %v4804_v59  ;;  %v1217_v42 = vshrl.u32 %v1182_v16, 16 }
 0x443   :  { %v1226_v8 = vsel %vm1224_vm2, %v1210_v4, 0  ;;  %v1213_v10 = vpack.i.b16 %v1212_v7, %v1211_v6  ;;  %v1216_v19 = vpack.i.b16 %v1207_v13, %v1182_v16  ;;  %v1218_v23 = vshrl.u32 %v1207_v13, 16 }
 0x444   :  { %4404 = vmatpush3.bf16.msra.mxu1 %v1226_v8 }
 0x445   :  { %4409 = vmatprep.subr.bf16.mxu1 %v4796_v15  ;;  %v1272_v12 = vsel %vm1224_vm2, %v1213_v10, 0  ;;  %v1318_v22 = vsel %vm1224_vm2, %v1216_v19, 0  ;;  %v1219_v36 = vpack.i.b16 %v1218_v23, %v1217_v42 }
 0x447   :  { %4406 = vmatmul.mubr.msk.bf16.vlgmr.msra.gmra.mxu1 %vm1220_vm3, %v792_v11  ;;  %v1364_v28 = vsel %vm1224_vm2, %v1219_v36, 0 }
 0x448   :  { %4410 = vmatpush3.bf16.msra.mxu1 %v1272_v12  ;;  %4411 = vmatprep.mubr.msk.bf16.mxu1 %vm4797_vm1, %v4796_v15 }
 0x449   :  { %4415 = vmatprep.subr.bf16.mxu1 %v4796_v15 }
 0x44a   :  { %v5048_v17 = vpop.permute.xlu1 %252 }
 0x44b   :  { %410 = vrot.lane.b32.xlu1 %v5048_v17, %s4801_s25 }
 0x44e   :  { %v5052_v21 = vpop.permute.xlu1 %264 }
 0x44f   :  { %4412 = vmatmul.mubr.msk.bf16.vlgmr.msra.gmra.mxu1 %vm1220_vm3, %v795_v20  ;;  %418 = vrot.lane.b32.xlu1 %v5052_v21, %s4801_s25 }
 0x450   :  { %4416 = vmatpush3.bf16.msra.mxu1 %v1318_v22  ;;  %4417 = vmatprep.mubr.msk.bf16.mxu1 %vm4797_vm1, %v4796_v15 }
 0x451   :  { %v5060_v24 = vpop.permute.xlu0 %258  ;;  %4421 = vmatprep.subr.bf16.mxu1 %v4796_v15 }
 0x452   :  { %414 = vrot.lane.b32.xlu0 %v5060_v24, %s4801_s25  ;;  %v569_v43 = vpop.permute.xlu1 %568 }
 0x455   :  { %v565_v31 = vpop.permute.xlu0 %564 }
 0x456   :  { %v573_v27 = vpop.permute.xlu1 %572 }
 0x457   :  { %4418 = vmatmul.mubr.msk.bf16.vlgmr.msra.gmra.mxu1 %vm1220_vm3, %v798_v41  ;;  %v588_v35 = vcombine.low %v565_v31, %v573_v27  ;;  %v589_v40 = vcombine.high %v565_v31, %v573_v27 }
 0x458   :  { %4422 = vmatpush3.bf16.msra.mxu1 %v1364_v28  ;;  %4423 = vmatprep.mubr.msk.bf16.mxu1 %vm4797_vm1, %v4796_v15 }
 0x459   :  { %4433 = vmatprep.subr.bf16.mxu1 %v4796_v15  ;;  %v596_v44 = vrot.slane %v588_v35, %v4962_v57  ;;  %v603_v47 = vrot.slane %v589_v40, %v4962_v57  ;;  %v407_v8 = vpop.permute.xlu0 %406 }
 0x45a   :  { %v577_v30 = vpop.permute.xlu1 %576 }
 0x45b   :  { %v604_v33 = vcombine.low %v569_v43, %v577_v30  ;;  %v605_v37 = vcombine.high %v569_v43, %v577_v30 }
 0x45d   :  { %v612_v38 = vrot.slane %v604_v33, %v4962_v57  ;;  %v619_v45 = vrot.slane %v605_v37, %v4962_v57 }
 0x45f   :  { %4424 = vmatmul.mubr.msk.bf16.vlgmr.msra.gmra.mxu1 %vm1220_vm3, %v801_v34  ;;  %v620_v46 = vcombine.low %v596_v44, %v612_v38  ;;  %v636_v48 = vcombine.low %v603_v47, %v619_v45  ;;  %v621_v50 = vcombine.high %v596_v44, %v612_v38  ;;  %v637_v52 = vcombine.high %v603_v47, %v619_v45 }
 0x460   :  { %4435 = vmatprep.mubr.msk.bf16.mxu1 %vm4797_vm1, %v4796_v15 }
 0x461   :  { %v628_v49 = vrot.slane %v620_v46, %v4969_v1  ;;  %v644_v54 = vrot.slane %v636_v48, %v4969_v1  ;;  %v635_v56 = vrot.slane %v621_v50, %v4969_v1  ;;  %v651_v61 = vrot.slane %v637_v52, %v4969_v1 }
 0x463   :  { %v652_v53 = vcombine.high %v628_v49, %v4796_v15  ;;  %v1454_v55 = vpack.c.bf16 %v628_v49, %v628_v49  ;;  %v654_v60 = vcombine.high %v644_v54, %v4796_v15  ;;  %v1456_v62 = vpack.c.bf16 %v635_v56, %v635_v56 }
 0x464   :  { %v653_v63 = vcombine.high %v635_v56, %v4796_v15  ;;  %v655_v2 = vcombine.high %v651_v61, %v4796_v15  ;;  %v1458_v5 = vpack.c.bf16 %v644_v54, %v644_v54  ;;  %v1460_v6 = vpack.c.bf16 %v651_v61, %v651_v61 }
 0x465   :  { %v1455_v58 = vpack.c.bf16 %v652_v53, %v652_v53  ;;  %v1459_v0 = vpack.c.bf16 %v654_v60, %v654_v60 }
 0x466   :  { %v1457_v3 = vpack.c.bf16 %v653_v63, %v653_v63  ;;  %v1461_v4 = vpack.c.bf16 %v655_v2, %v655_v2 }
 0x470   :  { %1462 = vxpose.xlu0.c.b16.start.end [1/1] (short) (narrow) %v1454_v55, 16 }
 0x472   :  { %1478 = vxpose.xlu1.c.b16.start.end [1/1] (short) (narrow) %v1455_v58, 16 }
 0x474   :  { %1494 = vxpose.xlu0.c.b16.start.end [1/1] (short) (narrow) %v1456_v62, 16 }
 0x476   :  { %1542 = vxpose.xlu1.c.b16.start.end [1/1] (short) (narrow) %v1459_v0, 16 }
 0x478   :  { %1510 = vxpose.xlu0.c.b16.start.end [1/1] (short) (narrow) %v1457_v3, 16 }
 0x47a   :  { %1574 = vxpose.xlu1.c.b16.start.end [1/1] (short) (narrow) %v1461_v4, 16 }
 0x47c   :  { %1526 = vxpose.xlu0.c.b16.start.end [1/1] (short) (narrow) %v1458_v5, 16 }
 0x480   :  { %1558 = vxpose.xlu0.c.b16.start.end [1/1] (short) (narrow) %v1460_v6, 16 }
 0x4bd   :  { %v411_v7 = vpop.permute.xlu1 %410 }
 0x4c1   :  { %v419_v9 = vpop.permute.xlu1 %418 }
 0x4c2   :  { %v512_v10 = vcombine.low %v411_v7, %v419_v9  ;;  %v513_v12 = vcombine.high %v411_v7, %v419_v9 }
 0x4c4   :  { %v415_v11 = vpop.permute.xlu0 %414  ;;  %v520_v16 = vrot.slane %v512_v10, %v4962_v57  ;;  %v527_v20 = vrot.slane %v513_v12, %v4962_v57 }
 0x4c5   :  { %v496_v13 = vcombine.low %v407_v8, %v415_v11  ;;  %v497_v14 = vcombine.high %v407_v8, %v415_v11 }
 0x4c7   :  { %v504_v18 = vrot.slane %v496_v13, %v4962_v57  ;;  %v511_v19 = vrot.slane %v497_v14, %v4962_v57 }
 0x4c9   :  { %v528_v22 = vcombine.low %v504_v18, %v520_v16  ;;  %v529_v23 = vcombine.high %v504_v18, %v520_v16  ;;  %v544_v43 = vcombine.low %v511_v19, %v527_v20  ;;  %v545_v29 = vcombine.high %v511_v19, %v527_v20 }
 0x4cb   :  { %v536_v25 = vrot.slane %v528_v22, %v4969_v1  ;;  %v543_v42 = vrot.slane %v529_v23, %v4969_v1  ;;  %v552_v28 = vrot.slane %v544_v43, %v4969_v1  ;;  %v559_v34 = vrot.slane %v545_v29, %v4969_v1 }
 0x4cd   :  { %v2353_v26 = vpack.c.bf16 %v536_v25, %v536_v25  ;;  %v560_v36 = vcombine.high %v536_v25, %v4796_v15  ;;  %v561_v27 = vcombine.high %v543_v42, %v4796_v15  ;;  %v2355_v30 = vpack.c.bf16 %v543_v42, %v543_v42 }
 0x4ce   :  { %v562_v33 = vcombine.high %v552_v28, %v4796_v15  ;;  %v2357_v37 = vpack.c.bf16 %v552_v28, %v552_v28  ;;  %v563_v44 = vcombine.high %v559_v34, %v4796_v15  ;;  %v2359_v46 = vpack.c.bf16 %v559_v34, %v559_v34 }
 0x4cf   :  { %2423 = vxpose.xlu0.c.b16.start.end [1/1] (short) (narrow) %v2353_v26, 16  ;;  %v2354_v41 = vpack.c.bf16 %v560_v36, %v560_v36  ;;  %v2356_v32 = vpack.c.bf16 %v561_v27, %v561_v27 }
 0x4d0   :  { %v2358_v40 = vpack.c.bf16 %v562_v33, %v562_v33  ;;  %v2360_v49 = vpack.c.bf16 %v563_v44, %v563_v44 }
 0x4d1   :  { %2439 = vxpose.xlu1.c.b16.start.end [1/1] (short) (narrow) %v2354_v41, 16 }
 0x4d2   :  { %v1470_v31 = vpop.trf.xlu0 }
 0x4d3   :  { %2455 = vxpose.xlu0.c.b16.start.end [1/1] (short) (narrow) %v2355_v30, 16 }
 0x4d4   :  { %v1486_v35 = vpop.trf.xlu1 }
 0x4d5   :  { %2471 = vxpose.xlu1.c.b16.start.end [1/1] (short) (narrow) %v2356_v32, 16 }
 0x4d6   :  { %v1502_v38 = vpop.trf.xlu0 }
 0x4d7   :  { %2487 = vxpose.xlu0.c.b16.start.end [1/1] (short) (narrow) %v2357_v37, 16 }
 0x4d8   :  { %v1550_v45 = vpop.trf.xlu1 }
 0x4d9   :  { %2503 = vxpose.xlu1.c.b16.start.end [1/1] (short) (narrow) %v2358_v40, 16  ;;  %v1624_v47 = vcombine.low %v1486_v35, %v1550_v45 }
 0x4da   :  { %v1518_v48 = vpop.trf.xlu0 }
 0x4db   :  { %2519 = vxpose.xlu0.c.b16.start.end [1/1] (short) (narrow) %v2359_v46, 16  ;;  %v1631_v52 = vrot.slane %v1624_v47, %v4962_v57 }
 0x4dc   :  { %v1582_v50 = vpop.trf.xlu1 }
 0x4dd   :  { %2535 = vxpose.xlu1.c.b16.start.end [1/1] (short) (narrow) %v2360_v49, 16  ;;  %v1632_v53 = vcombine.low %v1518_v48, %v1582_v50 }
 0x4de   :  { %v1534_v54 = vpop.trf.xlu0 }
 0x4df   :  { %v1590_v55 = vcombine.low %v1470_v31, %v1534_v54  ;;  %v1639_v56 = vrot.slane %v1632_v53, %v4962_v57 }
 0x4e1   :  { %v1640_v58 = vcombine.low %v1631_v52, %v1639_v56  ;;  %v1641_v60 = vcombine.high %v1631_v52, %v1639_v56  ;;  %v1597_v62 = vrot.slane %v1590_v55, %v4962_v57 }
 0x4e2   :  { %v1566_v61 = vpop.trf.xlu0 }
 0x4e3   :  { %v1598_v63 = vcombine.low %v1502_v38, %v1566_v61  ;;  %v1655_v0 = vrot.slane %v1641_v60, %v4969_v1  ;;  %v1648_v3 = vrot.slane %v1640_v58, %v4969_v1 }
 0x4e5   :  { %v1605_v2 = vrot.slane %v1598_v63, %v4962_v57  ;;  %v5106_v6 = vcombine.high %v1655_v0, %v4804_v59  ;;  %v1663_v9 = vshrl.u32 %v1648_v3, 16  ;;  %v1656_v13 = vcombine.high %v1648_v3, %v4804_v59 }
 0x4e6   :  { %v1679_v20 = vshrl.u32 %v1655_v0, 16 }
 0x4e7   :  { %v1606_v4 = vcombine.low %v1597_v62, %v1605_v2  ;;  %v1607_v5 = vcombine.high %v1597_v62, %v1605_v2  ;;  %v1687_v16 = vshrl.u32 %v5106_v6, 16  ;;  %v1671_v36 = vshrl.u32 %v1656_v13, 16 }
 0x4e9   :  { %v1621_v7 = vrot.slane %v1607_v5, %v4969_v1  ;;  %v1614_v8 = vrot.slane %v1606_v4, %v4969_v1 }
 0x4eb   :  { %v1660_v10 = vpack.i.b16 %v1648_v3, %v1614_v8  ;;  %v1662_v11 = vshrl.u32 %v1614_v8, 16  ;;  %v1622_v12 = vcombine.high %v1614_v8, %v4804_v59  ;;  %v5113_v14 = vcombine.high %v1621_v7, %v4804_v59 }
 0x4ec   :  { %v1678_v19 = vshrl.u32 %v1621_v7, 16  ;;  %v1676_v41 = vpack.i.b16 %v1655_v0, %v1621_v7 }
 0x4ed   :  { %1690 = vxpose.xlu0.c.b16.start.end [1/1] (short) (narrow) %v1660_v10, 16  ;;  %v1664_v18 = vpack.i.b16 %v1663_v9, %v1662_v11  ;;  %v1684_v22 = vpack.i.b16 %v5106_v6, %v5113_v14  ;;  %v1686_v23 = vshrl.u32 %v5113_v14, 16  ;;  %v1668_v25 = vpack.i.b16 %v1656_v13, %v1622_v12 }
 0x4ee   :  { %v1680_v43 = vpack.i.b16 %v1679_v20, %v1678_v19  ;;  %v1670_v26 = vshrl.u32 %v1622_v12, 16 }
 0x4ef   :  { %1706 = vxpose.xlu1.c.b16.start.end [1/1] (short) (narrow) %v1664_v18, 16  ;;  %v5119_v42 = vpack.i.b16 %v1687_v16, %v1686_v23 }
 0x4f0   :  { %v1672_v27 = vpack.i.b16 %v1671_v36, %v1670_v26 }
 0x4f1   :  { %1722 = vxpose.xlu0.c.b16.start.end [1/1] (short) (narrow) %v1668_v25, 16 }
 0x4f3   :  { %1770 = vxpose.xlu1.c.b16.start.end [1/1] (short) (narrow) %v1680_v43, 16 }
 0x4f5   :  { %1754 = vxpose.xlu0.c.b16.start.end [1/1] (short) (narrow) %v1676_v41, 16 }
 0x4f7   :  { %1738 = vxpose.xlu1.c.b16.start.end [1/1] (short) (narrow) %v1672_v27, 16 }
 0x507   :  { %v5121_v28 = vpop.f32.mrf.mxu1 }
 0x508   :  { %v1406_v29 = vsel %vm1220_vm3, %v5121_v28, -inf }
 0x509   :  { %v4407_v30 = vpop.f32.mrf.mxu1  ;;  %1407 = vmax.xlane.f32.xlu1 %v1406_v29 }
 0x50b   :  { %v1265_v31 = vpop.f32.mrf.mxu1 }
 0x50d   :  { %v4408_v32 = vpop.f32.mrf.mxu1 }
 0x50f   :  { %v5125_v33 = vpop.f32.mrf.mxu1 }
 0x510   :  { %v1409_v34 = vsel %vm1220_vm3, %v5125_v33, -inf }
 0x511   :  { %v4413_v35 = vpop.f32.mrf.mxu1  ;;  %1410 = vmax.xlane.f32.xlu0 %v1409_v34 }
 0x513   :  { %v1311_v37 = vpop.f32.mrf.mxu1 }
 0x515   :  { %v4414_v38 = vpop.f32.mrf.mxu1 }
 0x517   :  { %v5129_v40 = vpop.f32.mrf.mxu1 }
 0x518   :  { %v1412_v44 = vsel %vm1220_vm3, %v5129_v40, -inf }
 0x519   :  { %v4419_v45 = vpop.f32.mrf.mxu1  ;;  %1413 = vmax.xlane.f32.xlu0 %v1412_v44 }
 0x51b   :  { %v1357_v46 = vpop.f32.mrf.mxu1 }
 0x51d   :  { %v4420_v47 = vpop.f32.mrf.mxu1 }
 0x51f   :  { %v5133_v48 = vpop.f32.mrf.mxu1 }
 0x520   :  { %v1415_v49 = vsel %vm1220_vm3, %v5133_v48, -inf }
 0x521   :  { %v4425_v50 = vpop.f32.mrf.mxu1  ;;  %1416 = vmax.xlane.f32.xlu1 %v1415_v49 }
 0x523   :  { %v1403_v52 = vpop.f32.mrf.mxu1 }
 0x525   :  { %v4426_v53 = vpop.f32.mrf.mxu1 }
 0x531   :  { %v2431_v54 = vpop.trf.xlu0 }
 0x533   :  { %v2447_v55 = vpop.trf.xlu1 }
 0x535   :  { %v2463_v56 = vpop.trf.xlu0 }
 0x537   :  { %v2479_v58 = vpop.trf.xlu1 }
 0x539   :  { %v2495_v60 = vpop.trf.xlu0 }
 0x53a   :  { %v2551_v61 = vcombine.low %v2431_v54, %v2495_v60 }
 0x53b   :  { %v2511_v62 = vpop.trf.xlu1 }
 0x53c   :  { %v2585_v63 = vcombine.low %v2447_v55, %v2511_v62  ;;  %v2558_v2 = vrot.slane %v2551_v61, %v4962_v57 }
 0x53d   :  { %v2527_v0 = vpop.trf.xlu0 }
 0x53e   :  { %v2559_v3 = vcombine.low %v2463_v56, %v2527_v0  ;;  %v2592_v5 = vrot.slane %v2585_v63, %v4962_v57 }
 0x53f   :  { %v2543_v4 = vpop.trf.xlu1 }
 0x540   :  { %v2566_v6 = vrot.slane %v2559_v3, %v4962_v57  ;;  %v2593_v7 = vcombine.low %v2479_v58, %v2543_v4 }
 0x542   :  { %v2567_v8 = vcombine.low %v2558_v2, %v2566_v6  ;;  %v2568_v9 = vcombine.high %v2558_v2, %v2566_v6  ;;  %v2600_v10 = vrot.slane %v2593_v7, %v4962_v57 }
 0x544   :  { %v5142_v11 = vrot.slane %v2567_v8, %v4969_v1  ;;  %v2601_v12 = vcombine.low %v2592_v5, %v2600_v10  ;;  %v2602_v13 = vcombine.high %v2592_v5, %v2600_v10  ;;  %v5145_v14 = vrot.slane %v2568_v9, %v4969_v1 }
 0x546   :  { %1786 = vxpose.xlu0.c.b16.start.end [1/1] (short) (narrow) %v1684_v22, 16  ;;  %v5148_v16 = vrot.slane %v2601_v12, %v4969_v1  ;;  %v2623_v18 = vshrl.u32 %v5142_v11, 16  ;;  %v5153_v19 = vcombine.high %v5142_v11, %v4804_v59  ;;  %v5156_v20 = vrot.slane %v2602_v13, %v4969_v1 }
 0x547   :  { %v5160_v23 = vcombine.high %v5145_v14, %v4804_v59  ;;  %v2639_v25 = vshrl.u32 %v5145_v14, 16 }
 0x548   :  { %v2621_v22 = vpack.i.b16 %v5148_v16, %v5142_v11  ;;  %v2624_v43 = vshrl.u32 %v5148_v16, 16  ;;  %v5168_v26 = vcombine.high %v5148_v16, %v4804_v59  ;;  %v2637_v36 = vpack.i.b16 %v5156_v20, %v5145_v14 }
 0x549   :  { %v5174_v41 = vcombine.high %v5156_v20, %v4804_v59  ;;  %v2631_v27 = vshrl.u32 %v5153_v19, 16  ;;  %v2640_v29 = vshrl.u32 %v5156_v20, 16  ;;  %v2647_v30 = vshrl.u32 %v5160_v23, 16 }
 0x54a   :  { %v2625_v31 = vpack.i.b16 %v2624_v43, %v2623_v18  ;;  %v2629_v32 = vpack.i.b16 %v5168_v26, %v5153_v19  ;;  %v2632_v34 = vshrl.u32 %v5168_v26, 16 }
 0x54b   :  { %v2645_v35 = vpack.i.b16 %v5174_v41, %v5160_v23  ;;  %v5184_v37 = vpack.i.b16 %v2640_v29, %v2639_v25  ;;  %v2648_v38 = vshrl.u32 %v5174_v41, 16 }
 0x54c   :  { %v5187_v44 = vpack.i.b16 %v2632_v34, %v2631_v27 }
 0x54d   :  { %v5189_v45 = vpack.i.b16 %v2648_v38, %v2647_v30 }
 0x54e   :  { %1802 = vxpose.xlu1.c.b16.start.end [1/1] (short) (narrow) %v5119_v42, 16 }
 0x54f   :  { %v1698_v50 = vpop.trf.xlu0 }
 0x551   :  { %v1714_v46 = vpop.trf.xlu1 }
 0x553   :  { %v1730_v53 = vpop.trf.xlu0 }
 0x555   :  { %v1778_v47 = vpop.trf.xlu1 }
 0x556   :  { %v1843_v49 = vcombine.low %v1714_v46, %v1778_v47 }
 0x557   :  { %v1762_v58 = vpop.trf.xlu0 }
 0x558   :  { %v1818_v3 = vcombine.low %v1698_v50, %v1762_v58  ;;  %v1850_v12 = vrot.slane %v1843_v49, %v4962_v57 }
 0x559   :  { %v1746_v52 = vpop.trf.xlu1 }
 0x55a   :  { %v1825_v7 = vrot.slane %v1818_v3, %v4962_v57 }
 0x592   :  { %v1408_v54 = vpop.xlane.xlu1 %1407 }
 0x593   :  { %v1418_v55 = vsub.f32 %v5121_v28, %v1408_v54 }
 0x595   :  { %v1422_v56 = vmul.f32 1.442695, %v1418_v55 }
 0x597   :  { %4579 = vpow2.f32 %v1422_v56 }
 0x59a   :  { %v1411_v60 = vpop.xlane.xlu0 %1410 }
 0x59b   :  { %v1419_v61 = vsub.f32 %v5125_v33, %v1411_v60 }
 0x59d   :  { %v1424_v62 = vmul.f32 1.442695, %v1419_v61 }
 0x59f   :  { %4581 = vpow2.f32 %v1424_v62 }
 0x5a2   :  { %v1414_v0 = vpop.xlane.xlu0 %1413 }
 0x5a4   :  { %v4580_v63 = vpop.eup %4579 }
 0x5a5   :  { %v1430_v42 = vsel %vm1220_vm3, %v4580_v63, 0.0 }
 0x5a6   :  { %1431 = vadd.xlane.f32.xlu0 %v1430_v42 }
 0x5a8   :  { %v1794_v2 = vpop.trf.xlu0 }
 0x5a9   :  { %v1826_v4 = vcombine.low %v1730_v53, %v1794_v2  ;;  %v1420_v53 = vsub.f32 %v5129_v40, %v1414_v0 }
 0x5aa   :  { %v1417_v28 = vpop.xlane.xlu1 %1416 }
 0x5ab   :  { %v1833_v5 = vrot.slane %v1826_v4, %v4962_v57  ;;  %v1426_v54 = vmul.f32 1.442695, %v1420_v53  ;;  %v1421_v55 = vsub.f32 %v5133_v48, %v1417_v28 }
 0x5ac   :  { %v4582_v6 = vpop.eup %4581 }
 0x5ad   :  { %v1433_v8 = vsel %vm1220_vm3, %v4582_v6, 0.0  ;;  %v1834_v33 = vcombine.low %v1825_v7, %v1833_v5  ;;  %4583 = vpow2.f32 %v1426_v54  ;;  %v1428_v56 = vmul.f32 1.442695, %v1421_v55 }
 0x5ae   :  { %1434 = vadd.xlane.f32.xlu1 %v1433_v8 }
 0x5af   :  { %v1841_v13 = vrot.slane %v1834_v33, %v4969_v1  ;;  %4585 = vpow2.f32 %v1428_v56 }
 0x5b0   :  { %v1810_v9 = vpop.trf.xlu1 }
 0x5b1   :  { %v1851_v10 = vcombine.low %v1746_v52, %v1810_v9  ;;  %v5202_v43 = vcombine.high %v1841_v13, %v4804_v59  ;;  %v1871_v29 = vshrl.u32 %v1841_v13, 16 }
 0x5b3   :  { %v1858_v18 = vrot.slane %v1851_v10, %v4962_v57  ;;  %v1877_v46 = vshrl.u32 %v5202_v43, 16 }
 0x5b5   :  { %v1859_v25 = vcombine.low %v1850_v12, %v1858_v18 }
 0x5b7   :  { %v1866_v27 = vrot.slane %v1859_v25, %v4969_v1 }
 0x5b9   :  { %v5206_v30 = vcombine.high %v1866_v27, %v4804_v59  ;;  %v1870_v34 = vpack.i.b16 %v1866_v27, %v1841_v13  ;;  %v1872_v38 = vshrl.u32 %v1866_v27, 16 }
 0x5ba   :  { %v5219_v58 = vpop.eup %4583 }
 0x5bb   :  { %v1878_v47 = vshrl.u32 %v5206_v30, 16  ;;  %v1873_v49 = vpack.i.b16 %v1872_v38, %v1871_v29  ;;  %v1876_v50 = vpack.i.b16 %v5206_v30, %v5202_v43  ;;  %v1436_v60 = vsel %vm1220_vm3, %v5219_v58, 0.0 }
 0x5bc   :  { %v5223_v61 = vpop.eup %4585 }
 0x5bd   :  { %v5212_v52 = vpack.i.b16 %v1878_v47, %v1877_v46  ;;  %v1439_v40 = vsel %vm1220_vm3, %v5223_v61, 0.0 }
 0x5d3   :  { %2651 = vxpose.xlu0.c.b16.start.end [1/1] (short) (narrow) %v2621_v22, 16 }
 0x5db   :  { %2667 = vxpose.xlu1.c.b16.start.end [1/1] (short) (narrow) %v2625_v31, 16  ;;  %v336_v31 = vcombine.low %v4941_v39, %v5060_v24 }
 0x5e0   :  { %1437 = vadd.xlane.f32.xlu0 %v1436_v60 }
 0x5e8   :  { %1440 = vadd.xlane.f32.xlu1 %v1439_v40 }
 0x60d   :  { %2683 = vxpose.xlu0.c.b16.start.end [1/1] (short) (narrow) %v2629_v32, 16  ;;  %v337_v32 = vcombine.high %v4941_v39, %v5060_v24 }
 0x60f   :  { %v351_v62 = vrot.slane %v337_v32, %v4962_v57 }
 0x611   :  { %2715 = vxpose.xlu0.c.b16.start.end [1/1] (short) (narrow) %v2637_v36, 16 }
 0x615   :  { %2747 = vxpose.xlu0.c.b16.start.end [1/1] (short) (narrow) %v2645_v35, 16  ;;  %2699 = vxpose.xlu1.c.b16.start.end [1/1] (short) (narrow) %v5187_v44, 16  ;;  %v352_v35 = vcombine.low %v5048_v17, %v5052_v21 }
 0x617   :  { %v360_v0 = vrot.slane %v352_v35, %v4962_v57 }
 0x619   :  { %2731 = vxpose.xlu1.c.b16.start.end [1/1] (short) (narrow) %v5184_v37, 16  ;;  %v353_v37 = vcombine.high %v5048_v17, %v5052_v21 }
 0x61b   :  { %v367_v42 = vrot.slane %v353_v37, %v4962_v57 }
 0x61d   :  { %2763 = vxpose.xlu1.c.b16.start.end [1/1] (short) (narrow) %v5189_v45, 16  ;;  %v344_v45 = vrot.slane %v336_v31, %v4962_v57 }
 0x61e   :  { %566 = vrot.lane.b32.xlu0 %v4941_v39, %s4791_s5  ;;  %v384_v39 = vcombine.low %v351_v62, %v367_v42 }
 0x61f   :  { %v368_v2 = vcombine.low %v344_v45, %v360_v0  ;;  %v369_v3 = vcombine.high %v344_v45, %v360_v0 }
 0x620   :  { %v392_v28 = vrot.slane %v384_v39, %v4969_v1 }
 0x621   :  { %570 = vrot.lane.b32.xlu1 %v5048_v17, %s4791_s5  ;;  %v376_v17 = vrot.slane %v368_v2, %v4969_v1 }
 0x622   :  { %v402_v12 = vcombine.high %v392_v28, %v4796_v15 }
 0x623   :  { %v400_v9 = vcombine.high %v376_v17, %v4796_v15  ;;  %v4319_v55 = vpack.c.bf16 %v392_v28, %v376_v17 }
 0x625   :  { %574 = vrot.lane.b32.xlu1 %v5060_v24, %s4791_s5  ;;  %v385_v24 = vcombine.high %v351_v62, %v367_v42  ;;  %v4321_v46 = vpack.c.bf16 %v402_v12, %v400_v9 }
 0x627   :  { %v399_v7 = vrot.slane %v385_v24, %v4969_v1 }
 0x629   :  { %v403_v13 = vcombine.high %v399_v7, %v4796_v15 }
 0x62f   :  { %v1432_v48 = vpop.xlane.xlu0 %1431 }
 0x630   :  { %4587 = vrcp.f32 %v1432_v48 }
 0x635   :  { %v2659_v41 = vpop.trf.xlu0 }
 0x637   :  { %v1435_v11 = vpop.xlane.xlu1 %1434 }
 0x638   :  { %4589 = vrcp.f32 %v1435_v11 }
 0x63d   :  { %v4588_v14 = vpop.eup %4587 }
 0x63e   :  { %v1446_v16 = vmul.f32 %v4588_v14, %v4580_v63  ;;  %v2675_v63 = vpop.trf.xlu1 }
 0x640   :  { %v1450_v19 = vpack.c.bf16 %v1446_v16, %v1446_v16 }
 0x642   :  { %v1884_v20 = vsel %vm1220_vm3, %v1450_v19, 0 }
 0x643   :  { %4428 = vmatpush3.bf16.xpose.msra.mxu0 %v1884_v20 }
 0x644   :  { %4439 = vmatprep.subr.bf16.mxu0 %v4796_v15 }
 0x645   :  { %v4590_v23 = vpop.eup %4589 }
 0x646   :  { %v1447_v22 = vmul.f32 %v4590_v23, %v4582_v6  ;;  %v383_v6 = vrot.slane %v369_v3, %v4969_v1  ;;  %v2368_v23 = vrot.slane %v4319_v55, %v4962_v57 }
 0x648   :  { %v1451_v26 = vpack.c.bf16 %v1447_v22, %v1447_v22  ;;  %v401_v10 = vcombine.high %v383_v6, %v4796_v15  ;;  %v4320_v60 = vpack.c.bf16 %v399_v7, %v383_v6 }
 0x64a   :  { %4430 = vmatmul.mubr.msk.bf16.vlgmr.msra.gmra.mxu0 %vm1220_vm3, %v1870_v34  ;;  %v1930_v36 = vsel %vm1220_vm3, %v1451_v26, 0  ;;  %v4322_v47 = vpack.c.bf16 %v403_v13, %v401_v10  ;;  %v2376_v22 = vrot.slane %v4320_v60, %v4962_v57 }
 0x64b   :  { %4434 = vmatpush3.bf16.xpose.msra.mxu1 %v1930_v36  ;;  %4441 = vmatprep.mubr.msk.bf16.mxu0 %vm4797_vm1, %v4796_v15 }
 0x64c   :  { %4445 = vmatprep.subr.bf16.mxu1 %v4796_v15  ;;  %v2401_v11 = vrot.slane %v4322_v47, %v4962_v57  ;;  %v2377_v37 = vcombine.low %v2368_v23, %v2376_v22 }
 0x64e   :  { %v2384_v2 = vrot.slane %v2377_v37, %v4969_v1 }
 0x652   :  { %4436 = vmatmul.mubr.msk.bf16.vlgmr.msra.gmra.mxu1 %vm1220_vm3, %v1873_v49 }
 0x653   :  { %4447 = vmatprep.mubr.msk.bf16.mxu1 %vm4797_vm1, %v4796_v15 }
 0x669   :  { %v1438_v44 = vpop.xlane.xlu0 %1437 }
 0x66a   :  { %4591 = vrcp.f32 %v1438_v44 }
 0x66f   :  { %v2691_v4 = vpop.trf.xlu0 }
 0x671   :  { %v1441_v5 = vpop.xlane.xlu1 %1440 }
 0x672   :  { %4593 = vrcp.f32 %v1441_v5 }
 0x673   :  { %v2723_v8 = vpop.trf.xlu0 }
 0x674   :  { %v2779_v34 = vcombine.low %v2659_v41, %v2723_v8 }
 0x676   :  { %v2786_v56 = vrot.slane %v2779_v34, %v4962_v57 }
 0x677   :  { %v4592_v33 = vpop.eup %4591  ;;  %v2755_v18 = vpop.trf.xlu0 }
 0x678   :  { %v2707_v25 = vpop.trf.xlu1  ;;  %v2787_v27 = vcombine.low %v2691_v4, %v2755_v18  ;;  %v1448_v29 = vmul.f32 %v4592_v33, %v5219_v58  ;;  %v2393_v58 = vrot.slane %v4321_v46, %v4962_v57  ;;  %v2385_v33 = vcombine.high %v2384_v2, %v4804_v59 }
 0x67a   :  { %v1452_v38 = vpack.c.bf16 %v1448_v29, %v1448_v29  ;;  %v2794_v49 = vrot.slane %v2787_v27, %v4962_v57  ;;  %v2402_v32 = vcombine.low %v2393_v58, %v2401_v11  ;;  %v2420_v13 = vshrl.u32 %v2385_v33, 16 }
 0x67c   :  { %v2739_v53 = vpop.trf.xlu1  ;;  %v1976_v54 = vsel %vm1220_vm3, %v1452_v38, 0  ;;  %v2795_v14 = vcombine.low %v2786_v56, %v2794_v49  ;;  %v2409_v62 = vrot.slane %v2402_v32, %v4969_v1 }
 0x67d   :  { %4440 = vmatpush3.bf16.xpose.msra.mxu0 %v1976_v54  ;;  %v2804_v40 = vcombine.low %v2675_v63, %v2739_v53 }
 0x67e   :  { %4451 = vmatprep.subr.bf16.mxu0 %v4796_v15  ;;  %v2802_v31 = vrot.slane %v2795_v14, %v4969_v1  ;;  %v2413_v24 = vpack.i.b16 %v2409_v62, %v2384_v2  ;;  %v2415_v17 = vshrl.u32 %v2409_v62, 16  ;;  %v2410_v7 = vcombine.high %v2409_v62, %v4804_v59 }
 0x67f   :  { %v4594_v48 = vpop.eup %4593  ;;  %v2811_v26 = vrot.slane %v2804_v40, %v4962_v57 }
 0x680   :  { %v2771_v16 = vpop.trf.xlu1  ;;  %v1449_v20 = vmul.f32 %v4594_v48, %v5223_v61  ;;  %v2832_v45 = vshrl.u32 %v2802_v31, 16  ;;  %v2803_v43 = vcombine.high %v2802_v31, %v4804_v59  ;;  %v2419_v10 = vpack.i.b16 %v2410_v7, %v2385_v33 }
 0x681   :  { %v2812_v19 = vcombine.low %v2707_v25, %v2771_v16  ;;  %v2421_v12 = vshrl.u32 %v2410_v7, 16 }
 0x682   :  { %v1453_v41 = vpack.c.bf16 %v1449_v20, %v1449_v20  ;;  %v2838_v6 = vshrl.u32 %v2803_v43, 16 }
 0x683   :  { %v2819_v36 = vrot.slane %v2812_v19, %v4962_v57  ;;  %v2422_v18 = vpack.i.b16 %v2421_v12, %v2420_v13 }
 0x684   :  { %4442 = vmatmul.mubr.msk.bf16.vlgmr.msra.gmra.mxu0 %vm1220_vm3, %v1876_v50  ;;  %v2022_v61 = vsel %vm1220_vm3, %v1453_v41, 0 }
 0x685   :  { %v2820_v35 = vcombine.low %v2811_v26, %v2819_v36  ;;  %4446 = vmatpush3.bf16.xpose.msra.mxu1 %v2022_v61  ;;  %4453 = vmatprep.mubr.msk.bf16.mxu0 %vm4797_vm1, %v4796_v15 }
 0x686   :  { %4457 = vmatprep.subr.bf16.mxu1 %v4796_v15 }
 0x687   :  { %v2827_v44 = vrot.slane %v2820_v35, %v4969_v1 }
 0x689   :  { %v2831_v63 = vpack.i.b16 %v2827_v44, %v2802_v31  ;;  %v2833_v0 = vshrl.u32 %v2827_v44, 16  ;;  %v2828_v30 = vcombine.high %v2827_v44, %v4804_v59 }
 0x68b   :  { %v2845_v50 = vsel %vm1224_vm2, %v2831_v63, 0  ;;  %v2834_v42 = vpack.i.b16 %v2833_v0, %v2832_v45  ;;  %v2837_v3 = vpack.i.b16 %v2828_v30, %v2803_v43  ;;  %v2839_v4 = vshrl.u32 %v2828_v30, 16 }
 0x68c   :  { %4452 = vmatpush3.bf16.msra.mxu0 %v2845_v50  ;;  %4448 = vmatmul.mubr.msk.bf16.vlgmr.msra.gmra.mxu1 %vm1220_vm3, %v5212_v52  ;;  %v2414_v52 = vshrl.u32 %v2384_v2, 16 }
 0x68d   :  { %v2891_v39 = vsel %vm1224_vm2, %v2834_v42, 0  ;;  %4463 = vmatprep.subr.bf16.mxu0 %v4796_v15  ;;  %4459 = vmatprep.mubr.msk.bf16.mxu1 %vm4797_vm1, %v4796_v15  ;;  %v2937_v5 = vsel %vm1224_vm2, %v2837_v3, 0  ;;  %v2840_v28 = vpack.i.b16 %v2839_v4, %v2838_v6 }
 0x68e   :  { %4458 = vmatpush3.bf16.msra.mxu1 %v2891_v39  ;;  %v2416_v8 = vpack.i.b16 %v2415_v17, %v2414_v52 }
 0x68f   :  { %4454 = vmatmul.mubr.msk.bf16.vlgmr.msra.gmra.mxu0 %vm1220_vm3, %v2413_v24  ;;  %4469 = vmatprep.subr.bf16.mxu1 %v4796_v15  ;;  %v2983_v9 = vsel %vm1224_vm2, %v2840_v28, 0 }
 0x690   :  { %4464 = vmatpush3.bf16.msra.mxu0 %v2937_v5  ;;  %4465 = vmatprep.mubr.msk.bf16.mxu0 %vm4797_vm1, %v4796_v15  ;;  %v567_v2 = vpop.permute.xlu0 %566 }
 0x691   :  { %4475 = vmatprep.subr.bf16.mxu0 %v4796_v15 }
 0x693   :  { %v571_v43 = vpop.permute.xlu1 %570 }
 0x694   :  { %4460 = vmatmul.mubr.msk.bf16.vlgmr.msra.gmra.mxu1 %vm1220_vm3, %v2416_v8 }
 0x695   :  { %4470 = vmatpush3.bf16.msra.mxu1 %v2983_v9  ;;  %4471 = vmatprep.mubr.msk.bf16.mxu1 %vm4797_vm1, %v4796_v15 }
 0x696   :  { %4481 = vmatprep.subr.bf16.mxu1 %v4796_v15 }
 0x697   :  { %4466 = vmatmul.mubr.msk.bf16.vlgmr.msra.gmra.mxu0 %vm1220_vm3, %v2419_v10  ;;  %v575_v30 = vpop.permute.xlu1 %574 }
 0x698   :  { %4477 = vmatprep.mubr.msk.bf16.mxu0 %vm4797_vm1, %v4796_v15  ;;  %v656_v3 = vcombine.low %v567_v2, %v575_v30  ;;  %v657_v39 = vcombine.high %v567_v2, %v575_v30 }
 0x69a   :  { %v664_v17 = vrot.slane %v656_v3, %v4962_v57  ;;  %v671_v6 = vrot.slane %v657_v39, %v4962_v57 }
 0x69c   :  { %4472 = vmatmul.mubr.msk.bf16.vlgmr.msra.gmra.mxu1 %vm1220_vm3, %v2422_v18 }
 0x69d   :  { %4483 = vmatprep.mubr.msk.bf16.mxu1 %vm4797_vm1, %v4796_v15 }
 0x70a   :  { %v5327_v25 = vpop.f32.mrf.mxu0 }
 0x70c   :  { %v4431_v27 = vpop.f32.mrf.mxu0 }
 0x70e   :  { %v1923_v29 = vpop.f32.mrf.mxu0 }
 0x710   :  { %v4432_v34 = vpop.f32.mrf.mxu0 }
 0x712   :  { %v5329_v38 = vpop.f32.mrf.mxu1 }
 0x714   :  { %v4437_v46 = vpop.f32.mrf.mxu1 }
 0x716   :  { %v1969_v47 = vpop.f32.mrf.mxu1 }
 0x718   :  { %v4438_v49 = vpop.f32.mrf.mxu1 }
 0x744   :  { %v5331_v53 = vpop.f32.mrf.mxu0 }
 0x746   :  { %v4443_v54 = vpop.f32.mrf.mxu0 }
 0x748   :  { %v2015_v55 = vpop.f32.mrf.mxu0 }
 0x74a   :  { %v4444_v56 = vpop.f32.mrf.mxu0 }
 0x74c   :  { %v5333_v60 = vpop.f32.mrf.mxu1 }
 0x74e   :  { %v4449_v40 = vpop.f32.mrf.mxu1 }
 0x74f   :  { %v5335_v48 = vpop.f32.mrf.mxu0 }
 0x750   :  { %v3025_v58 = vsel %vm1220_vm3, %v5335_v48, -inf  ;;  %v2061_v11 = vpop.f32.mrf.mxu1 }
 0x751   :  { %3026 = vmax.xlane.f32.xlu0 %v3025_v58  ;;  %v4455_v14 = vpop.f32.mrf.mxu0 }
 0x752   :  { %v4450_v16 = vpop.f32.mrf.mxu1 }
 0x753   :  { %v2884_v19 = vpop.f32.mrf.mxu0 }
 0x754   :  { %v5339_v23 = vpop.f32.mrf.mxu1 }
 0x755   :  { %v4456_v20 = vpop.f32.mrf.mxu0  ;;  %v3028_v22 = vsel %vm1220_vm3, %v5339_v23, -inf }
 0x756   :  { %3029 = vmax.xlane.f32.xlu1 %v3028_v22  ;;  %v4461_v26 = vpop.f32.mrf.mxu1 }
 0x757   :  { %v5343_v36 = vpop.f32.mrf.mxu0 }
 0x758   :  { %v3031_v41 = vsel %vm1220_vm3, %v5343_v36, -inf  ;;  %v2930_v31 = vpop.f32.mrf.mxu1 }
 0x759   :  { %3032 = vmax.xlane.f32.xlu0 %v3031_v41  ;;  %v4467_v32 = vpop.f32.mrf.mxu0 }
 0x75a   :  { %v4462_v35 = vpop.f32.mrf.mxu1 }
 0x75b   :  { %v2976_v61 = vpop.f32.mrf.mxu0 }
 0x75c   :  { %v5347_v44 = vpop.f32.mrf.mxu1 }
 0x75d   :  { %v4468_v37 = vpop.f32.mrf.mxu0  ;;  %v3034_v45 = vsel %vm1220_vm3, %v5347_v44, -inf }
 0x75e   :  { %3035 = vmax.xlane.f32.xlu1 %v3034_v45  ;;  %v4473_v62 = vpop.f32.mrf.mxu1 }
 0x760   :  { %v3022_v63 = vpop.f32.mrf.mxu1 }
 0x762   :  { %v4474_v0 = vpop.f32.mrf.mxu1 }
 0x76f   :  { %578 = vrot.lane.b32.xlu1 %v5052_v21, %s4791_s5 }
 0x7da   :  { %v3027_v11 = vpop.xlane.xlu0 %3026 }
 0x7db   :  { %v3037_v39 = vsub.f32 %v5335_v48, %v3027_v11 }
 0x7df   :  { %v5353_v50 = vpop.xlane.xlu1 %3029 }
 0x7e2   :  { %v3033_v14 = vpop.xlane.xlu0 %3032 }
 0x7e7   :  { %v5355_v42 = vpop.xlane.xlu1 %3035 }
 0x7eb   :  { %v579_v24 = vpop.permute.xlu1 %578 }
 0x7ec   :  { %v672_v4 = vcombine.low %v571_v43, %v579_v24  ;;  %v673_v5 = vcombine.high %v571_v43, %v579_v24 }
 0x7ee   :  { %v680_v52 = vrot.slane %v672_v4, %v4962_v57  ;;  %v687_v21 = vrot.slane %v673_v5, %v4962_v57  ;;  %v3038_v5 = vsub.f32 %v5339_v23, %v5353_v50  ;;  %v3040_v23 = vsub.f32 %v5347_v44, %v5355_v42 }
 0x7f0   :  { %v688_v28 = vcombine.low %v664_v17, %v680_v52  ;;  %v704_v7 = vcombine.low %v671_v6, %v687_v21  ;;  %v689_v8 = vcombine.high %v664_v17, %v680_v52  ;;  %v705_v33 = vcombine.high %v671_v6, %v687_v21 }
 0x7f2   :  { %v696_v9 = vrot.slane %v688_v28, %v4969_v1  ;;  %v712_v10 = vrot.slane %v704_v7, %v4969_v1  ;;  %v703_v18 = vrot.slane %v689_v8, %v4969_v1  ;;  %v719_v34 = vrot.slane %v705_v33, %v4969_v1 }
 0x7f3   :  { %v3041_v8 = vmul.f32 1.442695, %v3037_v39  ;;  %v3039_v33 = vsub.f32 %v5343_v36, %v3033_v14  ;;  %v3047_v36 = vmul.f32 1.442695, %v3040_v23 }
 0x7f4   :  { %v3073_v12 = vpack.c.bf16 %v696_v9, %v696_v9  ;;  %v720_v13 = vcombine.high %v696_v9, %v4796_v15  ;;  %v722_v29 = vcombine.high %v712_v10, %v4796_v15  ;;  %v3075_v46 = vpack.c.bf16 %v703_v18, %v703_v18 }
 0x7f5   :  { %v721_v47 = vcombine.high %v703_v18, %v4796_v15  ;;  %v723_v54 = vcombine.high %v719_v34, %v4796_v15  ;;  %v3077_v40 = vpack.c.bf16 %v712_v10, %v712_v10  ;;  %v3079_v58 = vpack.c.bf16 %v719_v34, %v719_v34 }
 0x7f6   :  { %3081 = vxpose.xlu0.c.b16.start.end [1/1] (short) (narrow) %v3073_v12, 16  ;;  %v3074_v27 = vpack.c.bf16 %v720_v13, %v720_v13  ;;  %v3078_v49 = vpack.c.bf16 %v722_v29, %v722_v29  ;;  %v3043_v12 = vmul.f32 1.442695, %v3038_v5  ;;  %4595 = vpow2.f32 %v3041_v8 }
 0x7f7   :  { %v3076_v55 = vpack.c.bf16 %v721_v47, %v721_v47  ;;  %v3080_v56 = vpack.c.bf16 %v723_v54, %v723_v54 }
 0x7f8   :  { %3097 = vxpose.xlu1.c.b16.start.end [1/1] (short) (narrow) %v3074_v27, 16  ;;  %v3045_v27 = vmul.f32 1.442695, %v3039_v33  ;;  %4597 = vpow2.f32 %v3043_v12 }
 0x7fa   :  { %3113 = vxpose.xlu0.c.b16.start.end [1/1] (short) (narrow) %v3075_v46, 16  ;;  %4599 = vpow2.f32 %v3045_v27 }
 0x7fb   :  { %4601 = vpow2.f32 %v3047_v36 }
 0x7fc   :  { %3161 = vxpose.xlu1.c.b16.start.end [1/1] (short) (narrow) %v3078_v49, 16 }
 0x7fe   :  { %3129 = vxpose.xlu0.c.b16.start.end [1/1] (short) (narrow) %v3076_v55, 16 }
 0x800   :  { %3193 = vxpose.xlu1.c.b16.start.end [1/1] (short) (narrow) %v3080_v56, 16 }
 0x802   :  { %3145 = vxpose.xlu0.c.b16.start.end [1/1] (short) (narrow) %v3077_v40, 16 }
 0x803   :  { %v4596_v44 = vpop.eup %4595 }
 0x804   :  { %v3049_v54 = vsel %vm1220_vm3, %v4596_v44, 0.0 }
 0x805   :  { %v4598_v42 = vpop.eup %4597 }
 0x806   :  { %3177 = vxpose.xlu0.c.b16.start.end [1/1] (short) (narrow) %v3079_v58, 16  ;;  %v3052_v56 = vsel %vm1220_vm3, %v4598_v42, 0.0 }
 0x807   :  { %v4600_v55 = vpop.eup %4599 }
 0x808   :  { %v4602_v40 = vpop.eup %4601  ;;  %v3055_v58 = vsel %vm1220_vm3, %v4600_v55, 0.0 }
 0x809   :  { %v3058_v11 = vsel %vm1220_vm3, %v4602_v40, 0.0 }
 0x858   :  { %v3089_v16 = vpop.trf.xlu0 }
 0x85a   :  { %v3105_v19 = vpop.trf.xlu1 }
 0x85c   :  { %v3121_v20 = vpop.trf.xlu0 }
 0x85e   :  { %v3169_v22 = vpop.trf.xlu1 }
 0x85f   :  { %v3243_v41 = vcombine.low %v3105_v19, %v3169_v22 }
 0x860   :  { %v3137_v26 = vpop.trf.xlu0 }
 0x861   :  { %v3250_v37 = vrot.slane %v3243_v41, %v4962_v57 }
 0x862   :  { %v3201_v31 = vpop.trf.xlu1 }
 0x863   :  { %v3251_v32 = vcombine.low %v3137_v26, %v3201_v31 }
 0x864   :  { %v3153_v35 = vpop.trf.xlu0 }
 0x865   :  { %v3258_v61 = vrot.slane %v3251_v32, %v4962_v57  ;;  %v3209_v45 = vcombine.low %v3089_v16, %v3153_v35 }
 0x867   :  { %v3259_v62 = vcombine.low %v3250_v37, %v3258_v61  ;;  %v3216_v43 = vrot.slane %v3209_v45, %v4962_v57  ;;  %v3260_v17 = vcombine.high %v3250_v37, %v3258_v61 }
 0x868   :  { %v3185_v63 = vpop.trf.xlu0 }
 0x869   :  { %v3217_v0 = vcombine.low %v3121_v20, %v3185_v63  ;;  %v3267_v2 = vrot.slane %v3259_v62, %v4969_v1  ;;  %v3274_v50 = vrot.slane %v3260_v17, %v4969_v1 }
 0x86b   :  { %v3224_v30 = vrot.slane %v3217_v0, %v4962_v57  ;;  %v3282_v6 = vshrl.u32 %v3267_v2, 16  ;;  %v3275_v7 = vcombine.high %v3267_v2, %v4804_v59  ;;  %v3298_v47 = vshrl.u32 %v3274_v50, 16 }
 0x86c   :  { %v3276_v16 = vcombine.high %v3274_v50, %v4804_v59 }
 0x86d   :  { %v3225_v3 = vcombine.low %v3216_v43, %v3224_v30  ;;  %v3226_v24 = vcombine.high %v3216_v43, %v3224_v30  ;;  %v3290_v18 = vshrl.u32 %v3275_v7, 16 }
 0x86e   :  { %v3306_v22 = vshrl.u32 %v3276_v16, 16 }
 0x86f   :  { %v3233_v4 = vrot.slane %v3225_v3, %v4969_v1  ;;  %v3240_v9 = vrot.slane %v3226_v24, %v4969_v1 }
 0x871   :  { %v3279_v52 = vpack.i.b16 %v3267_v2, %v3233_v4  ;;  %v3281_v21 = vshrl.u32 %v3233_v4, 16  ;;  %v3241_v28 = vcombine.high %v3233_v4, %v4804_v59  ;;  %v3297_v34 = vshrl.u32 %v3240_v9, 16 }
 0x872   :  { %v3295_v46 = vpack.i.b16 %v3274_v50, %v3240_v9  ;;  %v3242_v14 = vcombine.high %v3240_v9, %v4804_v59 }
 0x873   :  { %3309 = vxpose.xlu0.c.b16.start.end [1/1] (short) (narrow) %v3279_v52, 16  ;;  %v3283_v48 = vpack.i.b16 %v3282_v6, %v3281_v21  ;;  %v3289_v10 = vshrl.u32 %v3241_v28, 16  ;;  %v3287_v13 = vpack.i.b16 %v3275_v7, %v3241_v28  ;;  %v3299_v49 = vpack.i.b16 %v3298_v47, %v3297_v34 }
 0x874   :  { %v3305_v19 = vshrl.u32 %v3242_v14, 16  ;;  %v3303_v20 = vpack.i.b16 %v3276_v16, %v3242_v14 }
 0x875   :  { %3325 = vxpose.xlu1.c.b16.start.end [1/1] (short) (narrow) %v3283_v48, 16  ;;  %v3291_v29 = vpack.i.b16 %v3290_v18, %v3289_v10 }
 0x876   :  { %v3307_v26 = vpack.i.b16 %v3306_v22, %v3305_v19 }
 0x877   :  { %3341 = vxpose.xlu0.c.b16.start.end [1/1] (short) (narrow) %v3287_v13, 16 }
 0x879   :  { %3357 = vxpose.xlu1.c.b16.start.end [1/1] (short) (narrow) %v3291_v29, 16 }
 0x87b   :  { %3373 = vxpose.xlu0.c.b16.start.end [1/1] (short) (narrow) %v3295_v46, 16 }
 0x87d   :  { %3389 = vxpose.xlu1.c.b16.start.end [1/1] (short) (narrow) %v3299_v49, 16 }
 0x888   :  { %3050 = vadd.xlane.f32.xlu0 %v3049_v54 }
 0x88a   :  { %3053 = vadd.xlane.f32.xlu1 %v3052_v56 }
 0x88c   :  { %3056 = vadd.xlane.f32.xlu0 %v3055_v58 }
 0x88e   :  { %3059 = vadd.xlane.f32.xlu1 %v3058_v11 }
 0x8b9   :  { %3405 = vxpose.xlu0.c.b16.start.end [1/1] (short) (narrow) %v3303_v20, 16 }
 0x8bb   :  { %3421 = vxpose.xlu1.c.b16.start.end [1/1] (short) (narrow) %v3307_v26, 16 }
 0x8bd   :  { %2064 = vxpose.xlu0.b32.start.end [1/1] (short) (narrow) %v5327_v25, 8 }
 0x8c1   :  { %2128 = vxpose.xlu0.b32.start.end [1/1] (short) (narrow) %v5331_v53, 8 }
 0x8c5   :  { %2096 = vxpose.xlu1.b32.start.end [1/1] (short) (narrow) %v5329_v38, 8  ;;  %2160 = vxpose.xlu0.b32.start.end [1/1] (short) (narrow) %v5333_v60, 8 }
 0x8d5   :  { %v3317_v41 = vpop.trf.xlu0 }
 0x8d7   :  { %v3333_v31 = vpop.trf.xlu1 }
 0x8d9   :  { %v3349_v32 = vpop.trf.xlu0 }
 0x8db   :  { %v3365_v35 = vpop.trf.xlu1 }
 0x8dd   :  { %v3381_v61 = vpop.trf.xlu0 }
 0x8de   :  { %v3437_v38 = vcombine.low %v3317_v41, %v3381_v61 }
 0x8df   :  { %v3397_v37 = vpop.trf.xlu1 }
 0x8e0   :  { %v3462_v53 = vcombine.low %v3333_v31, %v3397_v37  ;;  %v3444_v17 = vrot.slane %v3437_v38, %v4962_v57 }
 0x8e2   :  { %v3469_v39 = vrot.slane %v3462_v53, %v4962_v57 }
 0x911   :  { %v3051_v45 = vpop.xlane.xlu0 %3050 }
 0x912   :  { %4603 = vrcp.f32 %v3051_v45 }
 0x913   :  { %v3054_v62 = vpop.xlane.xlu1 %3053 }
 0x914   :  { %4605 = vrcp.f32 %v3054_v62 }
 0x915   :  { %v3057_v63 = vpop.xlane.xlu0 %3056 }
 0x916   :  { %4607 = vrcp.f32 %v3057_v63 }
 0x917   :  { %v3060_v0 = vpop.xlane.xlu1 %3059 }
 0x918   :  { %4609 = vrcp.f32 %v3060_v0 }
 0x91b   :  { %v3413_v25 = vpop.trf.xlu0 }
 0x91c   :  { %v3445_v43 = vcombine.low %v3349_v32, %v3413_v25 }
 0x91d   :  { %v3429_v30 = vpop.trf.xlu1 }
 0x91e   :  { %v3470_v60 = vcombine.low %v3365_v35, %v3429_v30  ;;  %v3452_v3 = vrot.slane %v3445_v43, %v4962_v57 }
 0x91f   :  { %v4604_v2 = vpop.eup %4603 }
 0x920   :  { %v3477_v24 = vrot.slane %v3470_v60, %v4962_v57  ;;  %v3065_v4 = vmul.f32 %v4604_v2, %v4596_v44  ;;  %v3453_v7 = vcombine.low %v3444_v17, %v3452_v3 }
 0x921   :  { %v4606_v5 = vpop.eup %4605 }
 0x922   :  { %v3478_v6 = vcombine.low %v3469_v39, %v3477_v24  ;;  %v3069_v52 = vpack.c.bf16 %v3065_v4, %v3065_v4  ;;  %v3066_v21 = vmul.f32 %v4606_v5, %v4598_v42  ;;  %v3460_v12 = vrot.slane %v3453_v7, %v4969_v1 }
 0x923   :  { %v4608_v28 = vpop.eup %4607 }
 0x924   :  { %v3503_v8 = vsel %vm1220_vm3, %v3069_v52, 0  ;;  %v3485_v9 = vrot.slane %v3478_v6, %v4969_v1  ;;  %v3070_v48 = vpack.c.bf16 %v3066_v21, %v3066_v21  ;;  %v3067_v10 = vmul.f32 %v4608_v28, %v4600_v55 }
 0x925   :  { %v4610_v33 = vpop.eup %4609  ;;  %4476 = vmatpush3.bf16.xpose.msra.mxu0 %v3503_v8  ;;  %v3490_v29 = vshrl.u32 %v3460_v12, 16  ;;  %v3461_v49 = vcombine.high %v3460_v12, %v4804_v59 }
 0x926   :  { %4487 = vmatprep.subr.bf16.mxu0 %v4796_v15  ;;  %v3549_v23 = vsel %vm1220_vm3, %v3070_v48, 0  ;;  %v3068_v50 = vmul.f32 %v4610_v33, %v4602_v40  ;;  %v3071_v13 = vpack.c.bf16 %v3067_v10, %v3067_v10  ;;  %v3491_v18 = vshrl.u32 %v3485_v9, 16 }
 0x927   :  { %4482 = vmatpush3.bf16.xpose.msra.mxu1 %v3549_v23  ;;  %v3489_v27 = vpack.i.b16 %v3485_v9, %v3460_v12  ;;  %v3486_v46 = vcombine.high %v3485_v9, %v4804_v59  ;;  %v3496_v55 = vshrl.u32 %v3461_v49, 16 }
 0x928   :  { %4493 = vmatprep.subr.bf16.mxu1 %v4796_v15  ;;  %v3072_v34 = vpack.c.bf16 %v3068_v50, %v3068_v50  ;;  %v3595_v36 = vsel %vm1220_vm3, %v3071_v13, 0  ;;  %v3492_v47 = vpack.i.b16 %v3491_v18, %v3490_v29 }
 0x929   :  { %v3497_v42 = vshrl.u32 %v3486_v46, 16  ;;  %v3495_v54 = vpack.i.b16 %v3486_v46, %v3461_v49 }
 0x92a   :  { %v3641_v44 = vsel %vm1220_vm3, %v3072_v34, 0 }
 0x92b   :  { %v3498_v56 = vpack.i.b16 %v3497_v42, %v3496_v55 }
 0x92c   :  { %4478 = vmatmul.mubr.msk.bf16.vlgmr.msra.gmra.mxu0 %vm1220_vm3, %v3489_v27 }
 0x92d   :  { %4488 = vmatpush3.bf16.xpose.msra.mxu0 %v3595_v36  ;;  %4489 = vmatprep.mubr.msk.bf16.mxu0 %vm4797_vm1, %v4796_v15 }
 0x92e   :  { %4499 = vmatprep.subr.bf16.mxu0 %v4796_v15  ;;  %4484 = vmatmul.mubr.msk.bf16.vlgmr.msra.gmra.mxu1 %vm1220_vm3, %v3492_v47 }
 0x92f   :  { %4494 = vmatpush3.bf16.xpose.msra.mxu1 %v3641_v44  ;;  %4495 = vmatprep.mubr.msk.bf16.mxu1 %vm4797_vm1, %v4796_v15 }
 0x930   :  { %4507 = vmatprep.subr.bf16.mxu1 %v4796_v15 }
 0x934   :  { %4490 = vmatmul.mubr.msk.bf16.vlgmr.msra.gmra.mxu0 %vm1220_vm3, %v3495_v54 }
 0x935   :  { %4503 = vmatprep.mubr.msk.bf16.mxu0 %vm4797_vm1, %v4796_v15 }
 0x936   :  { %4496 = vmatmul.mubr.msk.bf16.vlgmr.msra.gmra.mxu1 %vm1220_vm3, %v3498_v56 }
 0x937   :  { %4511 = vmatprep.mubr.msk.bf16.mxu1 %vm4797_vm1, %v4796_v15 }
 0x939   :  { %v2080_v59 = vpop.trf.xlu0 }
 0x93d   :  { %v2144_v40 = vpop.trf.xlu0 }
 0x93e   :  { %v2192_v14 = vcombine.low %v2080_v59, %v2144_v40  ;;  %v2193_v16 = vcombine.high %v2080_v59, %v2144_v40 }
 0x940   :  { %v2200_v22 = vrot.slane %v2192_v14, %v4962_v57  ;;  %v2207_v26 = vrot.slane %v2193_v16, %v4962_v57 }
 0x941   :  { %v2112_v58 = vpop.trf.xlu1  ;;  %v2176_v11 = vpop.trf.xlu0 }
 0x942   :  { %v2208_v19 = vcombine.low %v2112_v58, %v2176_v11  ;;  %v2209_v20 = vcombine.high %v2112_v58, %v2176_v11 }
 0x944   :  { %v2216_v41 = vrot.slane %v2208_v19, %v4962_v57  ;;  %v2223_v31 = vrot.slane %v2209_v20, %v4962_v57 }
 0x946   :  { %v2224_v32 = vcombine.low %v2200_v22, %v2216_v41  ;;  %v2225_v35 = vcombine.high %v2200_v22, %v2216_v41  ;;  %v2240_v61 = vcombine.low %v2207_v26, %v2223_v31  ;;  %v2241_v37 = vcombine.high %v2207_v26, %v2223_v31 }
 0x948   :  { %v2232_v45 = vrot.slane %v2224_v32, %v4969_v1  ;;  %v2239_v62 = vrot.slane %v2225_v35, %v4969_v1  ;;  %v2248_v63 = vrot.slane %v2240_v61, %v4969_v1  ;;  %v2255_v0 = vrot.slane %v2241_v37, %v4969_v1  ;;  %v4567_v37 = vld [vmem:[%s5563_s6 + $0x8] sm:$0xff]  }
 0x949   :  { %4500 = vmatpush3.bf16.msra.mxu0 %v4567_v37 }
 0x94a   :  { %v2260_v53 = vcombine.low %v2232_v45, %v2239_v62  ;;  %v4317_v43 = vcombine.high %v2232_v45, %v2239_v62  ;;  %v2276_v38 = vcombine.low %v2248_v63, %v2255_v0  ;;  %v4318_v30 = vcombine.high %v2248_v63, %v2255_v0  ;;  %4501 = vmatprep.subr.bf16.mxu0 %v4796_v15 }
 0x94c   :  { %v2267_v39 = vrot.slane %v2260_v53, %v4962_v57  ;;  %v2275_v24 = vrot.slane %v4317_v43, %v4962_v57  ;;  %v2283_v4 = vrot.slane %v2276_v38, %v4962_v57  ;;  %v2291_v5 = vrot.slane %v4318_v30, %v4962_v57 }
 0x94e   :  { %v2292_v28 = vcombine.low %v2267_v39, %v2275_v24  ;;  %v2308_v7 = vcombine.low %v2283_v4, %v2291_v5  ;;  %v2293_v26 = vcombine.high %v2267_v39, %v2275_v24  ;;  %v2309_v41 = vcombine.high %v2283_v4, %v2291_v5 }
 0x950   :  { %v5436_v9 = vrot.slane %v2292_v28, %v4969_v1  ;;  %v5439_v48 = vrot.slane %v2308_v7, %v4969_v1  ;;  %v2323_v53 = vrot.slane %v2309_v41, %v4969_v1  ;;  %v4615_v41 = vld [vmem:[%s5557_s0] sm:$0xff] }
 0x952   :  { %v2324_v23 = vcombine.low %v5436_v9, %v5439_v48 }
 0x9ec   :  { %v3539_v25 = vpop.f32.mrf.mxu0 }
 0x9ed   :  { %3683 = vxpose.xlu1.b32.start.end [1/1] (short) (narrow) %v3539_v25, 8  ;;  %v2307_v25 = vrot.slane %v2293_v26, %v4969_v1 }
 0x9ee   :  { %v4479_v60 = vpop.f32.mrf.mxu0  ;;  %v3585_v2 = vpop.f32.mrf.mxu1 }
 0x9ef   :  { %3715 = vxpose.xlu0.b32.start.end [1/1] (short) (narrow) %v3585_v2, 8  ;;  %v2326_v4 = vcombine.low %v2307_v25, %v2323_v53 }
 0x9f0   :  { %v3542_v3 = vpop.f32.mrf.mxu0  ;;  %v4485_v17 = vpop.f32.mrf.mxu1 }
 0x9f1   :  { %v2325_v17 = vcombine.high %v5436_v9, %v5439_v48  ;;  %v5480_v9 = vld [vmem:[#allocation2] sm:$0xf] }
 0x9f2   :  { %v4480_v6 = vpop.f32.mrf.mxu0  ;;  %v3588_v52 = vpop.f32.mrf.mxu1  ;;  %v5483_v48 = vadd.f32 1.0, %v5480_v9 }
 0x9f4   :  { %v3631_v21 = vpop.f32.mrf.mxu0  ;;  %v4486_v8 = vpop.f32.mrf.mxu1 }
 0x9f5   :  { %3747 = vxpose.xlu1.b32.start.end [1/1] (short) (narrow) %v3631_v21, 8 }
 0x9f6   :  { %v4491_v33 = vpop.f32.mrf.mxu0  ;;  %v3677_v10 = vpop.f32.mrf.mxu1 }
 0x9f7   :  { %3779 = vxpose.xlu0.b32.start.end [1/1] (short) (narrow) %v3677_v10, 8 }
 0x9f8   :  { %v3634_v12 = vpop.f32.mrf.mxu0  ;;  %v4497_v50 = vpop.f32.mrf.mxu1 }
 0x9fa   :  { %v4492_v13 = vpop.f32.mrf.mxu0  ;;  %v3680_v18 = vpop.f32.mrf.mxu1 }
 0x9fc   :  { %v4498_v27 = vpop.f32.mrf.mxu1 }
 0xa69   :  { %v3699_v29 = vpop.trf.xlu1 }
 0xa6b   :  { %v3731_v34 = vpop.trf.xlu0 }
 0xa71   :  { %v3763_v36 = vpop.trf.xlu1 }
 0xa72   :  { %v3811_v46 = vcombine.low %v3699_v29, %v3763_v36  ;;  %v3812_v47 = vcombine.high %v3699_v29, %v3763_v36 }
 0xa73   :  { %v3795_v49 = vpop.trf.xlu0 }
 0xa74   :  { %v3827_v44 = vcombine.low %v3731_v34, %v3795_v49  ;;  %v3828_v42 = vcombine.high %v3731_v34, %v3795_v49  ;;  %v3819_v54 = vrot.slane %v3811_v46, %v4962_v57  ;;  %v3826_v55 = vrot.slane %v3812_v47, %v4962_v57 }
 0xa76   :  { %v3835_v56 = vrot.slane %v3827_v44, %v4962_v57  ;;  %v3842_v59 = vrot.slane %v3828_v42, %v4962_v57 }
 0xa78   :  { %v3843_v40 = vcombine.low %v3819_v54, %v3835_v56  ;;  %v3844_v58 = vcombine.high %v3819_v54, %v3835_v56  ;;  %v3859_v11 = vcombine.low %v3826_v55, %v3842_v59  ;;  %v3860_v14 = vcombine.high %v3826_v55, %v3842_v59  ;;  %v5486_v55 = vld [vmem:[#allocation2 + $0x4] sm:$0xf]  ;;  %v4333_v56 = vld [vmem:[#allocation10] ss:$0 sm:$0xff] }
 0xa7a   :  { %v3851_v16 = vrot.slane %v3843_v40, %v4969_v1  ;;  %v3858_v19 = vrot.slane %v3844_v58, %v4969_v1  ;;  %v3867_v20 = vrot.slane %v3859_v11, %v4969_v1  ;;  %v3874_v22 = vrot.slane %v3860_v14, %v4969_v1 }
 0xa7b   :  { %v5490_v40 = vadd.f32 1.0, %v5486_v55  ;;  %v4048_v58 = vsub.s32 1, %v4959_v51 }
 0xa7c   :  { %v3879_v31 = vcombine.low %v3851_v16, %v3858_v19  ;;  %v4331_v32 = vcombine.high %v3851_v16, %v3858_v19  ;;  %v3895_v35 = vcombine.low %v3867_v20, %v3874_v22  ;;  %v4332_v61 = vcombine.high %v3867_v20, %v3874_v22 }
 0xa7d   :  { %v4049_v22 = vrot.slane %v5480_v9, %v4048_v58 }
 0xa7e   :  { %v3886_v45 = vrot.slane %v3879_v31, %v4962_v57  ;;  %v3894_v62 = vrot.slane %v4331_v32, %v4962_v57  ;;  %v3902_v63 = vrot.slane %v3895_v35, %v4962_v57  ;;  %v3910_v0 = vrot.slane %v4332_v61, %v4962_v57  ;;  %v4568_v57 = vld [vmem:[%s5563_s6] sm:$0xff]   ;;  %s4807_s6 = smov 24  }
 0xa7f   :  { %4502 = vmatpush3.bf16.msra.mxu0 %v4568_v57 }
 0xa80   :  { %v3912_v43 = vcombine.high %v3886_v45, %v3894_v62  ;;  %v3928_v38 = vcombine.high %v3902_v63, %v3910_v0  ;;  %v3911_v30 = vcombine.low %v3886_v45, %v3894_v62  ;;  %v3927_v60 = vcombine.low %v3902_v63, %v3910_v0  ;;  %4515 = vmatprep.subr.bf16.mxu0 %v4796_v15  ;;  %v4616_v62 = vld [vmem:[%s5557_s0 + $0x8] sm:$0xff] }
 0xa81   :  { %v4053_v45 = vrot.slane %v5486_v55, %v4048_v58 }
 0xa82   :  { %v3926_v2 = vrot.slane %v3912_v43, %v4969_v1  ;;  %v3942_v3 = vrot.slane %v3928_v38, %v4969_v1  ;;  %v3919_v39 = vrot.slane %v3911_v30, %v4969_v1  ;;  %v3935_v24 = vrot.slane %v3927_v60, %v4969_v1 }
 0xa83   :  { %v2327_v1 = vcombine.high %v2307_v25, %v2323_v53 }
 0xa84   :  { %v3945_v5 = vcombine.low %v3926_v2, %v3942_v3  ;;  %v3944_v6 = vcombine.high %v3919_v39, %v3935_v24  ;;  %v3943_v52 = vcombine.low %v3919_v39, %v3935_v24  ;;  %v3946_v7 = vcombine.high %v3926_v2, %v3942_v3 }
 0xa86   :  { %v4555_v21 = vpack.i.bf16 %v3945_v5, %v2326_v4  ;;  %v4550_v28 = vpack.i.bf16 %v3944_v6, %v2325_v17  ;;  %v4560_v8 = vpack.i.bf16 %v3946_v7, %v2327_v1  ;;  %v4569_v5 = vld [vmem:[%s5567_s10 + $0x8] sm:$0xff]   ;;  %v4570_v17 = vld [vmem:[%s5567_s10] sm:$0xff]   ;;  %v4571_v6 = vld [vmem:[%s5569_s12 + $0x18] sm:$0xff]  }
 0xa87   :  { %4508 = vmatpush3.bf16.msra.mxu1 %v4569_v5 }
 0xa88   :  { %4556 = vrot.lane.b32.xlu0 %v4555_v21, %s4805_s28  ;;  %4551 = vrot.lane.b32.xlu1 %v4550_v28, %s4806_s29 }
 0xa89   :  { %4509 = vmatprep.subr.bf16.mxu1 %v4796_v15 }
 0xa8b   :  { %4510 = vmatpush3.bf16.msra.mxu1 %v4570_v17 }
 0xa8c   :  { %4561 = vrot.lane.b32.xlu1 %v4560_v8, %s4807_s6 }
 0xafa   :  { %v4557_v33 = vpop.permute.xlu0 %4556  ;;  %v4552_v10 = vpop.permute.xlu1 %4551 }
 0xafb   :  { %v4554_v12 = vunpack.i.h.bf16 %v4552_v10  ;;  %v4553_v50 = vunpack.i.l.bf16 %v4552_v10  ;;  %v4559_v13 = vunpack.i.h.bf16 %v4557_v33  ;;  %v4558_v18 = vunpack.i.l.bf16 %v4557_v33 }
 0xafd   :  { %v2340_v27 = vsel %vm1220_vm3, %v2324_v23, %v4553_v50  ;;  %v3959_v29 = vsel %vm1220_vm3, %v3943_v52, %v4554_v12  ;;  %v4036_v23 = vsub.s32 0, %v4959_v51  ;;  %v4337_v12 = vld [vmem:[#allocation11] ss:$0 sm:$0xff] }
 0xafe   :  { %v4562_v34 = vpop.permute.xlu1 %4561  ;;  %v2342_v47 = vsel %vm2341_vm4, %v2340_v27, %v4558_v18  ;;  %v3960_v49 = vsel %vm2341_vm4, %v3959_v29, %v4559_v13  ;;  %v4338_v27 = vld [vmem:[#allocation13] ss:$0 sm:$0xff] }
 0xaff   :  { %v4564_v36 = vunpack.i.h.bf16 %v4562_v34  ;;  %v4563_v46 = vunpack.i.l.bf16 %v4562_v34  ;;  %v4037_v59 = vrot.slane %v5483_v48, %v4036_v23  ;;  %v4041_v20 = vrot.slane %v5490_v40, %v4036_v23 }
 0xb01   :  { %v2344_v44 = vsel %vm2343_vm5, %v2342_v47, %v4563_v46  ;;  %v3961_v42 = vsel %vm2343_vm5, %v3960_v49, %v4564_v36  ;;  %v4572_v47 = vld [vmem:[%s5569_s12 + $0x10] sm:$0xff]   ;;  %v4573_v49 = vld [vmem:[%s5569_s12 + $0x8] sm:$0xff]  }
 0xb02   :  { %v3962_v54 = vpack.c.bf16 %v3961_v42, %v2344_v44  ;;  %v4574_v44 = vld [vmem:[%s5569_s12] sm:$0xff]  }
 0xb03   :  { %v4339_v42 = vld [vmem:[%s5568_s11] ss:$0 sm:$0xff]  ;;  %s4808_s11 = smov [#allocation14]  }
 0xb04   :  { %4504 = vmatmul.mubr.msk.bf16.vlgmr.msra.gmra.mxu0 %vm136_vm0, %v3962_v54 }
 0xb05   :  { %4523 = vmatprep.mubr.msk.bf16.mxu0 %vm4797_vm1, %v4796_v15  ;;  %4516 = vmatpush3.bf16.msra.mxu0 %v4571_v6 }
 0xb06   :  { %4517 = vmatprep.subr.bf16.mxu0 %v4796_v15 }
 0xb09   :  { %4518 = vmatpush3.bf16.msra.mxu0 %v4572_v47 }
 0xb0a   :  { %4519 = vmatprep.subr.bf16.mxu0 %v4796_v15 }
 0xb0d   :  { %4520 = vmatpush3.bf16.msra.mxu0 %v4573_v49 }
 0xb0e   :  { %4521 = vmatprep.subr.bf16.mxu0 %v4796_v15  ;;  %v4257_v15 = vsub.s32 2, %v4959_v51 }
 0xb11   :  { %4522 = vmatpush3.bf16.msra.mxu0 %v4574_v44 }
 0xbc4   :  { %v4023_v11 = vpop.f32.mrf.mxu0 }
 0xbc5   :  { %v4024_v14 = vadd.f32 %v4333_v56, %v4023_v11 }
 0xbc6   :  { %v4505_v16 = vpop.f32.mrf.mxu0 }
 0xbc7   :  { %v4042_v19 = vmul.f32 %v4037_v59, %v4024_v14 }
 0xbc8   :  { %v4026_v26 = vpop.f32.mrf.mxu0 }
 0xbc9   :  { %v4044_v31 = vadd.f32 %v4615_v41, %v4042_v19  ;;  %v4027_v32 = vadd.f32 %v4333_v56, %v4026_v26  ;;  %v4269_v26 = vsub.s32 3, %v4959_v51 }
 0xbca   :  { %v4506_v35 = vpop.f32.mrf.mxu0 }
 0xbcb   :  { %v4043_v61 = vmul.f32 %v4041_v20, %v4027_v32  ;;  %v5498_v37 = vadd.f32 %v4049_v22, %v4044_v31  ;;  %v4343_v20 = vld [vmem:[%s5570_s13] ss:$0 sm:$0xff]  ;;  %v4258_v22 = vrot.slane %v5483_v48, %v4257_v15  ;;  %s4284_s13 = sshll.u32 %s4808_s11, 4  ;;  %s4285_s13 = int_to_ptr.vmem [resolvable:$true] %s4284_s13 }
 0xbcc   :  { %s4757_s25 = scalar_lea.vmem %s4285_s13, 256  ;;  %p4762_p8 = scmp.lt.s32.totalorder %s4285_s13, %s4285_s13 }
 0xbcd   :  { %v4045_v63 = vadd.f32 %v4616_v62, %v4043_v61  ;;  %v4058_v0 = vsel %vm136_vm0, %v5498_v37, 0.0  ;;  %v4270_v61 = vrot.slane %v5480_v9, %v4269_v26  ;;  %p4758_p7 = scmp.ne.s32.totalorder %s4285_s13, %s4757_s25  ;;  %p4763_p9 = scmp.lt.s32.totalorder %s4757_s25, %s4757_s25 }
 0xbce   :  { %4059 = vadd.xlane.f32.xlu1 %v4058_v0 }
 0xbcf   :  { %v5506_v25 = vadd.f32 %v4053_v45, %v4045_v63  ;;  %v4262_v45 = vrot.slane %v5490_v40, %v4257_v15  ;;  %p4764_p10 = por %p4763_p9, %p4762_p8 }
 0xbd1   :  { %v4061_v53 = vsel %vm136_vm0, %v5506_v25, 0.0  ;;  %p4765_p11 = pnand %p4764_p10, %p4758_p7 }
 0xbd2   :  { %4062 = vadd.xlane.f32.xlu0 %v4061_v53 }
 0xc57   :  { %v4060_v43 = vpop.xlane.xlu1 %4059 }
 0xc58   :  { %v4064_v38 = vmul.f32 0.03125, %v4060_v43 }
 0xc5a   :  { %v4066_v30 = vsub.f32 %v5498_v37, %v4064_v38 }
 0xc5b   :  { %v4063_v60 = vpop.xlane.xlu0 %4062 }
 0xc5c   :  { %v4065_v2 = vmul.f32 0.03125, %v4063_v60  ;;  %v4068_v3 = vmul.f32 %v4066_v30, %v4066_v30 }
 0xc5e   :  { %v4067_v39 = vsub.f32 %v5506_v25, %v4065_v2  ;;  %v4070_v24 = vsel %vm136_vm0, %v4068_v3, 0.0 }
 0xc5f   :  { %4071 = vadd.xlane.f32.xlu1 %v4070_v24 }
 0xc60   :  { %v4069_v57 = vmul.f32 %v4067_v39, %v4067_v39 }
 0xc62   :  { %v4073_v4 = vsel %vm136_vm0, %v4069_v57, 0.0 }
 0xc63   :  { %4074 = vadd.xlane.f32.xlu0 %v4073_v4 }
 0xce8   :  { %v4072_v52 = vpop.xlane.xlu1 %4071 }
 0xce9   :  { %v4076_v21 = vmul.f32 0.03125, %v4072_v52 }
 0xceb   :  { %v4078_v28 = vadd.f32 1e-05, %v4076_v21 }
 0xcec   :  { %v4075_v7 = vpop.xlane.xlu0 %4074 }
 0xced   :  { %4611 = vrsqrt.f32 %v4078_v28  ;;  %v4077_v1 = vmul.f32 0.03125, %v4075_v7 }
 0xcef   :  { %v4079_v8 = vadd.f32 1e-05, %v4077_v1 }
 0xcf1   :  { %4613 = vrsqrt.f32 %v4079_v8 }
 0xcfa   :  { %v4612_v33 = vpop.eup %4611 }
 0xcfb   :  { %v4082_v10 = vmul.f32 %v4612_v33, %v4066_v30  ;;  %v4274_v30 = vrot.slane %v5486_v55, %v4269_v26 }
 0xcfd   :  { %v4090_v18 = vmul.f32 %v4337_v12, %v4082_v10 }
 0xcfe   :  { %v4614_v50 = vpop.eup %4613 }
 0xcff   :  { %v4083_v13 = vmul.f32 %v4614_v50, %v4067_v39  ;;  %v4098_v34 = vadd.f32 %v4338_v27, %v4090_v18 }
 0xd01   :  { %v4091_v29 = vmul.f32 %v4337_v12, %v4083_v13 }
 0xd03   :  { %v4099_v36 = vadd.f32 %v4338_v27, %v4091_v29 }
 0xd05   :  { %v4100_v46 = vpack.c.bf16 %v4099_v36, %v4098_v34 }
 0xd07   :  { %4512 = vmatmul.mubr.msk.bf16.vlgmr.msra.gmra.mxu1 %vm136_vm0, %v4100_v46 }
 0xdc7   :  { %v4161_v54 = vpop.f32.mrf.mxu1 }
 0xdc8   :  { %v4162_v56 = vadd.f32 %v4339_v42, %v4161_v54 }
 0xdc9   :  { %v4513_v23 = vpop.f32.mrf.mxu1 }
 0xdca   :  { %v4168_v14 = vmax.f32 %v4162_v56, 0.0 }
 0xdcb   :  { %v4164_v59 = vpop.f32.mrf.mxu1 }
 0xdcc   :  { %v4165_v58 = vadd.f32 %v4339_v42, %v4164_v59 }
 0xdcd   :  { %v4514_v11 = vpop.f32.mrf.mxu1 }
 0xdce   :  { %v4169_v16 = vmax.f32 %v4165_v58, 0.0 }
 0xdd0   :  { %v4170_v19 = vpack.c.bf16 %v4169_v16, %v4168_v14 }
 0xdd2   :  { %4524 = vmatmul.mubr.msk.bf16.vlgmr.msra.gmra.mxu0 %vm4210_vm6, %v4170_v19 }
 0xe92   :  { %v4248_v41 = vpop.f32.mrf.mxu0 }
 0xe93   :  { %v4249_v31 = vadd.f32 %v4343_v20, %v4248_v41 }
 0xe94   :  { %v4525_v32 = vpop.f32.mrf.mxu0 }
 0xe95   :  { %v4263_v35 = vmul.f32 %v4258_v22, %v4249_v31 }
 0xe96   :  { %v4251_v62 = vpop.f32.mrf.mxu0 }
 0xe97   :  { %v4265_v63 = vadd.f32 %v4263_v35, %v5498_v37  ;;  %v4252_v0 = vadd.f32 %v4343_v20, %v4251_v62 }
 0xe98   :  { %v4526_v53 = vpop.f32.mrf.mxu0 }
 0xe99   :  { %v4275_v43 = vadd.f32 %v4270_v61, %v4265_v63  ;;  %v4264_v38 = vmul.f32 %v4262_v45, %v4252_v0 }
 0xe9b   :  { %4277 = vst.msk [vmem:[#allocation14] sm:$0xff] %vm136_vm0, %v4275_v43  ;;  %v4266_v51 = vadd.f32 %v4264_v38, %v5506_v25 }
 0xe9d   :  { %v4276_v48 = vadd.f32 %v4274_v30, %v4266_v51 }
 0xe9f   :  { %4278 = vst.msk [vmem:[#allocation14 + $0x8] sm:$0xff] %vm136_vm0, %v4276_v48 }
 0xea0   :  { %4768 = shalt.err (!%p4765_p11)
}
 0xea1   :  { %s4809_s5 = smov 128  }
 0xea2   :  { %4290 = dma.vmem_to_hbm [thread:$0]  %s4285_s13, 256, %s5571_s14, [#allocation4], %s4809_s5, %s4809_s5, %s4806_s29  }
 0xea3   :  { %4785 = dma.done.wait [#allocation4], 256  }
 0xea4   :  { %4786 = vsyncadd [#allocation4], 4294967040 }
 0xea5   :  { %4294 = vsyncpa [#allocation3], 1 }
 0xea6   :  { %4295 = vsyncpa [#allocation6], 1 }
 0xea7   :  { %4296 = vsyncpa [#allocation9], 1 }
 0xea8   :  { %4297 = vsyncpa [#allocation12], 1 }
 0xea9   :  { %4298 = vsyncpa [#allocation4], 1 }

// kernel: tpu_custom_call.1
= control target key start
LH: loop header
LB: loop body
LE: loop exit
PB: predicated region body
PF: predicated region fallthrough
CT: control target
= control target key end

     0   :  { %19 = vsyncpa [#allocation3], 0  ;;  %s5557_s0 = inlined_call_operand.vmem [shape: f32[2,8,32], index: 0, kind: input, shape index: {}]   ;;  %s5558_s1 = inlined_call_operand.hbm [shape: f32[2,4,32], index: 1, kind: input, shape index: {}]   ;;  %s5559_s2 = inlined_call_operand.hbm [shape: f32[1,32], index: 2, kind: input, shape index: {}]   ;;  %s5560_s3 = inlined_call_operand.hbm [shape: f32[1,32], index: 3, kind: input, shape index: {}]   ;;  %s5561_s4 = inlined_call_operand.vmem [shape: bf16[32,96], index: 4, kind: input, shape index: {}]   ;;  %s5562_s5 = inlined_call_operand.hbm [shape: f32[1,96], index: 5, kind: input, shape index: {}]   ;;  %s5563_s6 = inlined_call_operand.vmem [shape: bf16[32,32], index: 6, kind: input, shape index: {}]   ;;  %s5564_s7 = inlined_call_operand.hbm [shape: f32[1,32], index: 7, kind: input, shape index: {}]   ;;  %s5565_s8 = inlined_call_operand.hbm [shape: f32[1,32], index: 8, kind: input, shape index: {}]   ;;  %s5566_s9 = inlined_call_operand.hbm [shape: f32[1,32], index: 9, kind: input, shape index: {}]   ;;  %s5567_s10 = inlined_call_operand.vmem [shape: bf16[32,64], index: 10, kind: input, shape index: {}]   ;;  %s5568_s11 = inlined_call_operand.vmem [shape: f32[1,64], index: 11, kind: input, shape index: {}]   ;;  %s5569_s12 = inlined_call_operand.vmem [shape: bf16[64,32], index: 12, kind: input, shape index: {}]   ;;  %s5570_s13 = inlined_call_operand.vmem [shape: f32[1,32], index: 13, kind: input, shape index: {}]   ;;  %s5571_s14 = inlined_call_operand.hbm [shape: f32[2,8,32], index: 14, kind: output, shape index: {}]  }
   0x1   :  { %20 = vsyncpa [#allocation6], 0 }
   0x2   :  { %21 = vsyncpa [#allocation9], 0 }
   0x3   :  { %22 = vsyncpa [#allocation12], 0 }
   0x4   :  { %23 = vsyncpa [#allocation4], 0  ;;  %s4787_s29 = smov [#allocation5]   ;;  %s4788_s15 = smov [#allocation8]  }
   0x5   :  { %s44_s30 = sshll.u32 %s4787_s29, 4  ;;  %s66_s16 = sshll.u32 %s4788_s15, 4  ;;  %s45_s30 = int_to_ptr.vmem [resolvable:$true] %s44_s30  ;;  %s67_s16 = int_to_ptr.vmem [resolvable:$true] %s66_s16 }
   0x6   :  { %s4625_s17 = scalar_lea.vmem %s45_s30, 16  ;;  %s4629_s18 = scalar_lea.vmem %s45_s30, 32 }
   0x7   :  { %p4626_p0 = scmp.ne.s32.totalorder %s45_s30, %s4625_s17  ;;  %p4630_p1 = scmp.lt.s32.totalorder %s45_s30, %s45_s30 }
   0x8   :  { %p4631_p2 = scmp.lt.s32.totalorder %s4629_s18, %s4625_s17 }
   0xa   :  { %p4632_p3 = por %p4631_p2, %p4630_p1 }
   0xc   :  { %p4633_p4 = pnand %p4632_p3, %p4626_p0 }
   0xe   :  { %4636 = shalt.err (!%p4633_p4)
}
   0xf   :  { %47 = dma.hbm_to_vmem [thread:$0]  %s5559_s2, 16, %s45_s30, [#allocation6]  }
  0x10   :  { %s4645_s21 = scalar_lea.vmem %s67_s16, 16  ;;  %s4649_s22 = scalar_lea.vmem %s67_s16, 32 }
  0x11   :  { %p4646_p5 = scmp.ne.s32.totalorder %s67_s16, %s4645_s21  ;;  %p4650_p6 = scmp.lt.s32.totalorder %s67_s16, %s67_s16 }
  0x12   :  { %p4651_p7 = scmp.lt.s32.totalorder %s4649_s22, %s4645_s21 }
  0x14   :  { %p4652_p8 = por %p4651_p7, %p4650_p6 }
  0x16   :  { %p4653_p9 = pnand %p4652_p8, %p4646_p5 }
  0x18   :  { %4656 = shalt.err (!%p4653_p9)
}
  0x19   :  { %69 = dma.hbm_to_vmem [thread:$0]  %s5562_s5, 16, %s67_s16, [#allocation9]  }
  0x1a   :  { %s4789_s25 = smov [#allocation11]   ;;  %s4790_s27 = smov [#allocation2]  }
  0x1b   :  { %s88_s26 = sshll.u32 %s4789_s25, 4  ;;  %s31_s28 = sshll.u32 %s4790_s27, 4  ;;  %s89_s26 = int_to_ptr.vmem [resolvable:$true] %s88_s26  ;;  %s32_s28 = int_to_ptr.vmem [resolvable:$true] %s31_s28 }
  0x1c   :  { %s4665_s29 = scalar_lea.vmem %s89_s26, 16  ;;  %s4669_s2 = scalar_lea.vmem %s89_s26, 32 }
  0x1d   :  { %p4666_p10 = scmp.ne.s32.totalorder %s89_s26, %s4665_s29  ;;  %p4670_p11 = scmp.lt.s32.totalorder %s89_s26, %s89_s26 }
  0x1e   :  { %p4671_p12 = scmp.lt.s32.totalorder %s4669_s2, %s4665_s29 }
  0x20   :  { %p4672_p13 = por %p4671_p12, %p4670_p11 }
  0x22   :  { %p4673_p0 = pnand %p4672_p13, %p4666_p10 }
  0x24   :  { %4676 = shalt.err (!%p4673_p0)
}
  0x25   :  { %91 = dma.hbm_to_vmem [thread:$0]  %s5565_s8, 16, %s89_s26, [#allocation12]  }
  0x26   :  { %s4685_s17 = scalar_lea.vmem %s32_s28, 128  ;;  %p4690_p2 = scmp.lt.s32.totalorder %s32_s28, %s32_s28 }
  0x27   :  { %p4686_p1 = scmp.ne.s32.totalorder %s32_s28, %s4685_s17  ;;  %p4691_p3 = scmp.lt.s32.totalorder %s4685_s17, %s4685_s17 }
  0x29   :  { %p4692_p4 = por %p4691_p3, %p4690_p2 }
  0x2b   :  { %p4693_p5 = pnand %p4692_p4, %p4686_p1 }
  0x2d   :  { %4696 = shalt.err (!%p4693_p5)
}
  0x2e   :  { %s4791_s5 = smov 64   ;;  %s4792_s16 = smov 4  }
  0x2f   :  { %37 = dma.hbm_to_vmem [thread:$0]  %s5558_s1, 128, %s32_s28, [#allocation3], %s4791_s5, %s4791_s5, %s4792_s16  }
  0x30   :  { %s4793_s20 = smov [#allocation7]   ;;  %s4794_s22 = smov [#allocation10]  }
  0x31   :  { %s54_s21 = sshll.u32 %s4793_s20, 4  ;;  %s78_s23 = sshll.u32 %s4794_s22, 4  ;;  %s55_s21 = int_to_ptr.vmem [resolvable:$true] %s54_s21  ;;  %s79_s23 = int_to_ptr.vmem [resolvable:$true] %s78_s23 }
  0x32   :  { %s4705_s8 = scalar_lea.vmem %s55_s21, 16  ;;  %s4709_s24 = scalar_lea.vmem %s55_s21, 32 }
  0x33   :  { %p4706_p6 = scmp.ne.s32.totalorder %s55_s21, %s4705_s8  ;;  %p4710_p7 = scmp.lt.s32.totalorder %s55_s21, %s55_s21 }
  0x34   :  { %p4711_p8 = scmp.lt.s32.totalorder %s4709_s24, %s4705_s8 }
  0x36   :  { %p4712_p9 = por %p4711_p8, %p4710_p7 }
  0x38   :  { %p4713_p10 = pnand %p4712_p9, %p4706_p6 }
  0x3a   :  { %4716 = shalt.err (!%p4713_p10)
}
  0x3b   :  { %57 = dma.hbm_to_vmem [thread:$0]  %s5560_s3, 16, %s55_s21, [#allocation6]  }
  0x3c   :  { %s4725_s27 = scalar_lea.vmem %s79_s23, 16  ;;  %s4729_s1 = scalar_lea.vmem %s79_s23, 32 }
  0x3d   :  { %p4726_p11 = scmp.ne.s32.totalorder %s79_s23, %s4725_s27  ;;  %p4730_p12 = scmp.lt.s32.totalorder %s79_s23, %s79_s23 }
  0x3e   :  { %p4731_p13 = scmp.lt.s32.totalorder %s4729_s1, %s4725_s27 }
  0x40   :  { %p4732_p0 = por %p4731_p13, %p4730_p12 }
  0x42   :  { %p4733_p1 = pnand %p4732_p0, %p4726_p11 }
  0x44   :  { %4736 = shalt.err (!%p4733_p1)
}
  0x45   :  { %81 = dma.hbm_to_vmem [thread:$0]  %s5564_s7, 16, %s79_s23, [#allocation9]  }
  0x46   :  { %s4795_s2 = smov [#allocation13]  }
  0x47   :  { %s98_s30 = sshll.u32 %s4795_s2, 4  ;;  %s99_s30 = int_to_ptr.vmem [resolvable:$true] %s98_s30 }
  0x48   :  { %s4745_s15 = scalar_lea.vmem %s99_s30, 16  ;;  %s4749_s17 = scalar_lea.vmem %s99_s30, 32 }
  0x49   :  { %p4746_p2 = scmp.ne.s32.totalorder %s99_s30, %s4745_s15  ;;  %p4750_p3 = scmp.lt.s32.totalorder %s99_s30, %s99_s30 }
  0x4a   :  { %p4751_p4 = scmp.lt.s32.totalorder %s4749_s17, %s4745_s15 }
  0x4c   :  { %p4752_p5 = por %p4751_p4, %p4750_p3 }
  0x4e   :  { %p4753_p6 = pnand %p4752_p5, %p4746_p2 }
  0x50   :  { %4756 = shalt.err (!%p4753_p6)
}
  0x51   :  { %101 = dma.hbm_to_vmem [thread:$0]  %s5566_s9, 16, %s99_s30, [#allocation12]  }
  0x52   :  { %4777 = dma.done.wait [#allocation3], 128  }
  0x53   :  { %4778 = vsyncadd [#allocation3], 4294967168 }
  0x54   :  { %4779 = dma.done.wait [#allocation6], 32  }
  0x55   :  { %4780 = vsyncadd [#allocation6], 4294967264 }
  0x56   :  { %4781 = dma.done.wait [#allocation9], 32  }
  0x57   :  { %4782 = vsyncadd [#allocation9], 4294967264 }
  0x58   :  { %4783 = dma.done.wait [#allocation12], 32  }
  0x59   :  { %4784 = vsyncadd [#allocation12], 4294967264  ;;  %vm136_vm0 = vcmask 261120   ;;  %v132_v0 = vld [vmem:[%s5557_s0] sm:$0xff]  ;;  %v133_v1 = vld [vmem:[%s5557_s0 + $0x8] sm:$0xff]  ;;  %v4796_v15 = vmov 0.0   ;;  %v273_v47 = vlaneseq }
  0x5a   :  { %v137_v2 = vsel %vm136_vm0, %v132_v0, 0.0  ;;  %v140_v3 = vsel %vm136_vm0, %v133_v1, 0.0  ;;  %v4565_v14 = vld [vmem:[%s5561_s4 + $0x8] sm:$0xff]   ;;  %4395 = vmatprep.subr.bf16.mxu0 %v4796_v15  ;;  %vm4797_vm1 = vmmov 0   ;;  %v4566_v16 = vld [vmem:[%s5561_s4] sm:$0xff]   ;;  %4403 = vmatprep.subr.bf16.mxu1 %v4796_v15  ;;  %s4798_s4 = smov 112  }
  0x5b   :  { %138 = vadd.xlane.f32.xlu0 %v137_v2  ;;  %4399 = vmatprep.mubr.msk.bf16.mxu0 %vm4797_vm1, %v4796_v15  ;;  %v4299_v25 = vld [vmem:[#allocation5] ss:$0 sm:$0xff]  ;;  %v4300_v29 = vld [vmem:[#allocation7] ss:$0 sm:$0xff]  ;;  %v4301_v34 = vld [vmem:[#allocation8] ss:$0 sm:$0xff] }
  0x5c   :  { %4396 = vmatpush3.bf16.msra.mxu0 %v4565_v14  ;;  %4405 = vmatprep.mubr.msk.bf16.mxu1 %vm4797_vm1, %v4796_v15  ;;  %s4799_s8 = smov 120   ;;  %s4800_s24 = smov 104   ;;  %v4802_v45 = vmov 1983009808   ;;  %v4959_v51 = vshrl.u32 %v273_v47, 7  ;;  %vm1224_vm2 = vcmask 1043456  }
  0x5d   :  { %4397 = vmatprep.subr.bf16.mxu0 %v4796_v15  ;;  %s4801_s25 = smov 96   ;;  %v271_v46 = vunpack.c.l.s4 %v4802_v45  ;;  %v4803_v52 = vmov 1934713408   ;;  %vm1220_vm3 = vcmask 64512   ;;  %s4805_s28 = smov 16   ;;  %vm2341_vm4 = vcmask 130048  }
  0x5e   :  { %v303_v53 = vunpack.c.l.s4 %v4803_v52  ;;  %s4806_s29 = smov 8   ;;  %vm2343_vm5 = vcmask 195584   ;;  %vm4210_vm6 = vcmask 523264  }
  0x5f   :  { %141 = vadd.xlane.f32.xlu0 %v140_v3  ;;  %v272_v50 = vunpack.c.0.s8 %v271_v46 }
  0x60   :  { %4398 = vmatpush3.bf16.msra.mxu0 %v4566_v16  ;;  %v304_v58 = vunpack.c.0.s8 %v303_v53 }
  0x61   :  { %4427 = vmatprep.subr.bf16.mxu0 %v4796_v15  ;;  %v4962_v57 = vsub.s32 %v272_v50, %v4959_v51 }
  0xe4   :  { %v139_v4 = vpop.xlane.xlu0 %138 }
  0xe5   :  { %v144_v5 = vmul.f32 0.03125, %v139_v4 }
  0xe7   :  { %v146_v6 = vsub.f32 %v132_v0, %v144_v5 }
  0xe8   :  { %v142_v7 = vpop.xlane.xlu0 %141 }
  0xe9   :  { %v145_v8 = vmul.f32 0.03125, %v142_v7  ;;  %v148_v9 = vmul.f32 %v146_v6, %v146_v6 }
  0xeb   :  { %v147_v10 = vsub.f32 %v133_v1, %v145_v8  ;;  %v150_v11 = vsel %vm136_vm0, %v148_v9, 0.0  ;;  %v4969_v1 = vsub.s32 %v304_v58, %v4959_v51 }
  0xec   :  { %151 = vadd.xlane.f32.xlu1 %v150_v11 }
  0xed   :  { %v149_v12 = vmul.f32 %v147_v10, %v147_v10 }
  0xef   :  { %v153_v13 = vsel %vm136_vm0, %v149_v12, 0.0 }
  0xf0   :  { %154 = vadd.xlane.f32.xlu1 %v153_v13 }
 0x175   :  { %v152_v17 = vpop.xlane.xlu1 %151 }
 0x176   :  { %v156_v18 = vmul.f32 0.03125, %v152_v17 }
 0x178   :  { %v158_v19 = vadd.f32 1e-05, %v156_v18 }
 0x179   :  { %v155_v20 = vpop.xlane.xlu1 %154 }
 0x17a   :  { %4575 = vrsqrt.f32 %v158_v19  ;;  %v157_v21 = vmul.f32 0.03125, %v155_v20 }
 0x17c   :  { %v159_v22 = vadd.f32 1e-05, %v157_v21 }
 0x17e   :  { %4577 = vrsqrt.f32 %v159_v22 }
 0x187   :  { %v4576_v23 = vpop.eup %4575 }
 0x188   :  { %v162_v24 = vmul.f32 %v4576_v23, %v146_v6 }
 0x18a   :  { %v170_v28 = vmul.f32 %v4299_v25, %v162_v24 }
 0x18b   :  { %v4578_v26 = vpop.eup %4577 }
 0x18c   :  { %v163_v27 = vmul.f32 %v4578_v26, %v147_v10  ;;  %v178_v31 = vadd.f32 %v4300_v29, %v170_v28 }
 0x18e   :  { %v171_v30 = vmul.f32 %v4299_v25, %v163_v27 }
 0x190   :  { %v179_v32 = vadd.f32 %v4300_v29, %v171_v30 }
 0x192   :  { %v180_v33 = vpack.c.bf16 %v179_v32, %v178_v31 }
 0x194   :  { %4400 = vmatmul.mubr.msk.bf16.vlgmr.msra.gmra.mxu0 %vm136_vm0, %v180_v33 }
 0x195   :  { %4429 = vmatprep.mubr.msk.bf16.mxu0 %vm4797_vm1, %v4796_v15 }
 0x254   :  { %v241_v35 = vpop.f32.mrf.mxu0 }
 0x255   :  { %v4935_v36 = vadd.f32 %v4301_v34, %v241_v35 }
 0x256   :  { %v4401_v37 = vpop.f32.mrf.mxu0 }
 0x257   :  { %256 = vrot.lane.b32.xlu1 %v4935_v36, %s4798_s4  ;;  %250 = vrot.lane.b32.xlu0 %v4935_v36, %s4799_s8 }
 0x258   :  { %v244_v38 = vpop.f32.mrf.mxu0 }
 0x259   :  { %v4941_v39 = vadd.f32 %v4301_v34, %v244_v38 }
 0x25a   :  { %v4402_v40 = vpop.f32.mrf.mxu0 }
 0x25b   :  { %262 = vrot.lane.b32.xlu1 %v4935_v36, %s4800_s24 }
 0x25f   :  { %404 = vrot.lane.b32.xlu1 %v4935_v36, %s4801_s25 }
 0x2c9   :  { %v4947_v41 = vpop.permute.xlu1 %256  ;;  %v4949_v42 = vpop.permute.xlu0 %250 }
 0x2ca   :  { %412 = vrot.lane.b32.xlu1 %v4947_v41, %s4801_s25  ;;  %408 = vrot.lane.b32.xlu0 %v4949_v42, %s4801_s25 }
 0x2cd   :  { %v4955_v43 = vpop.permute.xlu1 %262 }
 0x2ce   :  { %416 = vrot.lane.b32.xlu0 %v4955_v43, %s4801_s25 }
 0x2d1   :  { %v405_v44 = vpop.permute.xlu1 %404 }
 0x33c   :  { %v413_v48 = vpop.permute.xlu1 %412  ;;  %v409_v49 = vpop.permute.xlu0 %408 }
 0x33d   :  { %v428_v54 = vcombine.low %v405_v44, %v413_v48  ;;  %v429_v55 = vcombine.high %v405_v44, %v413_v48 }
 0x33f   :  { %v436_v61 = vrot.slane %v428_v54, %v4962_v57  ;;  %v443_v62 = vrot.slane %v429_v55, %v4962_v57 }
 0x340   :  { %v417_v56 = vpop.permute.xlu0 %416 }
 0x341   :  { %v444_v59 = vcombine.low %v409_v49, %v417_v56  ;;  %v445_v60 = vcombine.high %v409_v49, %v417_v56 }
 0x343   :  { %v452_v63 = vrot.slane %v444_v59, %v4962_v57  ;;  %v459_v0 = vrot.slane %v445_v60, %v4962_v57  ;;  %v4804_v59 = vmov 0  }
 0x345   :  { %v461_v2 = vcombine.high %v436_v61, %v452_v63  ;;  %v460_v3 = vcombine.low %v436_v61, %v452_v63  ;;  %v476_v4 = vcombine.low %v443_v62, %v459_v0  ;;  %v477_v7 = vcombine.high %v443_v62, %v459_v0 }
 0x347   :  { %v475_v5 = vrot.slane %v461_v2, %v4969_v1  ;;  %v468_v6 = vrot.slane %v460_v3, %v4969_v1  ;;  %v484_v10 = vrot.slane %v476_v4, %v4969_v1  ;;  %v491_v14 = vrot.slane %v477_v7, %v4969_v1 }
 0x349   :  { %v734_v8 = vpack.c.bf16 %v475_v5, %v475_v5  ;;  %v732_v9 = vpack.c.bf16 %v468_v6, %v468_v6  ;;  %v492_v11 = vcombine.high %v468_v6, %v4796_v15  ;;  %v736_v12 = vpack.c.bf16 %v484_v10, %v484_v10 }
 0x34a   :  { %v493_v16 = vcombine.high %v475_v5, %v4796_v15  ;;  %v738_v17 = vpack.c.bf16 %v491_v14, %v491_v14  ;;  %v494_v19 = vcombine.high %v484_v10, %v4796_v15  ;;  %v495_v21 = vcombine.high %v491_v14, %v4796_v15 }
 0x34b   :  { %834 = vxpose.xlu0.c.b16.start.end [1/1] (short) (narrow) %v734_v8, 16  ;;  %802 = vxpose.xlu1.c.b16.start.end [1/1] (short) (narrow) %v732_v9, 16  ;;  %v733_v13 = vpack.c.bf16 %v492_v11, %v492_v11  ;;  %v268_v14 = vcombine.low %v4935_v36, %v4947_v41 }
 0x34c   :  { %v735_v18 = vpack.c.bf16 %v493_v16, %v493_v16  ;;  %v737_v20 = vpack.c.bf16 %v494_v19, %v494_v19  ;;  %v739_v22 = vpack.c.bf16 %v495_v21, %v495_v21  ;;  %v269_v16 = vcombine.high %v4935_v36, %v4947_v41 }
 0x34d   :  { %v276_v19 = vrot.slane %v268_v14, %v4962_v57 }
 0x34f   :  { %866 = vxpose.xlu1.c.b16.start.end [1/1] (short) (narrow) %v736_v12, 16  ;;  %818 = vxpose.xlu0.c.b16.start.end [1/1] (short) (narrow) %v733_v13, 16  ;;  %v284_v12 = vcombine.low %v4949_v42, %v4955_v43  ;;  %v285_v13 = vcombine.high %v4949_v42, %v4955_v43 }
 0x353   :  { %898 = vxpose.xlu1.c.b16.start.end [1/1] (short) (narrow) %v738_v17, 16  ;;  %850 = vxpose.xlu0.c.b16.start.end [1/1] (short) (narrow) %v735_v18, 16  ;;  %v292_v17 = vrot.slane %v284_v12, %v4962_v57  ;;  %v299_v18 = vrot.slane %v285_v13, %v4962_v57 }
 0x355   :  { %v300_v21 = vcombine.low %v276_v19, %v292_v17 }
 0x357   :  { %882 = vxpose.xlu0.c.b16.start.end [1/1] (short) (narrow) %v737_v20, 16  ;;  %v283_v20 = vrot.slane %v269_v16, %v4962_v57 }
 0x35b   :  { %914 = vxpose.xlu0.c.b16.start.end [1/1] (short) (narrow) %v739_v22, 16  ;;  %v316_v22 = vcombine.low %v283_v20, %v299_v18 }
 0x3ad   :  { %v842_v23 = vpop.trf.xlu0  ;;  %v810_v24 = vpop.trf.xlu1 }
 0x3b1   :  { %v874_v25 = vpop.trf.xlu1  ;;  %v826_v26 = vpop.trf.xlu0 }
 0x3b2   :  { %v930_v29 = vcombine.low %v810_v24, %v874_v25  ;;  %v317_v24 = vcombine.high %v283_v20, %v299_v18 }
 0x3b4   :  { %v937_v32 = vrot.slane %v930_v29, %v4962_v57 }
 0x3b5   :  { %v906_v27 = vpop.trf.xlu1  ;;  %v858_v28 = vpop.trf.xlu0 }
 0x3b6   :  { %v938_v30 = vcombine.low %v842_v23, %v906_v27  ;;  %v301_v23 = vcombine.high %v276_v19, %v292_v17 }
 0x3b8   :  { %v945_v33 = vrot.slane %v938_v30, %v4962_v57 }
 0x3b9   :  { %v890_v31 = vpop.trf.xlu0 }
 0x3ba   :  { %v964_v34 = vcombine.low %v826_v26, %v890_v31  ;;  %v946_v37 = vcombine.low %v937_v32, %v945_v33  ;;  %v947_v45 = vcombine.high %v937_v32, %v945_v33 }
 0x3bc   :  { %v971_v40 = vrot.slane %v964_v34, %v4962_v57  ;;  %v954_v48 = vrot.slane %v946_v37, %v4969_v1  ;;  %v961_v55 = vrot.slane %v947_v45, %v4969_v1 }
 0x3bd   :  { %v922_v35 = vpop.trf.xlu0 }
 0x3be   :  { %v972_v38 = vcombine.low %v858_v28, %v922_v35  ;;  %v1002_v53 = vshrl.u32 %v954_v48, 16  ;;  %v1018_v62 = vshrl.u32 %v961_v55, 16  ;;  %v962_v63 = vcombine.high %v954_v48, %v4804_v59 }
 0x3bf   :  { %v963_v6 = vcombine.high %v961_v55, %v4804_v59 }
 0x3c0   :  { %v979_v44 = vrot.slane %v972_v38, %v4962_v57  ;;  %v1010_v5 = vshrl.u32 %v962_v63, 16 }
 0x3c1   :  { %v1026_v10 = vshrl.u32 %v963_v6, 16 }
 0x3c2   :  { %v980_v46 = vcombine.low %v971_v40, %v979_v44  ;;  %v981_v47 = vcombine.high %v971_v40, %v979_v44 }
 0x3c4   :  { %v988_v49 = vrot.slane %v980_v46, %v4969_v1  ;;  %v995_v50 = vrot.slane %v981_v47, %v4969_v1 }
 0x3c6   :  { %v1000_v52 = vpack.i.b16 %v988_v49, %v954_v48  ;;  %v1003_v54 = vshrl.u32 %v988_v49, 16  ;;  %v1019_v58 = vshrl.u32 %v995_v50, 16  ;;  %v996_v60 = vcombine.high %v988_v49, %v4804_v59 }
 0x3c7   :  { %v1016_v61 = vpack.i.b16 %v995_v50, %v961_v55  ;;  %v997_v3 = vcombine.high %v995_v50, %v4804_v59 }
 0x3c8   :  { %1030 = vxpose.xlu1.c.b16.start.end [1/1] (short) (narrow) %v1000_v52, 16  ;;  %v1004_v56 = vpack.i.b16 %v1003_v54, %v1002_v53  ;;  %v1020_v0 = vpack.i.b16 %v1019_v58, %v1018_v62  ;;  %v1011_v2 = vshrl.u32 %v996_v60, 16  ;;  %v1008_v4 = vpack.i.b16 %v996_v60, %v962_v63 }
 0x3c9   :  { %v1027_v8 = vshrl.u32 %v997_v3, 16  ;;  %v1024_v9 = vpack.i.b16 %v997_v3, %v963_v6 }
 0x3ca   :  { %1046 = vxpose.xlu0.c.b16.start.end [1/1] (short) (narrow) %v1004_v56, 16  ;;  %v1012_v7 = vpack.i.b16 %v1011_v2, %v1010_v5 }
 0x3cb   :  { %v1028_v11 = vpack.i.b16 %v1027_v8, %v1026_v10 }
 0x3cc   :  { %1094 = vxpose.xlu1.c.b16.start.end [1/1] (short) (narrow) %v1016_v61, 16 }
 0x3ce   :  { %1110 = vxpose.xlu0.c.b16.start.end [1/1] (short) (narrow) %v1020_v0, 16 }
 0x3d0   :  { %1062 = vxpose.xlu1.c.b16.start.end [1/1] (short) (narrow) %v1008_v4, 16 }
 0x3d2   :  { %1078 = vxpose.xlu0.c.b16.start.end [1/1] (short) (narrow) %v1012_v7, 16 }
 0x3d4   :  { %1126 = vxpose.xlu1.c.b16.start.end [1/1] (short) (narrow) %v1024_v9, 16 }
 0x3d6   :  { %1142 = vxpose.xlu0.c.b16.start.end [1/1] (short) (narrow) %v1028_v11, 16 }
 0x3d8   :  { %252 = vrot.lane.b32.xlu1 %v4941_v39, %s4799_s8 }
 0x3dc   :  { %264 = vrot.lane.b32.xlu1 %v4941_v39, %s4800_s24 }
 0x3df   :  { %258 = vrot.lane.b32.xlu0 %v4941_v39, %s4798_s4 }
 0x3e0   :  { %568 = vrot.lane.b32.xlu1 %v4949_v42, %s4791_s5  ;;  %v308_v42 = vrot.slane %v300_v21, %v4969_v1 }
 0x3e2   :  { %v332_v28 = vcombine.high %v308_v42, %v4796_v15 }
 0x3e3   :  { %564 = vrot.lane.b32.xlu0 %v4935_v36, %s4791_s5  ;;  %v315_v36 = vrot.slane %v301_v23, %v4969_v1 }
 0x3e4   :  { %572 = vrot.lane.b32.xlu1 %v4947_v41, %s4791_s5  ;;  %v331_v41 = vrot.slane %v317_v24, %v4969_v1 }
 0x3e5   :  { %v333_v31 = vcombine.high %v315_v36, %v4796_v15 }
 0x3e6   :  { %v335_v32 = vcombine.high %v331_v41, %v4796_v15  ;;  %v4306_v45 = vpack.c.bf16 %v331_v41, %v315_v36 }
 0x3e7   :  { %406 = vrot.lane.b32.xlu0 %v4941_v39, %s4801_s25 }
 0x3e8   :  { %576 = vrot.lane.b32.xlu1 %v4955_v43, %s4791_s5  ;;  %v324_v43 = vrot.slane %v316_v22, %v4969_v1  ;;  %v4308_v38 = vpack.c.bf16 %v335_v32, %v333_v31  ;;  %v755_v61 = vrot.slane %v4306_v45, %v4962_v57 }
 0x3ea   :  { %v334_v29 = vcombine.high %v324_v43, %v4796_v15  ;;  %v4305_v40 = vpack.c.bf16 %v324_v43, %v308_v42  ;;  %v780_v54 = vrot.slane %v4308_v38, %v4962_v57 }
 0x3ec   :  { %v4307_v35 = vpack.c.bf16 %v334_v29, %v332_v28  ;;  %v747_v55 = vrot.slane %v4305_v40, %v4962_v57 }
 0x3ee   :  { %v772_v49 = vrot.slane %v4307_v35, %v4962_v57  ;;  %v756_v3 = vcombine.low %v747_v55, %v755_v61 }
 0x3f0   :  { %v781_v0 = vcombine.low %v772_v49, %v780_v54  ;;  %v763_v9 = vrot.slane %v756_v3, %v4969_v1 }
 0x3f2   :  { %v788_v5 = vrot.slane %v781_v0, %v4969_v1  ;;  %v793_v18 = vshrl.u32 %v763_v9, 16 }
 0x3f4   :  { %v792_v11 = vpack.i.b16 %v788_v5, %v763_v9  ;;  %v794_v14 = vshrl.u32 %v788_v5, 16 }
 0x3f6   :  { %v795_v20 = vpack.i.b16 %v794_v14, %v793_v18 }
 0x42a   :  { %v1038_v25 = vpop.trf.xlu1 }
 0x42c   :  { %v1054_v26 = vpop.trf.xlu0 }
 0x42e   :  { %v1102_v27 = vpop.trf.xlu1 }
 0x42f   :  { %v1158_v37 = vcombine.low %v1038_v25, %v1102_v27  ;;  %v789_v25 = vcombine.high %v788_v5, %v4804_v59 }
 0x430   :  { %v1118_v30 = vpop.trf.xlu0 }
 0x431   :  { %v1183_v46 = vcombine.low %v1054_v26, %v1118_v30  ;;  %v1165_v50 = vrot.slane %v1158_v37, %v4962_v57  ;;  %v764_v26 = vcombine.high %v763_v9, %v4804_v59  ;;  %v800_v29 = vshrl.u32 %v789_v25, 16 }
 0x432   :  { %v1070_v33 = vpop.trf.xlu1 }
 0x433   :  { %v1190_v56 = vrot.slane %v1183_v46, %v4962_v57  ;;  %v798_v41 = vpack.i.b16 %v789_v25, %v764_v26  ;;  %v799_v32 = vshrl.u32 %v764_v26, 16 }
 0x434   :  { %v1086_v34 = vpop.trf.xlu0 }
 0x436   :  { %v1134_v44 = vpop.trf.xlu1 }
 0x437   :  { %v1166_v47 = vcombine.low %v1070_v33, %v1134_v44 }
 0x438   :  { %v1150_v48 = vpop.trf.xlu0 }
 0x439   :  { %v1173_v52 = vrot.slane %v1166_v47, %v4962_v57  ;;  %v1191_v53 = vcombine.low %v1086_v34, %v1150_v48  ;;  %v801_v34 = vpack.i.b16 %v800_v29, %v799_v32 }
 0x43b   :  { %v1174_v58 = vcombine.low %v1165_v50, %v1173_v52  ;;  %v1198_v60 = vrot.slane %v1191_v53, %v4962_v57 }
 0x43d   :  { %v1181_v62 = vrot.slane %v1174_v58, %v4969_v1  ;;  %v1199_v63 = vcombine.low %v1190_v56, %v1198_v60 }
 0x43f   :  { %v1206_v2 = vrot.slane %v1199_v63, %v4969_v1  ;;  %v1211_v6 = vshrl.u32 %v1181_v62, 16  ;;  %v1182_v16 = vcombine.high %v1181_v62, %v4804_v59 }
 0x441   :  { %v1210_v4 = vpack.i.b16 %v1206_v2, %v1181_v62  ;;  %v1212_v7 = vshrl.u32 %v1206_v2, 16  ;;  %v1207_v13 = vcombine.high %v1206_v2, %v4804_v59  ;;  %v1217_v42 = vshrl.u32 %v1182_v16, 16 }
 0x443   :  { %v1226_v8 = vsel %vm1224_vm2, %v1210_v4, 0  ;;  %v1213_v10 = vpack.i.b16 %v1212_v7, %v1211_v6  ;;  %v1216_v19 = vpack.i.b16 %v1207_v13, %v1182_v16  ;;  %v1218_v23 = vshrl.u32 %v1207_v13, 16 }
 0x444   :  { %4404 = vmatpush3.bf16.msra.mxu1 %v1226_v8 }
 0x445   :  { %4409 = vmatprep.subr.bf16.mxu1 %v4796_v15  ;;  %v1272_v12 = vsel %vm1224_vm2, %v1213_v10, 0  ;;  %v1318_v22 = vsel %vm1224_vm2, %v1216_v19, 0  ;;  %v1219_v36 = vpack.i.b16 %v1218_v23, %v1217_v42 }
 0x447   :  { %4406 = vmatmul.mubr.msk.bf16.vlgmr.msra.gmra.mxu1 %vm1220_vm3, %v792_v11  ;;  %v1364_v28 = vsel %vm1224_vm2, %v1219_v36, 0 }
 0x448   :  { %4410 = vmatpush3.bf16.msra.mxu1 %v1272_v12  ;;  %4411 = vmatprep.mubr.msk.bf16.mxu1 %vm4797_vm1, %v4796_v15 }
 0x449   :  { %4415 = vmatprep.subr.bf16.mxu1 %v4796_v15 }
 0x44a   :  { %v5048_v17 = vpop.permute.xlu1 %252 }
 0x44b   :  { %410 = vrot.lane.b32.xlu1 %v5048_v17, %s4801_s25 }
 0x44e   :  { %v5052_v21 = vpop.permute.xlu1 %264 }
 0x44f   :  { %4412 = vmatmul.mubr.msk.bf16.vlgmr.msra.gmra.mxu1 %vm1220_vm3, %v795_v20  ;;  %418 = vrot.lane.b32.xlu1 %v5052_v21, %s4801_s25 }
 0x450   :  { %4416 = vmatpush3.bf16.msra.mxu1 %v1318_v22  ;;  %4417 = vmatprep.mubr.msk.bf16.mxu1 %vm4797_vm1, %v4796_v15 }
 0x451   :  { %v5060_v24 = vpop.permute.xlu0 %258  ;;  %4421 = vmatprep.subr.bf16.mxu1 %v4796_v15 }
 0x452   :  { %414 = vrot.lane.b32.xlu0 %v5060_v24, %s4801_s25  ;;  %v569_v43 = vpop.permute.xlu1 %568 }
 0x455   :  { %v565_v31 = vpop.permute.xlu0 %564 }
 0x456   :  { %v573_v27 = vpop.permute.xlu1 %572 }
 0x457   :  { %4418 = vmatmul.mubr.msk.bf16.vlgmr.msra.gmra.mxu1 %vm1220_vm3, %v798_v41  ;;  %v588_v35 = vcombine.low %v565_v31, %v573_v27  ;;  %v589_v40 = vcombine.high %v565_v31, %v573_v27 }
 0x458   :  { %4422 = vmatpush3.bf16.msra.mxu1 %v1364_v28  ;;  %4423 = vmatprep.mubr.msk.bf16.mxu1 %vm4797_vm1, %v4796_v15 }
 0x459   :  { %4433 = vmatprep.subr.bf16.mxu1 %v4796_v15  ;;  %v596_v44 = vrot.slane %v588_v35, %v4962_v57  ;;  %v603_v47 = vrot.slane %v589_v40, %v4962_v57  ;;  %v407_v8 = vpop.permute.xlu0 %406 }
 0x45a   :  { %v577_v30 = vpop.permute.xlu1 %576 }
 0x45b   :  { %v604_v33 = vcombine.low %v569_v43, %v577_v30  ;;  %v605_v37 = vcombine.high %v569_v43, %v577_v30 }
 0x45d   :  { %v612_v38 = vrot.slane %v604_v33, %v4962_v57  ;;  %v619_v45 = vrot.slane %v605_v37, %v4962_v57 }
 0x45f   :  { %4424 = vmatmul.mubr.msk.bf16.vlgmr.msra.gmra.mxu1 %vm1220_vm3, %v801_v34  ;;  %v620_v46 = vcombine.low %v596_v44, %v612_v38  ;;  %v636_v48 = vcombine.low %v603_v47, %v619_v45  ;;  %v621_v50 = vcombine.high %v596_v44, %v612_v38  ;;  %v637_v52 = vcombine.high %v603_v47, %v619_v45 }
 0x460   :  { %4435 = vmatprep.mubr.msk.bf16.mxu1 %vm4797_vm1, %v4796_v15 }
 0x461   :  { %v628_v49 = vrot.slane %v620_v46, %v4969_v1  ;;  %v644_v54 = vrot.slane %v636_v48, %v4969_v1  ;;  %v635_v56 = vrot.slane %v621_v50, %v4969_v1  ;;  %v651_v61 = vrot.slane %v637_v52, %v4969_v1 }
 0x463   :  { %v652_v53 = vcombine.high %v628_v49, %v4796_v15  ;;  %v1454_v55 = vpack.c.bf16 %v628_v49, %v628_v49  ;;  %v654_v60 = vcombine.high %v644_v54, %v4796_v15  ;;  %v1456_v62 = vpack.c.bf16 %v635_v56, %v635_v56 }
 0x464   :  { %v653_v63 = vcombine.high %v635_v56, %v4796_v15  ;;  %v655_v2 = vcombine.high %v651_v61, %v4796_v15  ;;  %v1458_v5 = vpack.c.bf16 %v644_v54, %v644_v54  ;;  %v1460_v6 = vpack.c.bf16 %v651_v61, %v651_v61 }
 0x465   :  { %v1455_v58 = vpack.c.bf16 %v652_v53, %v652_v53  ;;  %v1459_v0 = vpack.c.bf16 %v654_v60, %v654_v60 }
 0x466   :  { %v1457_v3 = vpack.c.bf16 %v653_v63, %v653_v63  ;;  %v1461_v4 = vpack.c.bf16 %v655_v2, %v655_v2 }
 0x470   :  { %1462 = vxpose.xlu0.c.b16.start.end [1/1] (short) (narrow) %v1454_v55, 16 }
 0x472   :  { %1478 = vxpose.xlu1.c.b16.start.end [1/1] (short) (narrow) %v1455_v58, 16 }
 0x474   :  { %1494 = vxpose.xlu0.c.b16.start.end [1/1] (short) (narrow) %v1456_v62, 16 }
 0x476   :  { %1542 = vxpose.xlu1.c.b16.start.end [1/1] (short) (narrow) %v1459_v0, 16 }
 0x478   :  { %1510 = vxpose.xlu0.c.b16.start.end [1/1] (short) (narrow) %v1457_v3, 16 }
 0x47a   :  { %1574 = vxpose.xlu1.c.b16.start.end [1/1] (short) (narrow) %v1461_v4, 16 }
 0x47c   :  { %1526 = vxpose.xlu0.c.b16.start.end [1/1] (short) (narrow) %v1458_v5, 16 }
 0x480   :  { %1558 = vxpose.xlu0.c.b16.start.end [1/1] (short) (narrow) %v1460_v6, 16 }
 0x4bd   :  { %v411_v7 = vpop.permute.xlu1 %410 }
 0x4c1   :  { %v419_v9 = vpop.permute.xlu1 %418 }
 0x4c2   :  { %v512_v10 = vcombine.low %v411_v7, %v419_v9  ;;  %v513_v12 = vcombine.high %v411_v7, %v419_v9 }
 0x4c4   :  { %v415_v11 = vpop.permute.xlu0 %414  ;;  %v520_v16 = vrot.slane %v512_v10, %v4962_v57  ;;  %v527_v20 = vrot.slane %v513_v12, %v4962_v57 }
 0x4c5   :  { %v496_v13 = vcombine.low %v407_v8, %v415_v11  ;;  %v497_v14 = vcombine.high %v407_v8, %v415_v11 }
 0x4c7   :  { %v504_v18 = vrot.slane %v496_v13, %v4962_v57  ;;  %v511_v19 = vrot.slane %v497_v14, %v4962_v57 }
 0x4c9   :  { %v528_v22 = vcombine.low %v504_v18, %v520_v16  ;;  %v529_v23 = vcombine.high %v504_v18, %v520_v16  ;;  %v544_v43 = vcombine.low %v511_v19, %v527_v20  ;;  %v545_v29 = vcombine.high %v511_v19, %v527_v20 }
 0x4cb   :  { %v536_v25 = vrot.slane %v528_v22, %v4969_v1  ;;  %v543_v42 = vrot.slane %v529_v23, %v4969_v1  ;;  %v552_v28 = vrot.slane %v544_v43, %v4969_v1  ;;  %v559_v34 = vrot.slane %v545_v29, %v4969_v1 }
 0x4cd   :  { %v2353_v26 = vpack.c.bf16 %v536_v25, %v536_v25  ;;  %v560_v36 = vcombine.high %v536_v25, %v4796_v15  ;;  %v561_v27 = vcombine.high %v543_v42, %v4796_v15  ;;  %v2355_v30 = vpack.c.bf16 %v543_v42, %v543_v42 }
 0x4ce   :  { %v562_v33 = vcombine.high %v552_v28, %v4796_v15  ;;  %v2357_v37 = vpack.c.bf16 %v552_v28, %v552_v28  ;;  %v563_v44 = vcombine.high %v559_v34, %v4796_v15  ;;  %v2359_v46 = vpack.c.bf16 %v559_v34, %v559_v34 }
 0x4cf   :  { %2423 = vxpose.xlu0.c.b16.start.end [1/1] (short) (narrow) %v2353_v26, 16  ;;  %v2354_v41 = vpack.c.bf16 %v560_v36, %v560_v36  ;;  %v2356_v32 = vpack.c.bf16 %v561_v27, %v561_v27 }
 0x4d0   :  { %v2358_v40 = vpack.c.bf16 %v562_v33, %v562_v33  ;;  %v2360_v49 = vpack.c.bf16 %v563_v44, %v563_v44 }
 0x4d1   :  { %2439 = vxpose.xlu1.c.b16.start.end [1/1] (short) (narrow) %v2354_v41, 16 }
 0x4d2   :  { %v1470_v31 = vpop.trf.xlu0 }
 0x4d3   :  { %2455 = vxpose.xlu0.c.b16.start.end [1/1] (short) (narrow) %v2355_v30, 16 }
 0x4d4   :  { %v1486_v35 = vpop.trf.xlu1 }
 0x4d5   :  { %2471 = vxpose.xlu1.c.b16.start.end [1/1] (short) (narrow) %v2356_v32, 16 }
 0x4d6   :  { %v1502_v38 = vpop.trf.xlu0 }
 0x4d7   :  { %2487 = vxpose.xlu0.c.b16.start.end [1/1] (short) (narrow) %v2357_v37, 16 }
 0x4d8   :  { %v1550_v45 = vpop.trf.xlu1 }
 0x4d9   :  { %2503 = vxpose.xlu1.c.b16.start.end [1/1] (short) (narrow) %v2358_v40, 16  ;;  %v1624_v47 = vcombine.low %v1486_v35, %v1550_v45 }
 0x4da   :  { %v1518_v48 = vpop.trf.xlu0 }
 0x4db   :  { %2519 = vxpose.xlu0.c.b16.start.end [1/1] (short) (narrow) %v2359_v46, 16  ;;  %v1631_v52 = vrot.slane %v1624_v47, %v4962_v57 }
 0x4dc   :  { %v1582_v50 = vpop.trf.xlu1 }
 0x4dd   :  { %2535 = vxpose.xlu1.c.b16.start.end [1/1] (short) (narrow) %v2360_v49, 16  ;;  %v1632_v53 = vcombine.low %v1518_v48, %v1582_v50 }
 0x4de   :  { %v1534_v54 = vpop.trf.xlu0 }
 0x4df   :  { %v1590_v55 = vcombine.low %v1470_v31, %v1534_v54  ;;  %v1639_v56 = vrot.slane %v1632_v53, %v4962_v57 }
 0x4e1   :  { %v1640_v58 = vcombine.low %v1631_v52, %v1639_v56  ;;  %v1641_v60 = vcombine.high %v1631_v52, %v1639_v56  ;;  %v1597_v62 = vrot.slane %v1590_v55, %v4962_v57 }
 0x4e2   :  { %v1566_v61 = vpop.trf.xlu0 }
 0x4e3   :  { %v1598_v63 = vcombine.low %v1502_v38, %v1566_v61  ;;  %v1655_v0 = vrot.slane %v1641_v60, %v4969_v1  ;;  %v1648_v3 = vrot.slane %v1640_v58, %v4969_v1 }
 0x4e5   :  { %v1605_v2 = vrot.slane %v1598_v63, %v4962_v57  ;;  %v5106_v6 = vcombine.high %v1655_v0, %v4804_v59  ;;  %v1663_v9 = vshrl.u32 %v1648_v3, 16  ;;  %v1656_v13 = vcombine.high %v1648_v3, %v4804_v59 }
 0x4e6   :  { %v1679_v20 = vshrl.u32 %v1655_v0, 16 }
 0x4e7   :  { %v1606_v4 = vcombine.low %v1597_v62, %v1605_v2  ;;  %v1607_v5 = vcombine.high %v1597_v62, %v1605_v2  ;;  %v1687_v16 = vshrl.u32 %v5106_v6, 16  ;;  %v1671_v36 = vshrl.u32 %v1656_v13, 16 }
 0x4e9   :  { %v1621_v7 = vrot.slane %v1607_v5, %v4969_v1  ;;  %v1614_v8 = vrot.slane %v1606_v4, %v4969_v1 }
 0x4eb   :  { %v1660_v10 = vpack.i.b16 %v1648_v3, %v1614_v8  ;;  %v1662_v11 = vshrl.u32 %v1614_v8, 16  ;;  %v1622_v12 = vcombine.high %v1614_v8, %v4804_v59  ;;  %v5113_v14 = vcombine.high %v1621_v7, %v4804_v59 }
 0x4ec   :  { %v1678_v19 = vshrl.u32 %v1621_v7, 16  ;;  %v1676_v41 = vpack.i.b16 %v1655_v0, %v1621_v7 }
 0x4ed   :  { %1690 = vxpose.xlu0.c.b16.start.end [1/1] (short) (narrow) %v1660_v10, 16  ;;  %v1664_v18 = vpack.i.b16 %v1663_v9, %v1662_v11  ;;  %v1684_v22 = vpack.i.b16 %v5106_v6, %v5113_v14  ;;  %v1686_v23 = vshrl.u32 %v5113_v14, 16  ;;  %v1668_v25 = vpack.i.b16 %v1656_v13, %v1622_v12 }
 0x4ee   :  { %v1680_v43 = vpack.i.b16 %v1679_v20, %v1678_v19  ;;  %v1670_v26 = vshrl.u32 %v1622_v12, 16 }
 0x4ef   :  { %1706 = vxpose.xlu1.c.b16.start.end [1/1] (short) (narrow) %v1664_v18, 16  ;;  %v5119_v42 = vpack.i.b16 %v1687_v16, %v1686_v23 }
 0x4f0   :  { %v1672_v27 = vpack.i.b16 %v1671_v36, %v1670_v26 }
 0x4f1   :  { %1722 = vxpose.xlu0.c.b16.start.end [1/1] (short) (narrow) %v1668_v25, 16 }
 0x4f3   :  { %1770 = vxpose.xlu1.c.b16.start.end [1/1] (short) (narrow) %v1680_v43, 16 }
 0x4f5   :  { %1754 = vxpose.xlu0.c.b16.start.end [1/1] (short) (narrow) %v1676_v41, 16 }
 0x4f7   :  { %1738 = vxpose.xlu1.c.b16.start.end [1/1] (short) (narrow) %v1672_v27, 16 }
 0x507   :  { %v5121_v28 = vpop.f32.mrf.mxu1 }
 0x508   :  { %v1406_v29 = vsel %vm1220_vm3, %v5121_v28, -inf }
 0x509   :  { %v4407_v30 = vpop.f32.mrf.mxu1  ;;  %1407 = vmax.xlane.f32.xlu1 %v1406_v29 }
 0x50b   :  { %v1265_v31 = vpop.f32.mrf.mxu1 }
 0x50d   :  { %v4408_v32 = vpop.f32.mrf.mxu1 }
 0x50f   :  { %v5125_v33 = vpop.f32.mrf.mxu1 }
 0x510   :  { %v1409_v34 = vsel %vm1220_vm3, %v5125_v33, -inf }
 0x511   :  { %v4413_v35 = vpop.f32.mrf.mxu1  ;;  %1410 = vmax.xlane.f32.xlu0 %v1409_v34 }
 0x513   :  { %v1311_v37 = vpop.f32.mrf.mxu1 }
 0x515   :  { %v4414_v38 = vpop.f32.mrf.mxu1 }
 0x517   :  { %v5129_v40 = vpop.f32.mrf.mxu1 }
 0x518   :  { %v1412_v44 = vsel %vm1220_vm3, %v5129_v40, -inf }
 0x519   :  { %v4419_v45 = vpop.f32.mrf.mxu1  ;;  %1413 = vmax.xlane.f32.xlu0 %v1412_v44 }
 0x51b   :  { %v1357_v46 = vpop.f32.mrf.mxu1 }
 0x51d   :  { %v4420_v47 = vpop.f32.mrf.mxu1 }
 0x51f   :  { %v5133_v48 = vpop.f32.mrf.mxu1 }
 0x520   :  { %v1415_v49 = vsel %vm1220_vm3, %v5133_v48, -inf }
 0x521   :  { %v4425_v50 = vpop.f32.mrf.mxu1  ;;  %1416 = vmax.xlane.f32.xlu1 %v1415_v49 }
 0x523   :  { %v1403_v52 = vpop.f32.mrf.mxu1 }
 0x525   :  { %v4426_v53 = vpop.f32.mrf.mxu1 }
 0x531   :  { %v2431_v54 = vpop.trf.xlu0 }
 0x533   :  { %v2447_v55 = vpop.trf.xlu1 }
 0x535   :  { %v2463_v56 = vpop.trf.xlu0 }
 0x537   :  { %v2479_v58 = vpop.trf.xlu1 }
 0x539   :  { %v2495_v60 = vpop.trf.xlu0 }
 0x53a   :  { %v2551_v61 = vcombine.low %v2431_v54, %v2495_v60 }
 0x53b   :  { %v2511_v62 = vpop.trf.xlu1 }
 0x53c   :  { %v2585_v63 = vcombine.low %v2447_v55, %v2511_v62  ;;  %v2558_v2 = vrot.slane %v2551_v61, %v4962_v57 }
 0x53d   :  { %v2527_v0 = vpop.trf.xlu0 }
 0x53e   :  { %v2559_v3 = vcombine.low %v2463_v56, %v2527_v0  ;;  %v2592_v5 = vrot.slane %v2585_v63, %v4962_v57 }
 0x53f   :  { %v2543_v4 = vpop.trf.xlu1 }
 0x540   :  { %v2566_v6 = vrot.slane %v2559_v3, %v4962_v57  ;;  %v2593_v7 = vcombine.low %v2479_v58, %v2543_v4 }
 0x542   :  { %v2567_v8 = vcombine.low %v2558_v2, %v2566_v6  ;;  %v2568_v9 = vcombine.high %v2558_v2, %v2566_v6  ;;  %v2600_v10 = vrot.slane %v2593_v7, %v4962_v57 }
 0x544   :  { %v5142_v11 = vrot.slane %v2567_v8, %v4969_v1  ;;  %v2601_v12 = vcombine.low %v2592_v5, %v2600_v10  ;;  %v2602_v13 = vcombine.high %v2592_v5, %v2600_v10  ;;  %v5145_v14 = vrot.slane %v2568_v9, %v4969_v1 }
 0x546   :  { %1786 = vxpose.xlu0.c.b16.start.end [1/1] (short) (narrow) %v1684_v22, 16  ;;  %v5148_v16 = vrot.slane %v2601_v12, %v4969_v1  ;;  %v2623_v18 = vshrl.u32 %v5142_v11, 16  ;;  %v5153_v19 = vcombine.high %v5142_v11, %v4804_v59  ;;  %v5156_v20 = vrot.slane %v2602_v13, %v4969_v1 }
 0x547   :  { %v5160_v23 = vcombine.high %v5145_v14, %v4804_v59  ;;  %v2639_v25 = vshrl.u32 %v5145_v14, 16 }
 0x548   :  { %v2621_v22 = vpack.i.b16 %v5148_v16, %v5142_v11  ;;  %v2624_v43 = vshrl.u32 %v5148_v16, 16  ;;  %v5168_v26 = vcombine.high %v5148_v16, %v4804_v59  ;;  %v2637_v36 = vpack.i.b16 %v5156_v20, %v5145_v14 }
 0x549   :  { %v5174_v41 = vcombine.high %v5156_v20, %v4804_v59  ;;  %v2631_v27 = vshrl.u32 %v5153_v19, 16  ;;  %v2640_v29 = vshrl.u32 %v5156_v20, 16  ;;  %v2647_v30 = vshrl.u32 %v5160_v23, 16 }
 0x54a   :  { %v2625_v31 = vpack.i.b16 %v2624_v43, %v2623_v18  ;;  %v2629_v32 = vpack.i.b16 %v5168_v26, %v5153_v19  ;;  %v2632_v34 = vshrl.u32 %v5168_v26, 16 }
 0x54b   :  { %v2645_v35 = vpack.i.b16 %v5174_v41, %v5160_v23  ;;  %v5184_v37 = vpack.i.b16 %v2640_v29, %v2639_v25  ;;  %v2648_v38 = vshrl.u32 %v5174_v41, 16 }
 0x54c   :  { %v5187_v44 = vpack.i.b16 %v2632_v34, %v2631_v27 }
 0x54d   :  { %v5189_v45 = vpack.i.b16 %v2648_v38, %v2647_v30 }
 0x54e   :  { %1802 = vxpose.xlu1.c.b16.start.end [1/1] (short) (narrow) %v5119_v42, 16 }
 0x54f   :  { %v1698_v50 = vpop.trf.xlu0 }
 0x551   :  { %v1714_v46 = vpop.trf.xlu1 }
 0x553   :  { %v1730_v53 = vpop.trf.xlu0 }
 0x555   :  { %v1778_v47 = vpop.trf.xlu1 }
 0x556   :  { %v1843_v49 = vcombine.low %v1714_v46, %v1778_v47 }
 0x557   :  { %v1762_v58 = vpop.trf.xlu0 }
 0x558   :  { %v1818_v3 = vcombine.low %v1698_v50, %v1762_v58  ;;  %v1850_v12 = vrot.slane %v1843_v49, %v4962_v57 }
 0x559   :  { %v1746_v52 = vpop.trf.xlu1 }
 0x55a   :  { %v1825_v7 = vrot.slane %v1818_v3, %v4962_v57 }
 0x592   :  { %v1408_v54 = vpop.xlane.xlu1 %1407 }
 0x593   :  { %v1418_v55 = vsub.f32 %v5121_v28, %v1408_v54 }
 0x595   :  { %v1422_v56 = vmul.f32 1.442695, %v1418_v55 }
 0x597   :  { %4579 = vpow2.f32 %v1422_v56 }
 0x59a   :  { %v1411_v60 = vpop.xlane.xlu0 %1410 }
 0x59b   :  { %v1419_v61 = vsub.f32 %v5125_v33, %v1411_v60 }
 0x59d   :  { %v1424_v62 = vmul.f32 1.442695, %v1419_v61 }
 0x59f   :  { %4581 = vpow2.f32 %v1424_v62 }
 0x5a2   :  { %v1414_v0 = vpop.xlane.xlu0 %1413 }
 0x5a4   :  { %v4580_v63 = vpop.eup %4579 }
 0x5a5   :  { %v1430_v42 = vsel %vm1220_vm3, %v4580_v63, 0.0 }
 0x5a6   :  { %1431 = vadd.xlane.f32.xlu0 %v1430_v42 }
 0x5a8   :  { %v1794_v2 = vpop.trf.xlu0 }
 0x5a9   :  { %v1826_v4 = vcombine.low %v1730_v53, %v1794_v2  ;;  %v1420_v53 = vsub.f32 %v5129_v40, %v1414_v0 }
 0x5aa   :  { %v1417_v28 = vpop.xlane.xlu1 %1416 }
 0x5ab   :  { %v1833_v5 = vrot.slane %v1826_v4, %v4962_v57  ;;  %v1426_v54 = vmul.f32 1.442695, %v1420_v53  ;;  %v1421_v55 = vsub.f32 %v5133_v48, %v1417_v28 }
 0x5ac   :  { %v4582_v6 = vpop.eup %4581 }
 0x5ad   :  { %v1433_v8 = vsel %vm1220_vm3, %v4582_v6, 0.0  ;;  %v1834_v33 = vcombine.low %v1825_v7, %v1833_v5  ;;  %4583 = vpow2.f32 %v1426_v54  ;;  %v1428_v56 = vmul.f32 1.442695, %v1421_v55 }
 0x5ae   :  { %1434 = vadd.xlane.f32.xlu1 %v1433_v8 }
 0x5af   :  { %v1841_v13 = vrot.slane %v1834_v33, %v4969_v1  ;;  %4585 = vpow2.f32 %v1428_v56 }
 0x5b0   :  { %v1810_v9 = vpop.trf.xlu1 }
 0x5b1   :  { %v1851_v10 = vcombine.low %v1746_v52, %v1810_v9  ;;  %v5202_v43 = vcombine.high %v1841_v13, %v4804_v59  ;;  %v1871_v29 = vshrl.u32 %v1841_v13, 16 }
 0x5b3   :  { %v1858_v18 = vrot.slane %v1851_v10, %v4962_v57  ;;  %v1877_v46 = vshrl.u32 %v5202_v43, 16 }
 0x5b5   :  { %v1859_v25 = vcombine.low %v1850_v12, %v1858_v18 }
 0x5b7   :  { %v1866_v27 = vrot.slane %v1859_v25, %v4969_v1 }
 0x5b9   :  { %v5206_v30 = vcombine.high %v1866_v27, %v4804_v59  ;;  %v1870_v34 = vpack.i.b16 %v1866_v27, %v1841_v13  ;;  %v1872_v38 = vshrl.u32 %v1866_v27, 16 }
 0x5ba   :  { %v5219_v58 = vpop.eup %4583 }
 0x5bb   :  { %v1878_v47 = vshrl.u32 %v5206_v30, 16  ;;  %v1873_v49 = vpack.i.b16 %v1872_v38, %v1871_v29  ;;  %v1876_v50 = vpack.i.b16 %v5206_v30, %v5202_v43  ;;  %v1436_v60 = vsel %vm1220_vm3, %v5219_v58, 0.0 }
 0x5bc   :  { %v5223_v61 = vpop.eup %4585 }
 0x5bd   :  { %v5212_v52 = vpack.i.b16 %v1878_v47, %v1877_v46  ;;  %v1439_v40 = vsel %vm1220_vm3, %v5223_v61, 0.0 }
 0x5d3   :  { %2651 = vxpose.xlu0.c.b16.start.end [1/1] (short) (narrow) %v2621_v22, 16 }
 0x5db   :  { %2667 = vxpose.xlu1.c.b16.start.end [1/1] (short) (narrow) %v2625_v31, 16  ;;  %v336_v31 = vcombine.low %v4941_v39, %v5060_v24 }
 0x5e0   :  { %1437 = vadd.xlane.f32.xlu0 %v1436_v60 }
 0x5e8   :  { %1440 = vadd.xlane.f32.xlu1 %v1439_v40 }
 0x60d   :  { %2683 = vxpose.xlu0.c.b16.start.end [1/1] (short) (narrow) %v2629_v32, 16  ;;  %v337_v32 = vcombine.high %v4941_v39, %v5060_v24 }
 0x60f   :  { %v351_v62 = vrot.slane %v337_v32, %v4962_v57 }
 0x611   :  { %2715 = vxpose.xlu0.c.b16.start.end [1/1] (short) (narrow) %v2637_v36, 16 }
 0x615   :  { %2747 = vxpose.xlu0.c.b16.start.end [1/1] (short) (narrow) %v2645_v35, 16  ;;  %2699 = vxpose.xlu1.c.b16.start.end [1/1] (short) (narrow) %v5187_v44, 16  ;;  %v352_v35 = vcombine.low %v5048_v17, %v5052_v21 }
 0x617   :  { %v360_v0 = vrot.slane %v352_v35, %v4962_v57 }
 0x619   :  { %2731 = vxpose.xlu1.c.b16.start.end [1/1] (short) (narrow) %v5184_v37, 16  ;;  %v353_v37 = vcombine.high %v5048_v17, %v5052_v21 }
 0x61b   :  { %v367_v42 = vrot.slane %v353_v37, %v4962_v57 }
 0x61d   :  { %2763 = vxpose.xlu1.c.b16.start.end [1/1] (short) (narrow) %v5189_v45, 16  ;;  %v344_v45 = vrot.slane %v336_v31, %v4962_v57 }
 0x61e   :  { %566 = vrot.lane.b32.xlu0 %v4941_v39, %s4791_s5  ;;  %v384_v39 = vcombine.low %v351_v62, %v367_v42 }
 0x61f   :  { %v368_v2 = vcombine.low %v344_v45, %v360_v0  ;;  %v369_v3 = vcombine.high %v344_v45, %v360_v0 }
 0x620   :  { %v392_v28 = vrot.slane %v384_v39, %v4969_v1 }
 0x621   :  { %570 = vrot.lane.b32.xlu1 %v5048_v17, %s4791_s5  ;;  %v376_v17 = vrot.slane %v368_v2, %v4969_v1 }
 0x622   :  { %v402_v12 = vcombine.high %v392_v28, %v4796_v15 }
 0x623   :  { %v400_v9 = vcombine.high %v376_v17, %v4796_v15  ;;  %v4319_v55 = vpack.c.bf16 %v392_v28, %v376_v17 }
 0x625   :  { %574 = vrot.lane.b32.xlu1 %v5060_v24, %s4791_s5  ;;  %v385_v24 = vcombine.high %v351_v62, %v367_v42  ;;  %v4321_v46 = vpack.c.bf16 %v402_v12, %v400_v9 }
 0x627   :  { %v399_v7 = vrot.slane %v385_v24, %v4969_v1 }
 0x629   :  { %v403_v13 = vcombine.high %v399_v7, %v4796_v15 }
 0x62f   :  { %v1432_v48 = vpop.xlane.xlu0 %1431 }
 0x630   :  { %4587 = vrcp.f32 %v1432_v48 }
 0x635   :  { %v2659_v41 = vpop.trf.xlu0 }
 0x637   :  { %v1435_v11 = vpop.xlane.xlu1 %1434 }
 0x638   :  { %4589 = vrcp.f32 %v1435_v11 }
 0x63d   :  { %v4588_v14 = vpop.eup %4587 }
 0x63e   :  { %v1446_v16 = vmul.f32 %v4588_v14, %v4580_v63  ;;  %v2675_v63 = vpop.trf.xlu1 }
 0x640   :  { %v1450_v19 = vpack.c.bf16 %v1446_v16, %v1446_v16 }
 0x642   :  { %v1884_v20 = vsel %vm1220_vm3, %v1450_v19, 0 }
 0x643   :  { %4428 = vmatpush3.bf16.xpose.msra.mxu0 %v1884_v20 }
 0x644   :  { %4439 = vmatprep.subr.bf16.mxu0 %v4796_v15 }
 0x645   :  { %v4590_v23 = vpop.eup %4589 }
 0x646   :  { %v1447_v22 = vmul.f32 %v4590_v23, %v4582_v6  ;;  %v383_v6 = vrot.slane %v369_v3, %v4969_v1  ;;  %v2368_v23 = vrot.slane %v4319_v55, %v4962_v57 }
 0x648   :  { %v1451_v26 = vpack.c.bf16 %v1447_v22, %v1447_v22  ;;  %v401_v10 = vcombine.high %v383_v6, %v4796_v15  ;;  %v4320_v60 = vpack.c.bf16 %v399_v7, %v383_v6 }
 0x64a   :  { %4430 = vmatmul.mubr.msk.bf16.vlgmr.msra.gmra.mxu0 %vm1220_vm3, %v1870_v34  ;;  %v1930_v36 = vsel %vm1220_vm3, %v1451_v26, 0  ;;  %v4322_v47 = vpack.c.bf16 %v403_v13, %v401_v10  ;;  %v2376_v22 = vrot.slane %v4320_v60, %v4962_v57 }
 0x64b   :  { %4434 = vmatpush3.bf16.xpose.msra.mxu1 %v1930_v36  ;;  %4441 = vmatprep.mubr.msk.bf16.mxu0 %vm4797_vm1, %v4796_v15 }
 0x64c   :  { %4445 = vmatprep.subr.bf16.mxu1 %v4796_v15  ;;  %v2401_v11 = vrot.slane %v4322_v47, %v4962_v57  ;;  %v2377_v37 = vcombine.low %v2368_v23, %v2376_v22 }
 0x64e   :  { %v2384_v2 = vrot.slane %v2377_v37, %v4969_v1 }
 0x652   :  { %4436 = vmatmul.mubr.msk.bf16.vlgmr.msra.gmra.mxu1 %vm1220_vm3, %v1873_v49 }
 0x653   :  { %4447 = vmatprep.mubr.msk.bf16.mxu1 %vm4797_vm1, %v4796_v15 }
 0x669   :  { %v1438_v44 = vpop.xlane.xlu0 %1437 }
 0x66a   :  { %4591 = vrcp.f32 %v1438_v44 }
 0x66f   :  { %v2691_v4 = vpop.trf.xlu0 }
 0x671   :  { %v1441_v5 = vpop.xlane.xlu1 %1440 }
 0x672   :  { %4593 = vrcp.f32 %v1441_v5 }
 0x673   :  { %v2723_v8 = vpop.trf.xlu0 }
 0x674   :  { %v2779_v34 = vcombine.low %v2659_v41, %v2723_v8 }
 0x676   :  { %v2786_v56 = vrot.slane %v2779_v34, %v4962_v57 }
 0x677   :  { %v4592_v33 = vpop.eup %4591  ;;  %v2755_v18 = vpop.trf.xlu0 }
 0x678   :  { %v2707_v25 = vpop.trf.xlu1  ;;  %v2787_v27 = vcombine.low %v2691_v4, %v2755_v18  ;;  %v1448_v29 = vmul.f32 %v4592_v33, %v5219_v58  ;;  %v2393_v58 = vrot.slane %v4321_v46, %v4962_v57  ;;  %v2385_v33 = vcombine.high %v2384_v2, %v4804_v59 }
 0x67a   :  { %v1452_v38 = vpack.c.bf16 %v1448_v29, %v1448_v29  ;;  %v2794_v49 = vrot.slane %v2787_v27, %v4962_v57  ;;  %v2402_v32 = vcombine.low %v2393_v58, %v2401_v11  ;;  %v2420_v13 = vshrl.u32 %v2385_v33, 16 }
 0x67c   :  { %v2739_v53 = vpop.trf.xlu1  ;;  %v1976_v54 = vsel %vm1220_vm3, %v1452_v38, 0  ;;  %v2795_v14 = vcombine.low %v2786_v56, %v2794_v49  ;;  %v2409_v62 = vrot.slane %v2402_v32, %v4969_v1 }
 0x67d   :  { %4440 = vmatpush3.bf16.xpose.msra.mxu0 %v1976_v54  ;;  %v2804_v40 = vcombine.low %v2675_v63, %v2739_v53 }
 0x67e   :  { %4451 = vmatprep.subr.bf16.mxu0 %v4796_v15  ;;  %v2802_v31 = vrot.slane %v2795_v14, %v4969_v1  ;;  %v2413_v24 = vpack.i.b16 %v2409_v62, %v2384_v2  ;;  %v2415_v17 = vshrl.u32 %v2409_v62, 16  ;;  %v2410_v7 = vcombine.high %v2409_v62, %v4804_v59 }
 0x67f   :  { %v4594_v48 = vpop.eup %4593  ;;  %v2811_v26 = vrot.slane %v2804_v40, %v4962_v57 }
 0x680   :  { %v2771_v16 = vpop.trf.xlu1  ;;  %v1449_v20 = vmul.f32 %v4594_v48, %v5223_v61  ;;  %v2832_v45 = vshrl.u32 %v2802_v31, 16  ;;  %v2803_v43 = vcombine.high %v2802_v31, %v4804_v59  ;;  %v2419_v10 = vpack.i.b16 %v2410_v7, %v2385_v33 }
 0x681   :  { %v2812_v19 = vcombine.low %v2707_v25, %v2771_v16  ;;  %v2421_v12 = vshrl.u32 %v2410_v7, 16 }
 0x682   :  { %v1453_v41 = vpack.c.bf16 %v1449_v20, %v1449_v20  ;;  %v2838_v6 = vshrl.u32 %v2803_v43, 16 }
 0x683   :  { %v2819_v36 = vrot.slane %v2812_v19, %v4962_v57  ;;  %v2422_v18 = vpack.i.b16 %v2421_v12, %v2420_v13 }
 0x684   :  { %4442 = vmatmul.mubr.msk.bf16.vlgmr.msra.gmra.mxu0 %vm1220_vm3, %v1876_v50  ;;  %v2022_v61 = vsel %vm1220_vm3, %v1453_v41, 0 }
 0x685   :  { %v2820_v35 = vcombine.low %v2811_v26, %v2819_v36  ;;  %4446 = vmatpush3.bf16.xpose.msra.mxu1 %v2022_v61  ;;  %4453 = vmatprep.mubr.msk.bf16.mxu0 %vm4797_vm1, %v4796_v15 }
 0x686   :  { %4457 = vmatprep.subr.bf16.mxu1 %v4796_v15 }
 0x687   :  { %v2827_v44 = vrot.slane %v2820_v35, %v4969_v1 }
 0x689   :  { %v2831_v63 = vpack.i.b16 %v2827_v44, %v2802_v31  ;;  %v2833_v0 = vshrl.u32 %v2827_v44, 16  ;;  %v2828_v30 = vcombine.high %v2827_v44, %v4804_v59 }
 0x68b   :  { %v2845_v50 = vsel %vm1224_vm2, %v2831_v63, 0  ;;  %v2834_v42 = vpack.i.b16 %v2833_v0, %v2832_v45  ;;  %v2837_v3 = vpack.i.b16 %v2828_v30, %v2803_v43  ;;  %v2839_v4 = vshrl.u32 %v2828_v30, 16 }
 0x68c   :  { %4452 = vmatpush3.bf16.msra.mxu0 %v2845_v50  ;;  %4448 = vmatmul.mubr.msk.bf16.vlgmr.msra.gmra.mxu1 %vm1220_vm3, %v5212_v52  ;;  %v2414_v52 = vshrl.u32 %v2384_v2, 16 }
 0x68d   :  { %v2891_v39 = vsel %vm1224_vm2, %v2834_v42, 0  ;;  %4463 = vmatprep.subr.bf16.mxu0 %v4796_v15  ;;  %4459 = vmatprep.mubr.msk.bf16.mxu1 %vm4797_vm1, %v4796_v15  ;;  %v2937_v5 = vsel %vm1224_vm2, %v2837_v3, 0  ;;  %v2840_v28 = vpack.i.b16 %v2839_v4, %v2838_v6 }
 0x68e   :  { %4458 = vmatpush3.bf16.msra.mxu1 %v2891_v39  ;;  %v2416_v8 = vpack.i.b16 %v2415_v17, %v2414_v52 }
 0x68f   :  { %4454 = vmatmul.mubr.msk.bf16.vlgmr.msra.gmra.mxu0 %vm1220_vm3, %v2413_v24  ;;  %4469 = vmatprep.subr.bf16.mxu1 %v4796_v15  ;;  %v2983_v9 = vsel %vm1224_vm2, %v2840_v28, 0 }
 0x690   :  { %4464 = vmatpush3.bf16.msra.mxu0 %v2937_v5  ;;  %4465 = vmatprep.mubr.msk.bf16.mxu0 %vm4797_vm1, %v4796_v15  ;;  %v567_v2 = vpop.permute.xlu0 %566 }
 0x691   :  { %4475 = vmatprep.subr.bf16.mxu0 %v4796_v15 }
 0x693   :  { %v571_v43 = vpop.permute.xlu1 %570 }
 0x694   :  { %4460 = vmatmul.mubr.msk.bf16.vlgmr.msra.gmra.mxu1 %vm1220_vm3, %v2416_v8 }
 0x695   :  { %4470 = vmatpush3.bf16.msra.mxu1 %v2983_v9  ;;  %4471 = vmatprep.mubr.msk.bf16.mxu1 %vm4797_vm1, %v4796_v15 }
 0x696   :  { %4481 = vmatprep.subr.bf16.mxu1 %v4796_v15 }
 0x697   :  { %4466 = vmatmul.mubr.msk.bf16.vlgmr.msra.gmra.mxu0 %vm1220_vm3, %v2419_v10  ;;  %v575_v30 = vpop.permute.xlu1 %574 }
 0x698   :  { %4477 = vmatprep.mubr.msk.bf16.mxu0 %vm4797_vm1, %v4796_v15  ;;  %v656_v3 = vcombine.low %v567_v2, %v575_v30  ;;  %v657_v39 = vcombine.high %v567_v2, %v575_v30 }
 0x69a   :  { %v664_v17 = vrot.slane %v656_v3, %v4962_v57  ;;  %v671_v6 = vrot.slane %v657_v39, %v4962_v57 }
 0x69c   :  { %4472 = vmatmul.mubr.msk.bf16.vlgmr.msra.gmra.mxu1 %vm1220_vm3, %v2422_v18 }
 0x69d   :  { %4483 = vmatprep.mubr.msk.bf16.mxu1 %vm4797_vm1, %v4796_v15 }
 0x70a   :  { %v5327_v25 = vpop.f32.mrf.mxu0 }
 0x70c   :  { %v4431_v27 = vpop.f32.mrf.mxu0 }
 0x70e   :  { %v1923_v29 = vpop.f32.mrf.mxu0 }
 0x710   :  { %v4432_v34 = vpop.f32.mrf.mxu0 }
 0x712   :  { %v5329_v38 = vpop.f32.mrf.mxu1 }
 0x714   :  { %v4437_v46 = vpop.f32.mrf.mxu1 }
 0x716   :  { %v1969_v47 = vpop.f32.mrf.mxu1 }
 0x718   :  { %v4438_v49 = vpop.f32.mrf.mxu1 }
 0x744   :  { %v5331_v53 = vpop.f32.mrf.mxu0 }
 0x746   :  { %v4443_v54 = vpop.f32.mrf.mxu0 }
 0x748   :  { %v2015_v55 = vpop.f32.mrf.mxu0 }
 0x74a   :  { %v4444_v56 = vpop.f32.mrf.mxu0 }
 0x74c   :  { %v5333_v60 = vpop.f32.mrf.mxu1 }
 0x74e   :  { %v4449_v40 = vpop.f32.mrf.mxu1 }
 0x74f   :  { %v5335_v48 = vpop.f32.mrf.mxu0 }
 0x750   :  { %v3025_v58 = vsel %vm1220_vm3, %v5335_v48, -inf  ;;  %v2061_v11 = vpop.f32.mrf.mxu1 }
 0x751   :  { %3026 = vmax.xlane.f32.xlu0 %v3025_v58  ;;  %v4455_v14 = vpop.f32.mrf.mxu0 }
 0x752   :  { %v4450_v16 = vpop.f32.mrf.mxu1 }
 0x753   :  { %v2884_v19 = vpop.f32.mrf.mxu0 }
 0x754   :  { %v5339_v23 = vpop.f32.mrf.mxu1 }
 0x755   :  { %v4456_v20 = vpop.f32.mrf.mxu0  ;;  %v3028_v22 = vsel %vm1220_vm3, %v5339_v23, -inf }
 0x756   :  { %3029 = vmax.xlane.f32.xlu1 %v3028_v22  ;;  %v4461_v26 = vpop.f32.mrf.mxu1 }
 0x757   :  { %v5343_v36 = vpop.f32.mrf.mxu0 }
 0x758   :  { %v3031_v41 = vsel %vm1220_vm3, %v5343_v36, -inf  ;;  %v2930_v31 = vpop.f32.mrf.mxu1 }
 0x759   :  { %3032 = vmax.xlane.f32.xlu0 %v3031_v41  ;;  %v4467_v32 = vpop.f32.mrf.mxu0 }
 0x75a   :  { %v4462_v35 = vpop.f32.mrf.mxu1 }
 0x75b   :  { %v2976_v61 = vpop.f32.mrf.mxu0 }
 0x75c   :  { %v5347_v44 = vpop.f32.mrf.mxu1 }
 0x75d   :  { %v4468_v37 = vpop.f32.mrf.mxu0  ;;  %v3034_v45 = vsel %vm1220_vm3, %v5347_v44, -inf }
 0x75e   :  { %3035 = vmax.xlane.f32.xlu1 %v3034_v45  ;;  %v4473_v62 = vpop.f32.mrf.mxu1 }
 0x760   :  { %v3022_v63 = vpop.f32.mrf.mxu1 }
 0x762   :  { %v4474_v0 = vpop.f32.mrf.mxu1 }
 0x76f   :  { %578 = vrot.lane.b32.xlu1 %v5052_v21, %s4791_s5 }
 0x7da   :  { %v3027_v11 = vpop.xlane.xlu0 %3026 }
 0x7db   :  { %v3037_v39 = vsub.f32 %v5335_v48, %v3027_v11 }
 0x7df   :  { %v5353_v50 = vpop.xlane.xlu1 %3029 }
 0x7e2   :  { %v3033_v14 = vpop.xlane.xlu0 %3032 }
 0x7e7   :  { %v5355_v42 = vpop.xlane.xlu1 %3035 }
 0x7eb   :  { %v579_v24 = vpop.permute.xlu1 %578 }
 0x7ec   :  { %v672_v4 = vcombine.low %v571_v43, %v579_v24  ;;  %v673_v5 = vcombine.high %v571_v43, %v579_v24 }
 0x7ee   :  { %v680_v52 = vrot.slane %v672_v4, %v4962_v57  ;;  %v687_v21 = vrot.slane %v673_v5, %v4962_v57  ;;  %v3038_v5 = vsub.f32 %v5339_v23, %v5353_v50  ;;  %v3040_v23 = vsub.f32 %v5347_v44, %v5355_v42 }
 0x7f0   :  { %v688_v28 = vcombine.low %v664_v17, %v680_v52  ;;  %v704_v7 = vcombine.low %v671_v6, %v687_v21  ;;  %v689_v8 = vcombine.high %v664_v17, %v680_v52  ;;  %v705_v33 = vcombine.high %v671_v6, %v687_v21 }
 0x7f2   :  { %v696_v9 = vrot.slane %v688_v28, %v4969_v1  ;;  %v712_v10 = vrot.slane %v704_v7, %v4969_v1  ;;  %v703_v18 = vrot.slane %v689_v8, %v4969_v1  ;;  %v719_v34 = vrot.slane %v705_v33, %v4969_v1 }
 0x7f3   :  { %v3041_v8 = vmul.f32 1.442695, %v3037_v39  ;;  %v3039_v33 = vsub.f32 %v5343_v36, %v3033_v14  ;;  %v3047_v36 = vmul.f32 1.442695, %v3040_v23 }
 0x7f4   :  { %v3073_v12 = vpack.c.bf16 %v696_v9, %v696_v9  ;;  %v720_v13 = vcombine.high %v696_v9, %v4796_v15  ;;  %v722_v29 = vcombine.high %v712_v10, %v4796_v15  ;;  %v3075_v46 = vpack.c.bf16 %v703_v18, %v703_v18 }
 0x7f5   :  { %v721_v47 = vcombine.high %v703_v18, %v4796_v15  ;;  %v723_v54 = vcombine.high %v719_v34, %v4796_v15  ;;  %v3077_v40 = vpack.c.bf16 %v712_v10, %v712_v10  ;;  %v3079_v58 = vpack.c.bf16 %v719_v34, %v719_v34 }
 0x7f6   :  { %3081 = vxpose.xlu0.c.b16.start.end [1/1] (short) (narrow) %v3073_v12, 16  ;;  %v3074_v27 = vpack.c.bf16 %v720_v13, %v720_v13  ;;  %v3078_v49 = vpack.c.bf16 %v722_v29, %v722_v29  ;;  %v3043_v12 = vmul.f32 1.442695, %v3038_v5  ;;  %4595 = vpow2.f32 %v3041_v8 }
 0x7f7   :  { %v3076_v55 = vpack.c.bf16 %v721_v47, %v721_v47  ;;  %v3080_v56 = vpack.c.bf16 %v723_v54, %v723_v54 }
 0x7f8   :  { %3097 = vxpose.xlu1.c.b16.start.end [1/1] (short) (narrow) %v3074_v27, 16  ;;  %v3045_v27 = vmul.f32 1.442695, %v3039_v33  ;;  %4597 = vpow2.f32 %v3043_v12 }
 0x7fa   :  { %3113 = vxpose.xlu0.c.b16.start.end [1/1] (short) (narrow) %v3075_v46, 16  ;;  %4599 = vpow2.f32 %v3045_v27 }
 0x7fb   :  { %4601 = vpow2.f32 %v3047_v36 }
 0x7fc   :  { %3161 = vxpose.xlu1.c.b16.start.end [1/1] (short) (narrow) %v3078_v49, 16 }
 0x7fe   :  { %3129 = vxpose.xlu0.c.b16.start.end [1/1] (short) (narrow) %v3076_v55, 16 }
 0x800   :  { %3193 = vxpose.xlu1.c.b16.start.end [1/1] (short) (narrow) %v3080_v56, 16 }
 0x802   :  { %3145 = vxpose.xlu0.c.b16.start.end [1/1] (short) (narrow) %v3077_v40, 16 }
 0x803   :  { %v4596_v44 = vpop.eup %4595 }
 0x804   :  { %v3049_v54 = vsel %vm1220_vm3, %v4596_v44, 0.0 }
 0x805   :  { %v4598_v42 = vpop.eup %4597 }
 0x806   :  { %3177 = vxpose.xlu0.c.b16.start.end [1/1] (short) (narrow) %v3079_v58, 16  ;;  %v3052_v56 = vsel %vm1220_vm3, %v4598_v42, 0.0 }
 0x807   :  { %v4600_v55 = vpop.eup %4599 }
 0x808   :  { %v4602_v40 = vpop.eup %4601  ;;  %v3055_v58 = vsel %vm1220_vm3, %v4600_v55, 0.0 }
 0x809   :  { %v3058_v11 = vsel %vm1220_vm3, %v4602_v40, 0.0 }
 0x858   :  { %v3089_v16 = vpop.trf.xlu0 }
 0x85a   :  { %v3105_v19 = vpop.trf.xlu1 }
 0x85c   :  { %v3121_v20 = vpop.trf.xlu0 }
 0x85e   :  { %v3169_v22 = vpop.trf.xlu1 }
 0x85f   :  { %v3243_v41 = vcombine.low %v3105_v19, %v3169_v22 }
 0x860   :  { %v3137_v26 = vpop.trf.xlu0 }
 0x861   :  { %v3250_v37 = vrot.slane %v3243_v41, %v4962_v57 }
 0x862   :  { %v3201_v31 = vpop.trf.xlu1 }
 0x863   :  { %v3251_v32 = vcombine.low %v3137_v26, %v3201_v31 }
 0x864   :  { %v3153_v35 = vpop.trf.xlu0 }
 0x865   :  { %v3258_v61 = vrot.slane %v3251_v32, %v4962_v57  ;;  %v3209_v45 = vcombine.low %v3089_v16, %v3153_v35 }
 0x867   :  { %v3259_v62 = vcombine.low %v3250_v37, %v3258_v61  ;;  %v3216_v43 = vrot.slane %v3209_v45, %v4962_v57  ;;  %v3260_v17 = vcombine.high %v3250_v37, %v3258_v61 }
 0x868   :  { %v3185_v63 = vpop.trf.xlu0 }
 0x869   :  { %v3217_v0 = vcombine.low %v3121_v20, %v3185_v63  ;;  %v3267_v2 = vrot.slane %v3259_v62, %v4969_v1  ;;  %v3274_v50 = vrot.slane %v3260_v17, %v4969_v1 }
 0x86b   :  { %v3224_v30 = vrot.slane %v3217_v0, %v4962_v57  ;;  %v3282_v6 = vshrl.u32 %v3267_v2, 16  ;;  %v3275_v7 = vcombine.high %v3267_v2, %v4804_v59  ;;  %v3298_v47 = vshrl.u32 %v3274_v50, 16 }
 0x86c   :  { %v3276_v16 = vcombine.high %v3274_v50, %v4804_v59 }
 0x86d   :  { %v3225_v3 = vcombine.low %v3216_v43, %v3224_v30  ;;  %v3226_v24 = vcombine.high %v3216_v43, %v3224_v30  ;;  %v3290_v18 = vshrl.u32 %v3275_v7, 16 }
 0x86e   :  { %v3306_v22 = vshrl.u32 %v3276_v16, 16 }
 0x86f   :  { %v3233_v4 = vrot.slane %v3225_v3, %v4969_v1  ;;  %v3240_v9 = vrot.slane %v3226_v24, %v4969_v1 }
 0x871   :  { %v3279_v52 = vpack.i.b16 %v3267_v2, %v3233_v4  ;;  %v3281_v21 = vshrl.u32 %v3233_v4, 16  ;;  %v3241_v28 = vcombine.high %v3233_v4, %v4804_v59  ;;  %v3297_v34 = vshrl.u32 %v3240_v9, 16 }
 0x872   :  { %v3295_v46 = vpack.i.b16 %v3274_v50, %v3240_v9  ;;  %v3242_v14 = vcombine.high %v3240_v9, %v4804_v59 }
 0x873   :  { %3309 = vxpose.xlu0.c.b16.start.end [1/1] (short) (narrow) %v3279_v52, 16  ;;  %v3283_v48 = vpack.i.b16 %v3282_v6, %v3281_v21  ;;  %v3289_v10 = vshrl.u32 %v3241_v28, 16  ;;  %v3287_v13 = vpack.i.b16 %v3275_v7, %v3241_v28  ;;  %v3299_v49 = vpack.i.b16 %v3298_v47, %v3297_v34 }
 0x874   :  { %v3305_v19 = vshrl.u32 %v3242_v14, 16  ;;  %v3303_v20 = vpack.i.b16 %v3276_v16, %v3242_v14 }
 0x875   :  { %3325 = vxpose.xlu1.c.b16.start.end [1/1] (short) (narrow) %v3283_v48, 16  ;;  %v3291_v29 = vpack.i.b16 %v3290_v18, %v3289_v10 }
 0x876   :  { %v3307_v26 = vpack.i.b16 %v3306_v22, %v3305_v19 }
 0x877   :  { %3341 = vxpose.xlu0.c.b16.start.end [1/1] (short) (narrow) %v3287_v13, 16 }
 0x879   :  { %3357 = vxpose.xlu1.c.b16.start.end [1/1] (short) (narrow) %v3291_v29, 16 }
 0x87b   :  { %3373 = vxpose.xlu0.c.b16.start.end [1/1] (short) (narrow) %v3295_v46, 16 }
 0x87d   :  { %3389 = vxpose.xlu1.c.b16.start.end [1/1] (short) (narrow) %v3299_v49, 16 }
 0x888   :  { %3050 = vadd.xlane.f32.xlu0 %v3049_v54 }
 0x88a   :  { %3053 = vadd.xlane.f32.xlu1 %v3052_v56 }
 0x88c   :  { %3056 = vadd.xlane.f32.xlu0 %v3055_v58 }
 0x88e   :  { %3059 = vadd.xlane.f32.xlu1 %v3058_v11 }
 0x8b9   :  { %3405 = vxpose.xlu0.c.b16.start.end [1/1] (short) (narrow) %v3303_v20, 16 }
 0x8bb   :  { %3421 = vxpose.xlu1.c.b16.start.end [1/1] (short) (narrow) %v3307_v26, 16 }
 0x8bd   :  { %2064 = vxpose.xlu0.b32.start.end [1/1] (short) (narrow) %v5327_v25, 8 }
 0x8c1   :  { %2128 = vxpose.xlu0.b32.start.end [1/1] (short) (narrow) %v5331_v53, 8 }
 0x8c5   :  { %2096 = vxpose.xlu1.b32.start.end [1/1] (short) (narrow) %v5329_v38, 8  ;;  %2160 = vxpose.xlu0.b32.start.end [1/1] (short) (narrow) %v5333_v60, 8 }
 0x8d5   :  { %v3317_v41 = vpop.trf.xlu0 }
 0x8d7   :  { %v3333_v31 = vpop.trf.xlu1 }
 0x8d9   :  { %v3349_v32 = vpop.trf.xlu0 }
 0x8db   :  { %v3365_v35 = vpop.trf.xlu1 }
 0x8dd   :  { %v3381_v61 = vpop.trf.xlu0 }
 0x8de   :  { %v3437_v38 = vcombine.low %v3317_v41, %v3381_v61 }
 0x8df   :  { %v3397_v37 = vpop.trf.xlu1 }
 0x8e0   :  { %v3462_v53 = vcombine.low %v3333_v31, %v3397_v37  ;;  %v3444_v17 = vrot.slane %v3437_v38, %v4962_v57 }
 0x8e2   :  { %v3469_v39 = vrot.slane %v3462_v53, %v4962_v57 }
 0x911   :  { %v3051_v45 = vpop.xlane.xlu0 %3050 }
 0x912   :  { %4603 = vrcp.f32 %v3051_v45 }
 0x913   :  { %v3054_v62 = vpop.xlane.xlu1 %3053 }
 0x914   :  { %4605 = vrcp.f32 %v3054_v62 }
 0x915   :  { %v3057_v63 = vpop.xlane.xlu0 %3056 }
 0x916   :  { %4607 = vrcp.f32 %v3057_v63 }
 0x917   :  { %v3060_v0 = vpop.xlane.xlu1 %3059 }
 0x918   :  { %4609 = vrcp.f32 %v3060_v0 }
 0x91b   :  { %v3413_v25 = vpop.trf.xlu0 }
 0x91c   :  { %v3445_v43 = vcombine.low %v3349_v32, %v3413_v25 }
 0x91d   :  { %v3429_v30 = vpop.trf.xlu1 }
 0x91e   :  { %v3470_v60 = vcombine.low %v3365_v35, %v3429_v30  ;;  %v3452_v3 = vrot.slane %v3445_v43, %v4962_v57 }
 0x91f   :  { %v4604_v2 = vpop.eup %4603 }
 0x920   :  { %v3477_v24 = vrot.slane %v3470_v60, %v4962_v57  ;;  %v3065_v4 = vmul.f32 %v4604_v2, %v4596_v44  ;;  %v3453_v7 = vcombine.low %v3444_v17, %v3452_v3 }
 0x921   :  { %v4606_v5 = vpop.eup %4605 }
 0x922   :  { %v3478_v6 = vcombine.low %v3469_v39, %v3477_v24  ;;  %v3069_v52 = vpack.c.bf16 %v3065_v4, %v3065_v4  ;;  %v3066_v21 = vmul.f32 %v4606_v5, %v4598_v42  ;;  %v3460_v12 = vrot.slane %v3453_v7, %v4969_v1 }
 0x923   :  { %v4608_v28 = vpop.eup %4607 }
 0x924   :  { %v3503_v8 = vsel %vm1220_vm3, %v3069_v52, 0  ;;  %v3485_v9 = vrot.slane %v3478_v6, %v4969_v1  ;;  %v3070_v48 = vpack.c.bf16 %v3066_v21, %v3066_v21  ;;  %v3067_v10 = vmul.f32 %v4608_v28, %v4600_v55 }
 0x925   :  { %v4610_v33 = vpop.eup %4609  ;;  %4476 = vmatpush3.bf16.xpose.msra.mxu0 %v3503_v8  ;;  %v3490_v29 = vshrl.u32 %v3460_v12, 16  ;;  %v3461_v49 = vcombine.high %v3460_v12, %v4804_v59 }
 0x926   :  { %4487 = vmatprep.subr.bf16.mxu0 %v4796_v15  ;;  %v3549_v23 = vsel %vm1220_vm3, %v3070_v48, 0  ;;  %v3068_v50 = vmul.f32 %v4610_v33, %v4602_v40  ;;  %v3071_v13 = vpack.c.bf16 %v3067_v10, %v3067_v10  ;;  %v3491_v18 = vshrl.u32 %v3485_v9, 16 }
 0x927   :  { %4482 = vmatpush3.bf16.xpose.msra.mxu1 %v3549_v23  ;;  %v3489_v27 = vpack.i.b16 %v3485_v9, %v3460_v12  ;;  %v3486_v46 = vcombine.high %v3485_v9, %v4804_v59  ;;  %v3496_v55 = vshrl.u32 %v3461_v49, 16 }
 0x928   :  { %4493 = vmatprep.subr.bf16.mxu1 %v4796_v15  ;;  %v3072_v34 = vpack.c.bf16 %v3068_v50, %v3068_v50  ;;  %v3595_v36 = vsel %vm1220_vm3, %v3071_v13, 0  ;;  %v3492_v47 = vpack.i.b16 %v3491_v18, %v3490_v29 }
 0x929   :  { %v3497_v42 = vshrl.u32 %v3486_v46, 16  ;;  %v3495_v54 = vpack.i.b16 %v3486_v46, %v3461_v49 }
 0x92a   :  { %v3641_v44 = vsel %vm1220_vm3, %v3072_v34, 0 }
 0x92b   :  { %v3498_v56 = vpack.i.b16 %v3497_v42, %v3496_v55 }
 0x92c   :  { %4478 = vmatmul.mubr.msk.bf16.vlgmr.msra.gmra.mxu0 %vm1220_vm3, %v3489_v27 }
 0x92d   :  { %4488 = vmatpush3.bf16.xpose.msra.mxu0 %v3595_v36  ;;  %4489 = vmatprep.mubr.msk.bf16.mxu0 %vm4797_vm1, %v4796_v15 }
 0x92e   :  { %4499 = vmatprep.subr.bf16.mxu0 %v4796_v15  ;;  %4484 = vmatmul.mubr.msk.bf16.vlgmr.msra.gmra.mxu1 %vm1220_vm3, %v3492_v47 }
 0x92f   :  { %4494 = vmatpush3.bf16.xpose.msra.mxu1 %v3641_v44  ;;  %4495 = vmatprep.mubr.msk.bf16.mxu1 %vm4797_vm1, %v4796_v15 }
 0x930   :  { %4507 = vmatprep.subr.bf16.mxu1 %v4796_v15 }
 0x934   :  { %4490 = vmatmul.mubr.msk.bf16.vlgmr.msra.gmra.mxu0 %vm1220_vm3, %v3495_v54 }
 0x935   :  { %4503 = vmatprep.mubr.msk.bf16.mxu0 %vm4797_vm1, %v4796_v15 }
 0x936   :  { %4496 = vmatmul.mubr.msk.bf16.vlgmr.msra.gmra.mxu1 %vm1220_vm3, %v3498_v56 }
 0x937   :  { %4511 = vmatprep.mubr.msk.bf16.mxu1 %vm4797_vm1, %v4796_v15 }
 0x939   :  { %v2080_v59 = vpop.trf.xlu0 }
 0x93d   :  { %v2144_v40 = vpop.trf.xlu0 }
 0x93e   :  { %v2192_v14 = vcombine.low %v2080_v59, %v2144_v40  ;;  %v2193_v16 = vcombine.high %v2080_v59, %v2144_v40 }
 0x940   :  { %v2200_v22 = vrot.slane %v2192_v14, %v4962_v57  ;;  %v2207_v26 = vrot.slane %v2193_v16, %v4962_v57 }
 0x941   :  { %v2112_v58 = vpop.trf.xlu1  ;;  %v2176_v11 = vpop.trf.xlu0 }
 0x942   :  { %v2208_v19 = vcombine.low %v2112_v58, %v2176_v11  ;;  %v2209_v20 = vcombine.high %v2112_v58, %v2176_v11 }
 0x944   :  { %v2216_v41 = vrot.slane %v2208_v19, %v4962_v57  ;;  %v2223_v31 = vrot.slane %v2209_v20, %v4962_v57 }
 0x946   :  { %v2224_v32 = vcombine.low %v2200_v22, %v2216_v41  ;;  %v2225_v35 = vcombine.high %v2200_v22, %v2216_v41  ;;  %v2240_v61 = vcombine.low %v2207_v26, %v2223_v31  ;;  %v2241_v37 = vcombine.high %v2207_v26, %v2223_v31 }
 0x948   :  { %v2232_v45 = vrot.slane %v2224_v32, %v4969_v1  ;;  %v2239_v62 = vrot.slane %v2225_v35, %v4969_v1  ;;  %v2248_v63 = vrot.slane %v2240_v61, %v4969_v1  ;;  %v2255_v0 = vrot.slane %v2241_v37, %v4969_v1  ;;  %v4567_v37 = vld [vmem:[%s5563_s6 + $0x8] sm:$0xff]  }
 0x949   :  { %4500 = vmatpush3.bf16.msra.mxu0 %v4567_v37 }
 0x94a   :  { %v2260_v53 = vcombine.low %v2232_v45, %v2239_v62  ;;  %v4317_v43 = vcombine.high %v2232_v45, %v2239_v62  ;;  %v2276_v38 = vcombine.low %v2248_v63, %v2255_v0  ;;  %v4318_v30 = vcombine.high %v2248_v63, %v2255_v0  ;;  %4501 = vmatprep.subr.bf16.mxu0 %v4796_v15 }
 0x94c   :  { %v2267_v39 = vrot.slane %v2260_v53, %v4962_v57  ;;  %v2275_v24 = vrot.slane %v4317_v43, %v4962_v57  ;;  %v2283_v4 = vrot.slane %v2276_v38, %v4962_v57  ;;  %v2291_v5 = vrot.slane %v4318_v30, %v4962_v57 }
 0x94e   :  { %v2292_v28 = vcombine.low %v2267_v39, %v2275_v24  ;;  %v2308_v7 = vcombine.low %v2283_v4, %v2291_v5  ;;  %v2293_v26 = vcombine.high %v2267_v39, %v2275_v24  ;;  %v2309_v41 = vcombine.high %v2283_v4, %v2291_v5 }
 0x950   :  { %v5436_v9 = vrot.slane %v2292_v28, %v4969_v1  ;;  %v5439_v48 = vrot.slane %v2308_v7, %v4969_v1  ;;  %v2323_v53 = vrot.slane %v2309_v41, %v4969_v1  ;;  %v4615_v41 = vld [vmem:[%s5557_s0] sm:$0xff] }
 0x952   :  { %v2324_v23 = vcombine.low %v5436_v9, %v5439_v48 }
 0x9ec   :  { %v3539_v25 = vpop.f32.mrf.mxu0 }
 0x9ed   :  { %3683 = vxpose.xlu1.b32.start.end [1/1] (short) (narrow) %v3539_v25, 8  ;;  %v2307_v25 = vrot.slane %v2293_v26, %v4969_v1 }
 0x9ee   :  { %v4479_v60 = vpop.f32.mrf.mxu0  ;;  %v3585_v2 = vpop.f32.mrf.mxu1 }
 0x9ef   :  { %3715 = vxpose.xlu0.b32.start.end [1/1] (short) (narrow) %v3585_v2, 8  ;;  %v2326_v4 = vcombine.low %v2307_v25, %v2323_v53 }
 0x9f0   :  { %v3542_v3 = vpop.f32.mrf.mxu0  ;;  %v4485_v17 = vpop.f32.mrf.mxu1 }
 0x9f1   :  { %v2325_v17 = vcombine.high %v5436_v9, %v5439_v48  ;;  %v5480_v9 = vld [vmem:[#allocation2] sm:$0xf] }
 0x9f2   :  { %v4480_v6 = vpop.f32.mrf.mxu0  ;;  %v3588_v52 = vpop.f32.mrf.mxu1  ;;  %v5483_v48 = vadd.f32 1.0, %v5480_v9 }
 0x9f4   :  { %v3631_v21 = vpop.f32.mrf.mxu0  ;;  %v4486_v8 = vpop.f32.mrf.mxu1 }
 0x9f5   :  { %3747 = vxpose.xlu1.b32.start.end [1/1] (short) (narrow) %v3631_v21, 8 }
 0x9f6   :  { %v4491_v33 = vpop.f32.mrf.mxu0  ;;  %v3677_v10 = vpop.f32.mrf.mxu1 }
 0x9f7   :  { %3779 = vxpose.xlu0.b32.start.end [1/1] (short) (narrow) %v3677_v10, 8 }
 0x9f8   :  { %v3634_v12 = vpop.f32.mrf.mxu0  ;;  %v4497_v50 = vpop.f32.mrf.mxu1 }
 0x9fa   :  { %v4492_v13 = vpop.f32.mrf.mxu0  ;;  %v3680_v18 = vpop.f32.mrf.mxu1 }
 0x9fc   :  { %v4498_v27 = vpop.f32.mrf.mxu1 }
 0xa69   :  { %v3699_v29 = vpop.trf.xlu1 }
 0xa6b   :  { %v3731_v34 = vpop.trf.xlu0 }
 0xa71   :  { %v3763_v36 = vpop.trf.xlu1 }
 0xa72   :  { %v3811_v46 = vcombine.low %v3699_v29, %v3763_v36  ;;  %v3812_v47 = vcombine.high %v3699_v29, %v3763_v36 }
 0xa73   :  { %v3795_v49 = vpop.trf.xlu0 }
 0xa74   :  { %v3827_v44 = vcombine.low %v3731_v34, %v3795_v49  ;;  %v3828_v42 = vcombine.high %v3731_v34, %v3795_v49  ;;  %v3819_v54 = vrot.slane %v3811_v46, %v4962_v57  ;;  %v3826_v55 = vrot.slane %v3812_v47, %v4962_v57 }
 0xa76   :  { %v3835_v56 = vrot.slane %v3827_v44, %v4962_v57  ;;  %v3842_v59 = vrot.slane %v3828_v42, %v4962_v57 }
 0xa78   :  { %v3843_v40 = vcombine.low %v3819_v54, %v3835_v56  ;;  %v3844_v58 = vcombine.high %v3819_v54, %v3835_v56  ;;  %v3859_v11 = vcombine.low %v3826_v55, %v3842_v59  ;;  %v3860_v14 = vcombine.high %v3826_v55, %v3842_v59  ;;  %v5486_v55 = vld [vmem:[#allocation2 + $0x4] sm:$0xf]  ;;  %v4333_v56 = vld [vmem:[#allocation10] ss:$0 sm:$0xff] }
 0xa7a   :  { %v3851_v16 = vrot.slane %v3843_v40, %v4969_v1  ;;  %v3858_v19 = vrot.slane %v3844_v58, %v4969_v1  ;;  %v3867_v20 = vrot.slane %v3859_v11, %v4969_v1  ;;  %v3874_v22 = vrot.slane %v3860_v14, %v4969_v1 }
 0xa7b   :  { %v5490_v40 = vadd.f32 1.0, %v5486_v55  ;;  %v4048_v58 = vsub.s32 1, %v4959_v51 }
 0xa7c   :  { %v3879_v31 = vcombine.low %v3851_v16, %v3858_v19  ;;  %v4331_v32 = vcombine.high %v3851_v16, %v3858_v19  ;;  %v3895_v35 = vcombine.low %v3867_v20, %v3874_v22  ;;  %v4332_v61 = vcombine.high %v3867_v20, %v3874_v22 }
 0xa7d   :  { %v4049_v22 = vrot.slane %v5480_v9, %v4048_v58 }
 0xa7e   :  { %v3886_v45 = vrot.slane %v3879_v31, %v4962_v57  ;;  %v3894_v62 = vrot.slane %v4331_v32, %v4962_v57  ;;  %v3902_v63 = vrot.slane %v3895_v35, %v4962_v57  ;;  %v3910_v0 = vrot.slane %v4332_v61, %v4962_v57  ;;  %v4568_v57 = vld [vmem:[%s5563_s6] sm:$0xff]   ;;  %s4807_s6 = smov 24  }
 0xa7f   :  { %4502 = vmatpush3.bf16.msra.mxu0 %v4568_v57 }
 0xa80   :  { %v3912_v43 = vcombine.high %v3886_v45, %v3894_v62  ;;  %v3928_v38 = vcombine.high %v3902_v63, %v3910_v0  ;;  %v3911_v30 = vcombine.low %v3886_v45, %v3894_v62  ;;  %v3927_v60 = vcombine.low %v3902_v63, %v3910_v0  ;;  %4515 = vmatprep.subr.bf16.mxu0 %v4796_v15  ;;  %v4616_v62 = vld [vmem:[%s5557_s0 + $0x8] sm:$0xff] }
 0xa81   :  { %v4053_v45 = vrot.slane %v5486_v55, %v4048_v58 }
 0xa82   :  { %v3926_v2 = vrot.slane %v3912_v43, %v4969_v1  ;;  %v3942_v3 = vrot.slane %v3928_v38, %v4969_v1  ;;  %v3919_v39 = vrot.slane %v3911_v30, %v4969_v1  ;;  %v3935_v24 = vrot.slane %v3927_v60, %v4969_v1 }
 0xa83   :  { %v2327_v1 = vcombine.high %v2307_v25, %v2323_v53 }
 0xa84   :  { %v3945_v5 = vcombine.low %v3926_v2, %v3942_v3  ;;  %v3944_v6 = vcombine.high %v3919_v39, %v3935_v24  ;;  %v3943_v52 = vcombine.low %v3919_v39, %v3935_v24  ;;  %v3946_v7 = vcombine.high %v3926_v2, %v3942_v3 }
 0xa86   :  { %v4555_v21 = vpack.i.bf16 %v3945_v5, %v2326_v4  ;;  %v4550_v28 = vpack.i.bf16 %v3944_v6, %v2325_v17  ;;  %v4560_v8 = vpack.i.bf16 %v3946_v7, %v2327_v1  ;;  %v4569_v5 = vld [vmem:[%s5567_s10 + $0x8] sm:$0xff]   ;;  %v4570_v17 = vld [vmem:[%s5567_s10] sm:$0xff]   ;;  %v4571_v6 = vld [vmem:[%s5569_s12 + $0x18] sm:$0xff]  }
 0xa87   :  { %4508 = vmatpush3.bf16.msra.mxu1 %v4569_v5 }
 0xa88   :  { %4556 = vrot.lane.b32.xlu0 %v4555_v21, %s4805_s28  ;;  %4551 = vrot.lane.b32.xlu1 %v4550_v28, %s4806_s29 }
 0xa89   :  { %4509 = vmatprep.subr.bf16.mxu1 %v4796_v15 }
 0xa8b   :  { %4510 = vmatpush3.bf16.msra.mxu1 %v4570_v17 }
 0xa8c   :  { %4561 = vrot.lane.b32.xlu1 %v4560_v8, %s4807_s6 }
 0xafa   :  { %v4557_v33 = vpop.permute.xlu0 %4556  ;;  %v4552_v10 = vpop.permute.xlu1 %4551 }
 0xafb   :  { %v4554_v12 = vunpack.i.h.bf16 %v4552_v10  ;;  %v4553_v50 = vunpack.i.l.bf16 %v4552_v10  ;;  %v4559_v13 = vunpack.i.h.bf16 %v4557_v33  ;;  %v4558_v18 = vunpack.i.l.bf16 %v4557_v33 }
 0xafd   :  { %v2340_v27 = vsel %vm1220_vm3, %v2324_v23, %v4553_v50  ;;  %v3959_v29 = vsel %vm1220_vm3, %v3943_v52, %v4554_v12  ;;  %v4036_v23 = vsub.s32 0, %v4959_v51  ;;  %v4337_v12 = vld [vmem:[#allocation11] ss:$0 sm:$0xff] }
 0xafe   :  { %v4562_v34 = vpop.permute.xlu1 %4561  ;;  %v2342_v47 = vsel %vm2341_vm4, %v2340_v27, %v4558_v18  ;;  %v3960_v49 = vsel %vm2341_vm4, %v3959_v29, %v4559_v13  ;;  %v4338_v27 = vld [vmem:[#allocation13] ss:$0 sm:$0xff] }
 0xaff   :  { %v4564_v36 = vunpack.i.h.bf16 %v4562_v34  ;;  %v4563_v46 = vunpack.i.l.bf16 %v4562_v34  ;;  %v4037_v59 = vrot.slane %v5483_v48, %v4036_v23  ;;  %v4041_v20 = vrot.slane %v5490_v40, %v4036_v23 }
 0xb01   :  { %v2344_v44 = vsel %vm2343_vm5, %v2342_v47, %v4563_v46  ;;  %v3961_v42 = vsel %vm2343_vm5, %v3960_v49, %v4564_v36  ;;  %v4572_v47 = vld [vmem:[%s5569_s12 + $0x10] sm:$0xff]   ;;  %v4573_v49 = vld [vmem:[%s5569_s12 + $0x8] sm:$0xff]  }
 0xb02   :  { %v3962_v54 = vpack.c.bf16 %v3961_v42, %v2344_v44  ;;  %v4574_v44 = vld [vmem:[%s5569_s12] sm:$0xff]  }
 0xb03   :  { %v4339_v42 = vld [vmem:[%s5568_s11] ss:$0 sm:$0xff]  ;;  %s4808_s11 = smov [#allocation14]  }
 0xb04   :  { %4504 = vmatmul.mubr.msk.bf16.vlgmr.msra.gmra.mxu0 %vm136_vm0, %v3962_v54 }
 0xb05   :  { %4523 = vmatprep.mubr.msk.bf16.mxu0 %vm4797_vm1, %v4796_v15  ;;  %4516 = vmatpush3.bf16.msra.mxu0 %v4571_v6 }
 0xb06   :  { %4517 = vmatprep.subr.bf16.mxu0 %v4796_v15 }
 0xb09   :  { %4518 = vmatpush3.bf16.msra.mxu0 %v4572_v47 }
 0xb0a   :  { %4519 = vmatprep.subr.bf16.mxu0 %v4796_v15 }
 0xb0d   :  { %4520 = vmatpush3.bf16.msra.mxu0 %v4573_v49 }
 0xb0e   :  { %4521 = vmatprep.subr.bf16.mxu0 %v4796_v15  ;;  %v4257_v15 = vsub.s32 2, %v4959_v51 }
 0xb11   :  { %4522 = vmatpush3.bf16.msra.mxu0 %v4574_v44 }
 0xbc4   :  { %v4023_v11 = vpop.f32.mrf.mxu0 }
 0xbc5   :  { %v4024_v14 = vadd.f32 %v4333_v56, %v4023_v11 }
 0xbc6   :  { %v4505_v16 = vpop.f32.mrf.mxu0 }
 0xbc7   :  { %v4042_v19 = vmul.f32 %v4037_v59, %v4024_v14 }
 0xbc8   :  { %v4026_v26 = vpop.f32.mrf.mxu0 }
 0xbc9   :  { %v4044_v31 = vadd.f32 %v4615_v41, %v4042_v19  ;;  %v4027_v32 = vadd.f32 %v4333_v56, %v4026_v26  ;;  %v4269_v26 = vsub.s32 3, %v4959_v51 }
 0xbca   :  { %v4506_v35 = vpop.f32.mrf.mxu0 }
 0xbcb   :  { %v4043_v61 = vmul.f32 %v4041_v20, %v4027_v32  ;;  %v5498_v37 = vadd.f32 %v4049_v22, %v4044_v31  ;;  %v4343_v20 = vld [vmem:[%s5570_s13] ss:$0 sm:$0xff]  ;;  %v4258_v22 = vrot.slane %v5483_v48, %v4257_v15  ;;  %s4284_s13 = sshll.u32 %s4808_s11, 4  ;;  %s4285_s13 = int_to_ptr.vmem [resolvable:$true] %s4284_s13 }
 0xbcc   :  { %s4757_s25 = scalar_lea.vmem %s4285_s13, 256  ;;  %p4762_p8 = scmp.lt.s32.totalorder %s4285_s13, %s4285_s13 }
 0xbcd   :  { %v4045_v63 = vadd.f32 %v4616_v62, %v4043_v61  ;;  %v4058_v0 = vsel %vm136_vm0, %v5498_v37, 0.0  ;;  %v4270_v61 = vrot.slane %v5480_v9, %v4269_v26  ;;  %p4758_p7 = scmp.ne.s32.totalorder %s4285_s13, %s4757_s25  ;;  %p4763_p9 = scmp.lt.s32.totalorder %s4757_s25, %s4757_s25 }
 0xbce   :  { %4059 = vadd.xlane.f32.xlu1 %v4058_v0 }
 0xbcf   :  { %v5506_v25 = vadd.f32 %v4053_v45, %v4045_v63  ;;  %v4262_v45 = vrot.slane %v5490_v40, %v4257_v15  ;;  %p4764_p10 = por %p4763_p9, %p4762_p8 }
 0xbd1   :  { %v4061_v53 = vsel %vm136_vm0, %v5506_v25, 0.0  ;;  %p4765_p11 = pnand %p4764_p10, %p4758_p7 }
 0xbd2   :  { %4062 = vadd.xlane.f32.xlu0 %v4061_v53 }
 0xc57   :  { %v4060_v43 = vpop.xlane.xlu1 %4059 }
 0xc58   :  { %v4064_v38 = vmul.f32 0.03125, %v4060_v43 }
 0xc5a   :  { %v4066_v30 = vsub.f32 %v5498_v37, %v4064_v38 }
 0xc5b   :  { %v4063_v60 = vpop.xlane.xlu0 %4062 }
 0xc5c   :  { %v4065_v2 = vmul.f32 0.03125, %v4063_v60  ;;  %v4068_v3 = vmul.f32 %v4066_v30, %v4066_v30 }
 0xc5e   :  { %v4067_v39 = vsub.f32 %v5506_v25, %v4065_v2  ;;  %v4070_v24 = vsel %vm136_vm0, %v4068_v3, 0.0 }
 0xc5f   :  { %4071 = vadd.xlane.f32.xlu1 %v4070_v24 }
 0xc60   :  { %v4069_v57 = vmul.f32 %v4067_v39, %v4067_v39 }
 0xc62   :  { %v4073_v4 = vsel %vm136_vm0, %v4069_v57, 0.0 }
 0xc63   :  { %4074 = vadd.xlane.f32.xlu0 %v4073_v4 }
 0xce8   :  { %v4072_v52 = vpop.xlane.xlu1 %4071 }
 0xce9   :  { %v4076_v21 = vmul.f32 0.03125, %v4072_v52 }
 0xceb   :  { %v4078_v28 = vadd.f32 1e-05, %v4076_v21 }
 0xcec   :  { %v4075_v7 = vpop.xlane.xlu0 %4074 }
 0xced   :  { %4611 = vrsqrt.f32 %v4078_v28  ;;  %v4077_v1 = vmul.f32 0.03125, %v4075_v7 }
 0xcef   :  { %v4079_v8 = vadd.f32 1e-05, %v4077_v1 }
 0xcf1   :  { %4613 = vrsqrt.f32 %v4079_v8 }
 0xcfa   :  { %v4612_v33 = vpop.eup %4611 }
 0xcfb   :  { %v4082_v10 = vmul.f32 %v4612_v33, %v4066_v30  ;;  %v4274_v30 = vrot.slane %v5486_v55, %v4269_v26 }
 0xcfd   :  { %v4090_v18 = vmul.f32 %v4337_v12, %v4082_v10 }
 0xcfe   :  { %v4614_v50 = vpop.eup %4613 }
 0xcff   :  { %v4083_v13 = vmul.f32 %v4614_v50, %v4067_v39  ;;  %v4098_v34 = vadd.f32 %v4338_v27, %v4090_v18 }
 0xd01   :  { %v4091_v29 = vmul.f32 %v4337_v12, %v4083_v13 }
 0xd03   :  { %v4099_v36 = vadd.f32 %v4338_v27, %v4091_v29 }
 0xd05   :  { %v4100_v46 = vpack.c.bf16 %v4099_v36, %v4098_v34 }
 0xd07   :  { %4512 = vmatmul.mubr.msk.bf16.vlgmr.msra.gmra.mxu1 %vm136_vm0, %v4100_v46 }
 0xdc7   :  { %v4161_v54 = vpop.f32.mrf.mxu1 }
 0xdc8   :  { %v4162_v56 = vadd.f32 %v4339_v42, %v4161_v54 }
 0xdc9   :  { %v4513_v23 = vpop.f32.mrf.mxu1 }
 0xdca   :  { %v4168_v14 = vmax.f32 %v4162_v56, 0.0 }
 0xdcb   :  { %v4164_v59 = vpop.f32.mrf.mxu1 }
 0xdcc   :  { %v4165_v58 = vadd.f32 %v4339_v42, %v4164_v59 }
 0xdcd   :  { %v4514_v11 = vpop.f32.mrf.mxu1 }
 0xdce   :  { %v4169_v16 = vmax.f32 %v4165_v58, 0.0 }
 0xdd0   :  { %v4170_v19 = vpack.c.bf16 %v4169_v16, %v4168_v14 }
 0xdd2   :  { %4524 = vmatmul.mubr.msk.bf16.vlgmr.msra.gmra.mxu0 %vm4210_vm6, %v4170_v19 }
 0xe92   :  { %v4248_v41 = vpop.f32.mrf.mxu0 }
 0xe93   :  { %v4249_v31 = vadd.f32 %v4343_v20, %v4248_v41 }
 0xe94   :  { %v4525_v32 = vpop.f32.mrf.mxu0 }
 0xe95   :  { %v4263_v35 = vmul.f32 %v4258_v22, %v4249_v31 }
 0xe96   :  { %v4251_v62 = vpop.f32.mrf.mxu0 }
 0xe97   :  { %v4265_v63 = vadd.f32 %v4263_v35, %v5498_v37  ;;  %v4252_v0 = vadd.f32 %v4343_v20, %v4251_v62 }
 0xe98   :  { %v4526_v53 = vpop.f32.mrf.mxu0 }
 0xe99   :  { %v4275_v43 = vadd.f32 %v4270_v61, %v4265_v63  ;;  %v4264_v38 = vmul.f32 %v4262_v45, %v4252_v0 }
 0xe9b   :  { %4277 = vst.msk [vmem:[#allocation14] sm:$0xff] %vm136_vm0, %v4275_v43  ;;  %v4266_v51 = vadd.f32 %v4264_v38, %v5506_v25 }
 0xe9d   :  { %v4276_v48 = vadd.f32 %v4274_v30, %v4266_v51 }
 0xe9f   :  { %4278 = vst.msk [vmem:[#allocation14 + $0x8] sm:$0xff] %vm136_vm0, %v4276_v48 }
 0xea0   :  { %4768 = shalt.err (!%p4765_p11)
}
 0xea1   :  { %s4809_s5 = smov 128  }
 0xea2   :  { %4290 = dma.vmem_to_hbm [thread:$0]  %s4285_s13, 256, %s5571_s14, [#allocation4], %s4809_s5, %s4809_s5, %s4806_s29  }
 0xea3   :  { %4785 = dma.done.wait [#allocation4], 256  }
 0xea4   :  { %4786 = vsyncadd [#allocation4], 4294967040 }
 0xea5   :  { %4294 = vsyncpa [#allocation3], 1 }
 0xea6   :  { %4295 = vsyncpa [#allocation6], 1 }
 0xea7   :  { %4296 = vsyncpa [#allocation9], 1 }
 0xea8   :  { %4297 = vsyncpa [#allocation12], 1 }
 0xea9   :  { %4298 = vsyncpa [#allocation4], 1 }

</bundles_post_ra>
